<compile_context>
chip_gen: v7x
topology: tpu7x:2x2x1
jax: 0.10.0
libtpu: 0.0.40
codegen_flags: <defaults>
</compile_context>

<pallas_src>
import functools

import jax
import jax.numpy as jnp
from jax.experimental import pallas as pl
from jax.experimental.pallas import tpu as pltpu


# Matmul operand dtype (accumulation is always f32).  bf16 follows the per-generation MXU
# recommendation; flip to jnp.float32 for operand-exact f32 math (also changes slab dtypes).
MXU_DTYPE = jnp.bfloat16
LN_EPS = 1e-5


@functools.lru_cache(maxsize=None)
def _vmem_limit_bytes():
    """Generation-aware scoped-VMEM limit: ~75% of capacity, capped at 100 MiB, floor 48 MiB."""
    default = 48 * 1024 * 1024
    try:
        info = pltpu.get_tpu_info()
        cap = getattr(info, "vmem_capacity_bytes", None)
        if not cap:
            return default
        return max(default, min(int(cap) * 3 // 4, 100 * 1024 * 1024))
    except Exception:
        return default


def _pick_tile(dim, target, align=128):
    """Largest aligned divisor of `dim` <= target (prefer 128-aligned, then 8); full dim if small."""
    if dim <= target:
        return dim
    for a in (align, 8):
        t = (target // a) * a
        while t >= a:
            if dim % t == 0:
                return t
            t -= a
    return dim


def _recip(x):
    # EUP approximate reciprocal (separate bundle slot -> ~free).
    if hasattr(pl, "reciprocal"):
        return pl.reciprocal(x, approx=True)
    return 1.0 / x


# ----------------------------------------------------------------------------
# Kernel 1: fused multi-output projection   out[p] = x @ w[p] + b[p]
#   P=3 -> fused QKV, P=2 -> fused KV, P=1 -> single projection.
#   P lives INSIDE the kernel so the activation tile is streamed only once.
# ----------------------------------------------------------------------------
def _fused_proj_kernel(x_ref, w_ref, b_ref, o_ref, acc_ref):
    k = pl.program_id(1)

    @pl.when(k == 0)
    def _():
        acc_ref[...] = jnp.zeros_like(acc_ref)

    x = x_ref[...].astype(MXU_DTYPE)
    for p in range(w_ref.shape[0]):                       # small static P (<= 3)
        acc_ref[p] += jnp.dot(x, w_ref[p], preferred_element_type=jnp.float32)

    @pl.when(k == pl.num_programs(1) - 1)
    def _():
        o_ref[...] = (acc_ref[...] + b_ref[...]).astype(o_ref.dtype)


def pallas_fused_proj(x, w, b):
    """x: (M, K) f32; w: (P, K, N) bf16; b: (P, N) f32 -> (P, M, N) bf16 slab."""
    M, K = x.shape
    P, _, N = w.shape
    tm = _pick_tile(M, 256, 128)
    tk = _pick_tile(K, 512, 128)
    return pl.pallas_call(
        _fused_proj_kernel,
        out_shape=jax.ShapeDtypeStruct((P, M, N), MXU_DTYPE),
        grid=(M // tm, K // tk),
        in_specs=[
            pl.BlockSpec((tm, tk), lambda i, k: (i, k)),
            pl.BlockSpec((P, tk, N), lambda i, k: (0, k, 0)),
            pl.BlockSpec((P, 1, N), lambda i, k: (0, 0, 0)),
        ],
        out_specs=pl.BlockSpec((P, tm, N), lambda i, k: (0, i, 0)),
        scratch_shapes=[pltpu.VMEM((P, tm, N), jnp.float32)],
        compiler_params=pltpu.CompilerParams(
            dimension_semantics=("parallel", "arbitrary"),
            vmem_limit_bytes=_vmem_limit_bytes()),
    )(x, w, b.reshape(P, 1, N))


# ----------------------------------------------------------------------------
# Kernel 2: per-batch-row MHA fused with out-projection + residual + LayerNorm.
#   Per-head attention output is contracted against the matching wo rows and accumulated
#   into a lane-dense (T, E) f32 VMEM slab -> one lane-dense store per grid step.
# ----------------------------------------------------------------------------
def _mha_block_kernel(q_ref, k_ref, v_ref, wo_ref, bo_ref, res_ref, g_ref, bb_ref,
                      *rest, num_heads, scale, has_mask, eps):
    if has_mask:
        m_ref, o_ref, acc_ref = rest
    else:
        o_ref, acc_ref = rest
        m_ref = None

    E = q_ref.shape[3]
    Dh = E // num_heads

    acc_ref[...] = jnp.zeros_like(acc_ref)

    # TODO(synk): for long S, switch to flash-style KV streaming (online softmax) per head.
    for h in range(num_heads):
        lo = h * Dh
        qh = q_ref[0, 0, :, lo:lo + Dh]                   # (T, Dh) bf16
        kh = k_ref[0, 0, :, lo:lo + Dh]                   # (S, Dh) bf16
        vh = v_ref[0, 0, :, lo:lo + Dh]                   # (S, Dh) bf16

        # scores: contract on Dh (no explicit k.T / XLU transpose); scale applied in f32.
        s = jax.lax.dot_general(qh, kh, (((1,), (1,)), ((), ())),
                                preferred_element_type=jnp.float32) * scale   # (T, S)
        if has_mask:
            s = s + m_ref[...]
        s_max = jnp.maximum(jnp.max(s, axis=-1, keepdims=True), -1e30)  # guard all-masked rows
        p = jnp.exp(s - s_max)
        denom = jnp.maximum(jnp.sum(p, axis=-1, keepdims=True), 1e-30)
        p = p * _recip(denom)

        oh = jnp.dot(p.astype(MXU_DTYPE), vh, preferred_element_type=jnp.float32)   # (T, Dh)
        # head-local out-projection rows: lane-dense (T, E) accumulation, no masked stores.
        acc_ref[...] += jnp.dot(oh.astype(MXU_DTYPE), wo_ref[lo:lo + Dh, :],
                                preferred_element_type=jnp.float32)

    # epilogue: bias + residual + LayerNorm, single lane-dense f32 store
    y = acc_ref[...] + bo_ref[...] + res_ref[0]
    mu = jnp.mean(y, axis=-1, keepdims=True)
    var = jnp.mean((y - mu) * (y - mu), axis=-1, keepdims=True)
    ynorm = (y - mu) * jax.lax.rsqrt(var + eps)
    o_ref[0] = (ynorm * g_ref[...] + bb_ref[...]).astype(o_ref.dtype)


def pallas_mha_block(q_slab, kv_slab, q_idx, k_idx, v_idx, B, T, S, num_heads,
                     wo, bo, residual, gamma, beta, mask=None):
    """q_slab: (Pq, B*T, E) bf16; kv_slab: (Pkv, B*S, E) bf16; residual: (B*T, E) f32.
    Returns LN(residual + attn @ wo + bo) as (B*T, E) f32."""
    E = q_slab.shape[-1]
    Dh = E // num_heads
    q4 = q_slab.reshape(-1, B, T, E)      # free (contiguous) reshapes
    kv4 = kv_slab.reshape(-1, B, S, E)
    res3 = residual.reshape(B, T, E)

    has_mask = mask is not None
    kernel = functools.partial(_mha_block_kernel, num_heads=num_heads,
                               scale=Dh ** -0.5, has_mask=has_mask, eps=LN_EPS)

    in_specs = [
        pl.BlockSpec((1, 1, T, E), lambda b: (q_idx, b, 0, 0)),
        pl.BlockSpec((1, 1, S, E), lambda b: (k_idx, b, 0, 0)),
        pl.BlockSpec((1, 1, S, E), lambda b: (v_idx, b, 0, 0)),
        pl.BlockSpec((E, E), lambda b: (0, 0)),
        pl.BlockSpec((1, E), lambda b: (0, 0)),
        pl.BlockSpec((1, T, E), lambda b: (b, 0, 0)),
        pl.BlockSpec((1, E), lambda b: (0, 0)),
        pl.BlockSpec((1, E), lambda b: (0, 0)),
    ]
    args = [q4, kv4, kv4, wo, bo.reshape(1, E), res3,
            gamma.reshape(1, E), beta.reshape(1, E)]
    if has_mask:
        in_specs.append(pl.BlockSpec((T, S), lambda b: (0, 0)))
        args.append(mask.astype(jnp.float32))

    out = pl.pallas_call(
        kernel,
        out_shape=jax.ShapeDtypeStruct((B, T, E), jnp.float32),
        grid=(B,),
        in_specs=in_specs,
        out_specs=pl.BlockSpec((1, T, E), lambda b: (b, 0, 0)),
        scratch_shapes=[pltpu.VMEM((T, E), jnp.float32)],
        compiler_params=pltpu.CompilerParams(
            dimension_semantics=("parallel",),
            vmem_limit_bytes=_vmem_limit_bytes()),
    )(*args)
    return out.reshape(B * T, E)


# ----------------------------------------------------------------------------
# Kernel 3: fused FFN  LN(x + (relu(x@W1+b1) @ W2 + b2))
#   hidden activation stays in VMEM/vregs; FFN hidden dim is the (arbitrary) reduction axis.
#   The x block doubles as the residual (single DMA).
# ----------------------------------------------------------------------------
def _ffn_kernel(x_ref, w1_ref, b1_ref, w2_ref, b2_ref, g_ref, bb_ref, o_ref, acc_ref, *, eps):
    f = pl.program_id(1)

    @pl.when(f == 0)
    def _():
        acc_ref[...] = jnp.zeros_like(acc_ref)

    h = jnp.dot(x_ref[...].astype(MXU_DTYPE), w1_ref[...],
                preferred_element_type=jnp.float32) + b1_ref[...]
    h = jnp.maximum(h, 0.0)                                    # ReLU on the fc1 block
    acc_ref[...] += jnp.dot(h.astype(MXU_DTYPE), w2_ref[...],
                            preferred_element_type=jnp.float32)

    @pl.when(f == pl.num_programs(1) - 1)
    def _():
        y = acc_ref[...] + b2_ref[...] + x_ref[...].astype(jnp.float32)
        mu = jnp.mean(y, axis=-1, keepdims=True)
        var = jnp.mean((y - mu) * (y - mu), axis=-1, keepdims=True)
        ynorm = (y - mu) * jax.lax.rsqrt(var + eps)
        o_ref[...] = (ynorm * g_ref[...] + bb_ref[...]).astype(o_ref.dtype)


def pallas_ffn_add_ln(x, w1, b1, w2, b2, gamma, beta, eps=LN_EPS):
    M, E = x.shape
    F = w1.shape[1]
    tm = _pick_tile(M, 256, 128)
    tf = _pick_tile(F, 256, 128)       # smaller hidden tile: keep fc1 intermediate from spilling
    kernel = functools.partial(_ffn_kernel, eps=eps)
    return pl.pallas_call(
        kernel,
        out_shape=jax.ShapeDtypeStruct((M, E), x.dtype),
        grid=(M // tm, F // tf),
        in_specs=[
            pl.BlockSpec((tm, E), lambda i, f: (i, 0)),
            pl.BlockSpec((E, tf), lambda i, f: (0, f)),
            pl.BlockSpec((1, tf), lambda i, f: (0, f)),
            pl.BlockSpec((tf, E), lambda i, f: (f, 0)),
            pl.BlockSpec((1, E), lambda i, f: (0, 0)),
            pl.BlockSpec((1, E), lambda i, f: (0, 0)),
            pl.BlockSpec((1, E), lambda i, f: (0, 0)),
        ],
        out_specs=pl.BlockSpec((tm, E), lambda i, f: (i, 0)),
        scratch_shapes=[pltpu.VMEM((tm, E), jnp.float32)],
        compiler_params=pltpu.CompilerParams(
            dimension_semantics=("parallel", "arbitrary"),
            vmem_limit_bytes=_vmem_limit_bytes()),
    )(x, w1, b1.reshape(1, F), w2, b2.reshape(1, E),
      gamma.reshape(1, E), beta.reshape(1, E))


# ----------------------------------------------------------------------------
# Module glue (only free reshapes + one relayout in / one out)
# ----------------------------------------------------------------------------
def transformer_encoder_layer_forward(x, enc_input, params, num_heads, self_attn_mask=None):
    """x: (T, B, E); enc_input: (S, B, E). Returns (x_out, attn=None, None)."""
    T, B, E = x.shape
    S = enc_input.shape[0]

    # Single relayout to batch-major for the whole layer (and one back at the end).
    xb = x.transpose(1, 0, 2).reshape(B * T, E)
    encb = enc_input.transpose(1, 0, 2).reshape(B * S, E)

    # --- self-attention block (post-norm: LN(residual + out_proj(attn))) ---
    p = params["self_attn"]
    qkv = pallas_fused_proj(xb, p["w_qkv"], p["b_qkv"])                  # (3, B*T, E) bf16
    xb = pallas_mha_block(qkv, qkv, 0, 1, 2, B, T, T, num_heads,
                          p["wo"], p["bo"], xb,
                          params["self_attn_ln_g"], params["self_attn_ln_b"],
                          mask=self_attn_mask)

    # --- encoder (cross) attention block ---
    p = params["encoder_attn"]
    qp = pallas_fused_proj(xb, p["w_q"], p["b_q"])                       # (1, B*T, E) bf16
    kv = pallas_fused_proj(encb, p["w_kv"], p["b_kv"])                   # (2, B*S, E) bf16
    xb = pallas_mha_block(qp, kv, 0, 0, 1, B, T, S, num_heads,
                          p["wo"], p["bo"], xb,
                          params["encoder_attn_ln_g"], params["encoder_attn_ln_b"],
                          mask=None)

    # --- FFN block (fc1 relu + fc2 + residual + LN fused) ---
    xb = pallas_ffn_add_ln(xb, params["fc1_w"], params["fc1_b"],
                           params["fc2_w"], params["fc2_b"],
                           params["final_ln_g"], params["final_ln_b"])

    out = xb.reshape(B, T, E).transpose(1, 0, 2)
    return out, None, None


# ----------------------------------------------------------------------------
# Deterministic parameter construction
#   Weights stored (in, out) and cast ONCE to bf16 (MXU operand dtype); biases / LN params f32.
# ----------------------------------------------------------------------------
def make_self_attn_params(key, E):
    ks = jax.random.split(key, 2)
    scale = 0.02
    return {
        "w_qkv": (scale * jax.random.normal(ks[0], (3, E, E), jnp.float32)).astype(MXU_DTYPE),
        "b_qkv": jnp.zeros((3, E), jnp.float32),
        "wo": (scale * jax.random.normal(ks[1], (E, E), jnp.float32)).astype(MXU_DTYPE),
        "bo": jnp.zeros((E,), jnp.float32),
    }


def make_cross_attn_params(key, E):
    ks = jax.random.split(key, 3)
    scale = 0.02
    return {
        "w_q": (scale * jax.random.normal(ks[0], (1, E, E), jnp.float32)).astype(MXU_DTYPE),
        "b_q": jnp.zeros((1, E), jnp.float32),
        "w_kv": (scale * jax.random.normal(ks[1], (2, E, E), jnp.float32)).astype(MXU_DTYPE),
        "b_kv": jnp.zeros((2, E), jnp.float32),
        "wo": (scale * jax.random.normal(ks[2], (E, E), jnp.float32)).astype(MXU_DTYPE),
        "bo": jnp.zeros((E,), jnp.float32),
    }


def make_params(key, embed_dim, ffn_dim):
    k_self, k_enc, k_fc1, k_fc2 = jax.random.split(key, 4)
    scale = 0.02
    return {
        "self_attn": make_self_attn_params(k_self, embed_dim),
        "encoder_attn": make_cross_attn_params(k_enc, embed_dim),
        "self_attn_ln_g": jnp.ones((embed_dim,), jnp.float32),
        "self_attn_ln_b": jnp.zeros((embed_dim,), jnp.float32),
        "encoder_attn_ln_g": jnp.ones((embed_dim,), jnp.float32),
        "encoder_attn_ln_b": jnp.zeros((embed_dim,), jnp.float32),
        "fc1_w": (scale * jax.random.normal(k_fc1, (embed_dim, ffn_dim), jnp.float32)).astype(MXU_DTYPE),
        "fc1_b": jnp.zeros((ffn_dim,), jnp.float32),
        "fc2_w": (scale * jax.random.normal(k_fc2, (ffn_dim, embed_dim), jnp.float32)).astype(MXU_DTYPE),
        "fc2_b": jnp.zeros((embed_dim,), jnp.float32),
        "final_ln_g": jnp.ones((embed_dim,), jnp.float32),
        "final_ln_b": jnp.zeros((embed_dim,), jnp.float32),
    }


if __name__ == "__main__":
    # Small shapes consistent with the module: (seq_len, batch, embed_dim)
    T, S, B = 8, 8, 2
    EMBED_DIM = 32
    FFN_DIM = 64
    NUM_HEADS = 4
    assert EMBED_DIM % NUM_HEADS == 0

    root = jax.random.PRNGKey(0)
    k_params, k_x, k_inp = jax.random.split(root, 3)

    params = make_params(k_params, EMBED_DIM, FFN_DIM)
    x = jax.random.normal(k_x, (T, B, EMBED_DIM), jnp.float32)
    enc_input = jax.random.normal(k_inp, (S, B, EMBED_DIM), jnp.float32)

    fwd = jax.jit(transformer_encoder_layer_forward, static_argnames=("num_heads",))
    out, attn, _ = fwd(x, enc_input, params, num_heads=NUM_HEADS, self_attn_mask=None)
    out = jax.block_until_ready(out)

    assert out.shape == (T, B, EMBED_DIM)
    assert out.dtype == jnp.float32
    assert bool(jnp.all(jnp.isfinite(out)))
    print("KERNEL_OK")
</pallas_src>

<mosaic_0001>
module attributes {stable_mosaic.version = 11 : i64} {
  func.func @_mha_block_kernel(%arg0: i32, %arg1: memref<1x1x8x32xbf16, #tpu.memory_space<vmem>>, %arg2: memref<1x1x8x32xbf16, #tpu.memory_space<vmem>>, %arg3: memref<1x1x8x32xbf16, #tpu.memory_space<vmem>>, %arg4: memref<32x32xbf16, #tpu.memory_space<vmem>>, %arg5: memref<1x32xf32, #tpu.memory_space<vmem>>, %arg6: memref<1x8x32xf32, #tpu.memory_space<vmem>>, %arg7: memref<1x32xf32, #tpu.memory_space<vmem>>, %arg8: memref<1x32xf32, #tpu.memory_space<vmem>>, %arg9: memref<1x8x32xf32, #tpu.memory_space<vmem>>, %arg10: memref<8x32xf32, #tpu.memory_space<vmem>>) attributes {dimension_semantics = [#tpu.dimension_semantics<parallel>], iteration_bounds = array<i64: 2>, scalar_prefetch = 0 : i64, scratch_operands = 1 : i64, tpu.core_type = #tpu.core_type<tc>, window_params = [{transform_indices = @transform_0, window_bounds = array<i64: 1, 1, 8, 32>}, {transform_indices = @transform_1, window_bounds = array<i64: 1, 1, 8, 32>}, {transform_indices = @transform_2, window_bounds = array<i64: 1, 1, 8, 32>}, {pipeline_mode = #tpu.pipeline_mode<synchronous>, transform_indices = @transform_3, window_bounds = array<i64: 32, 32>}, {pipeline_mode = #tpu.pipeline_mode<synchronous>, transform_indices = @transform_4, window_bounds = array<i64: 1, 32>}, {transform_indices = @transform_5, window_bounds = array<i64: 1, 8, 32>}, {pipeline_mode = #tpu.pipeline_mode<synchronous>, transform_indices = @transform_6, window_bounds = array<i64: 1, 32>}, {pipeline_mode = #tpu.pipeline_mode<synchronous>, transform_indices = @transform_7, window_bounds = array<i64: 1, 32>}, {transform_indices = @transform_8, window_bounds = array<i64: 1, 8, 32>}]} {
    %cst = arith.constant 0.000000e+00 : f32
    %0 = vector.broadcast %cst : f32 to vector<8x32xf32>
    %c0 = arith.constant 0 : index
    %c0_0 = arith.constant 0 : index
    %1 = vector.load %arg10[%c0, %c0_0] : memref<8x32xf32, #tpu.memory_space<vmem>>, vector<8x32xf32>
    tpu.vector_store %arg10[%c0, %c0_0], %0 {strides = array<i32>} : memref<8x32xf32, #tpu.memory_space<vmem>>, vector<8x32xf32>,
    %c0_1 = arith.constant 0 : index
    %c0_2 = arith.constant 0 : index
    %c0_3 = arith.constant 0 : index
    %c0_4 = arith.constant 0 : index
    %2 = vector.load %arg1[%c0_1, %c0_2, %c0_3, %c0_4] : memref<1x1x8x32xbf16, #tpu.memory_space<vmem>>, vector<1x1x8x8xbf16>
    %3 = vector.shape_cast %2 : vector<1x1x8x8xbf16> to vector<8x8xbf16>
    %c0_5 = arith.constant 0 : index
    %c0_6 = arith.constant 0 : index
    %c0_7 = arith.constant 0 : index
    %c0_8 = arith.constant 0 : index
    %4 = vector.load %arg2[%c0_5, %c0_6, %c0_7, %c0_8] : memref<1x1x8x32xbf16, #tpu.memory_space<vmem>>, vector<1x1x8x8xbf16>
    %5 = vector.shape_cast %4 : vector<1x1x8x8xbf16> to vector<8x8xbf16>
    %c0_9 = arith.constant 0 : index
    %c0_10 = arith.constant 0 : index
    %c0_11 = arith.constant 0 : index
    %c0_12 = arith.constant 0 : index
    %6 = vector.load %arg3[%c0_9, %c0_10, %c0_11, %c0_12] : memref<1x1x8x32xbf16, #tpu.memory_space<vmem>>, vector<1x1x8x8xbf16>
    %7 = vector.shape_cast %6 : vector<1x1x8x8xbf16> to vector<8x8xbf16>
    %cst_13 = arith.constant dense<0.000000e+00> : vector<8x8xf32>
    %8 = tpu.matmul %3, %5, %cst_13 {dimension_numbers = #tpu.dot_dimension_numbers<[1], [1], [0], [0], [0, 0, 1, 0], [], []>} : vector<8x8xbf16>, vector<8x8xbf16>, vector<8x8xf32> -> vector<8x8xf32>
    %cst_14 = arith.constant 0.353553385 : f32
    %9 = vector.broadcast %cst_14 : f32 to vector<8x8xf32>
    %10 = arith.mulf %8, %9 : vector<8x8xf32>
    %cst_15 = arith.constant dense<0xFF800000> : vector<8xf32>
    %11 = vector.multi_reduction <maximumf>, %10, %cst_15 [1] : vector<8x8xf32> to vector<8xf32>
    %12 = vector.shape_cast %11 : vector<8xf32> to vector<8x1xf32>
    %cst_16 = arith.constant -1.000000e+30 : f32
    %13 = vector.broadcast %cst_16 : f32 to vector<8x1xf32>
    %14 = arith.maximumf %12, %13 : vector<8x1xf32>
    %15 = vector.broadcast %14 : vector<8x1xf32> to vector<8x8xf32>
    %16 = arith.subf %10, %15 : vector<8x8xf32>
    %17 = math.exp %16 : vector<8x8xf32>
    %cst_17 = arith.constant dense<0.000000e+00> : vector<8xf32>
    %18 = vector.multi_reduction <add>, %17, %cst_17 [1] : vector<8x8xf32> to vector<8xf32>
    %19 = vector.shape_cast %18 : vector<8xf32> to vector<8x1xf32>
    %cst_18 = arith.constant 1.000000e-30 : f32
    %20 = vector.broadcast %cst_18 : f32 to vector<8x1xf32>
    %21 = arith.maximumf %19, %20 : vector<8x1xf32>
    %22 = tpu.reciprocal %21 {approx = true} : vector<8x1xf32> -> vector<8x1xf32>
    %23 = vector.broadcast %22 : vector<8x1xf32> to vector<8x8xf32>
    %24 = arith.mulf %17, %23 : vector<8x8xf32>
    %25 = arith.truncf %24 : vector<8x8xf32> to vector<8x8xbf16>
    %cst_19 = arith.constant dense<0.000000e+00> : vector<8x8xf32>
    %26 = tpu.matmul %25, %7, %cst_19 {dimension_numbers = #tpu.dot_dimension_numbers<[1], [0], [0], [1], [0, 0, 1, 1], [], []>} : vector<8x8xbf16>, vector<8x8xbf16>, vector<8x8xf32> -> vector<8x8xf32>
    %c0_20 = arith.constant 0 : index
    %c0_21 = arith.constant 0 : index
    %27 = vector.load %arg10[%c0_20, %c0_21] : memref<8x32xf32, #tpu.memory_space<vmem>>, vector<8x32xf32>
    %28 = arith.truncf %26 : vector<8x8xf32> to vector<8x8xbf16>
    %c0_22 = arith.constant 0 : index
    %c0_23 = arith.constant 0 : index
    %29 = vector.load %arg4[%c0_22, %c0_23] : memref<32x32xbf16, #tpu.memory_space<vmem>>, vector<8x32xbf16>
    %cst_24 = arith.constant dense<0.000000e+00> : vector<8x32xf32>
    %30 = tpu.matmul %28, %29, %cst_24 {dimension_numbers = #tpu.dot_dimension_numbers<[1], [0], [0], [1], [0, 0, 1, 1], [], []>} : vector<8x8xbf16>, vector<8x32xbf16>, vector<8x32xf32> -> vector<8x32xf32>
    %31 = arith.addf %27, %30 : vector<8x32xf32>
    %c0_25 = arith.constant 0 : index
    %c0_26 = arith.constant 0 : index
    %32 = vector.load %arg10[%c0_25, %c0_26] : memref<8x32xf32, #tpu.memory_space<vmem>>, vector<8x32xf32>
    tpu.vector_store %arg10[%c0_25, %c0_26], %31 {strides = array<i32>} : memref<8x32xf32, #tpu.memory_space<vmem>>, vector<8x32xf32>,
    %c0_27 = arith.constant 0 : index
    %c0_28 = arith.constant 0 : index
    %c0_29 = arith.constant 0 : index
    %c8 = arith.constant 8 : index
    %33 = vector.load %arg1[%c0_27, %c0_28, %c0_29, %c8] : memref<1x1x8x32xbf16, #tpu.memory_space<vmem>>, vector<1x1x8x8xbf16>
    %34 = vector.shape_cast %33 : vector<1x1x8x8xbf16> to vector<8x8xbf16>
    %c0_30 = arith.constant 0 : index
    %c0_31 = arith.constant 0 : index
    %c0_32 = arith.constant 0 : index
    %c8_33 = arith.constant 8 : index
    %35 = vector.load %arg2[%c0_30, %c0_31, %c0_32, %c8_33] : memref<1x1x8x32xbf16, #tpu.memory_space<vmem>>, vector<1x1x8x8xbf16>
    %36 = vector.shape_cast %35 : vector<1x1x8x8xbf16> to vector<8x8xbf16>
    %c0_34 = arith.constant 0 : index
    %c0_35 = arith.constant 0 : index
    %c0_36 = arith.constant 0 : index
    %c8_37 = arith.constant 8 : index
    %37 = vector.load %arg3[%c0_34, %c0_35, %c0_36, %c8_37] : memref<1x1x8x32xbf16, #tpu.memory_space<vmem>>, vector<1x1x8x8xbf16>
    %38 = vector.shape_cast %37 : vector<1x1x8x8xbf16> to vector<8x8xbf16>
    %cst_38 = arith.constant dense<0.000000e+00> : vector<8x8xf32>
    %39 = tpu.matmul %34, %36, %cst_38 {dimension_numbers = #tpu.dot_dimension_numbers<[1], [1], [0], [0], [0, 0, 1, 0], [], []>} : vector<8x8xbf16>, vector<8x8xbf16>, vector<8x8xf32> -> vector<8x8xf32>
    %cst_39 = arith.constant 0.353553385 : f32
    %40 = vector.broadcast %cst_39 : f32 to vector<8x8xf32>
    %41 = arith.mulf %39, %40 : vector<8x8xf32>
    %cst_40 = arith.constant dense<0xFF800000> : vector<8xf32>
    %42 = vector.multi_reduction <maximumf>, %41, %cst_40 [1] : vector<8x8xf32> to vector<8xf32>
    %43 = vector.shape_cast %42 : vector<8xf32> to vector<8x1xf32>
    %cst_41 = arith.constant -1.000000e+30 : f32
    %44 = vector.broadcast %cst_41 : f32 to vector<8x1xf32>
    %45 = arith.maximumf %43, %44 : vector<8x1xf32>
    %46 = vector.broadcast %45 : vector<8x1xf32> to vector<8x8xf32>
    %47 = arith.subf %41, %46 : vector<8x8xf32>
    %48 = math.exp %47 : vector<8x8xf32>
    %cst_42 = arith.constant dense<0.000000e+00> : vector<8xf32>
    %49 = vector.multi_reduction <add>, %48, %cst_42 [1] : vector<8x8xf32> to vector<8xf32>
    %50 = vector.shape_cast %49 : vector<8xf32> to vector<8x1xf32>
    %cst_43 = arith.constant 1.000000e-30 : f32
    %51 = vector.broadcast %cst_43 : f32 to vector<8x1xf32>
    %52 = arith.maximumf %50, %51 : vector<8x1xf32>
    %53 = tpu.reciprocal %52 {approx = true} : vector<8x1xf32> -> vector<8x1xf32>
    %54 = vector.broadcast %53 : vector<8x1xf32> to vector<8x8xf32>
    %55 = arith.mulf %48, %54 : vector<8x8xf32>
    %56 = arith.truncf %55 : vector<8x8xf32> to vector<8x8xbf16>
    %cst_44 = arith.constant dense<0.000000e+00> : vector<8x8xf32>
    %57 = tpu.matmul %56, %38, %cst_44 {dimension_numbers = #tpu.dot_dimension_numbers<[1], [0], [0], [1], [0, 0, 1, 1], [], []>} : vector<8x8xbf16>, vector<8x8xbf16>, vector<8x8xf32> -> vector<8x8xf32>
    %c0_45 = arith.constant 0 : index
    %c0_46 = arith.constant 0 : index
    %58 = vector.load %arg10[%c0_45, %c0_46] : memref<8x32xf32, #tpu.memory_space<vmem>>, vector<8x32xf32>
    %59 = arith.truncf %57 : vector<8x8xf32> to vector<8x8xbf16>
    %c8_47 = arith.constant 8 : index
    %c0_48 = arith.constant 0 : index
    %60 = vector.load %arg4[%c8_47, %c0_48] : memref<32x32xbf16, #tpu.memory_space<vmem>>, vector<8x32xbf16>
    %cst_49 = arith.constant dense<0.000000e+00> : vector<8x32xf32>
    %61 = tpu.matmul %59, %60, %cst_49 {dimension_numbers = #tpu.dot_dimension_numbers<[1], [0], [0], [1], [0, 0, 1, 1], [], []>} : vector<8x8xbf16>, vector<8x32xbf16>, vector<8x32xf32> -> vector<8x32xf32>
    %62 = arith.addf %58, %61 : vector<8x32xf32>
    %c0_50 = arith.constant 0 : index
    %c0_51 = arith.constant 0 : index
    %63 = vector.load %arg10[%c0_50, %c0_51] : memref<8x32xf32, #tpu.memory_space<vmem>>, vector<8x32xf32>
    tpu.vector_store %arg10[%c0_50, %c0_51], %62 {strides = array<i32>} : memref<8x32xf32, #tpu.memory_space<vmem>>, vector<8x32xf32>,
    %c0_52 = arith.constant 0 : index
    %c0_53 = arith.constant 0 : index
    %c0_54 = arith.constant 0 : index
    %c16 = arith.constant 16 : index
    %64 = vector.load %arg1[%c0_52, %c0_53, %c0_54, %c16] : memref<1x1x8x32xbf16, #tpu.memory_space<vmem>>, vector<1x1x8x8xbf16>
    %65 = vector.shape_cast %64 : vector<1x1x8x8xbf16> to vector<8x8xbf16>
    %c0_55 = arith.constant 0 : index
    %c0_56 = arith.constant 0 : index
    %c0_57 = arith.constant 0 : index
    %c16_58 = arith.constant 16 : index
    %66 = vector.load %arg2[%c0_55, %c0_56, %c0_57, %c16_58] : memref<1x1x8x32xbf16, #tpu.memory_space<vmem>>, vector<1x1x8x8xbf16>
    %67 = vector.shape_cast %66 : vector<1x1x8x8xbf16> to vector<8x8xbf16>
    %c0_59 = arith.constant 0 : index
    %c0_60 = arith.constant 0 : index
    %c0_61 = arith.constant 0 : index
    %c16_62 = arith.constant 16 : index
    %68 = vector.load %arg3[%c0_59, %c0_60, %c0_61, %c16_62] : memref<1x1x8x32xbf16, #tpu.memory_space<vmem>>, vector<1x1x8x8xbf16>
    %69 = vector.shape_cast %68 : vector<1x1x8x8xbf16> to vector<8x8xbf16>
    %cst_63 = arith.constant dense<0.000000e+00> : vector<8x8xf32>
    %70 = tpu.matmul %65, %67, %cst_63 {dimension_numbers = #tpu.dot_dimension_numbers<[1], [1], [0], [0], [0, 0, 1, 0], [], []>} : vector<8x8xbf16>, vector<8x8xbf16>, vector<8x8xf32> -> vector<8x8xf32>
    %cst_64 = arith.constant 0.353553385 : f32
    %71 = vector.broadcast %cst_64 : f32 to vector<8x8xf32>
    %72 = arith.mulf %70, %71 : vector<8x8xf32>
    %cst_65 = arith.constant dense<0xFF800000> : vector<8xf32>
    %73 = vector.multi_reduction <maximumf>, %72, %cst_65 [1] : vector<8x8xf32> to vector<8xf32>
    %74 = vector.shape_cast %73 : vector<8xf32> to vector<8x1xf32>
    %cst_66 = arith.constant -1.000000e+30 : f32
    %75 = vector.broadcast %cst_66 : f32 to vector<8x1xf32>
    %76 = arith.maximumf %74, %75 : vector<8x1xf32>
    %77 = vector.broadcast %76 : vector<8x1xf32> to vector<8x8xf32>
    %78 = arith.subf %72, %77 : vector<8x8xf32>
    %79 = math.exp %78 : vector<8x8xf32>
    %cst_67 = arith.constant dense<0.000000e+00> : vector<8xf32>
    %80 = vector.multi_reduction <add>, %79, %cst_67 [1] : vector<8x8xf32> to vector<8xf32>
    %81 = vector.shape_cast %80 : vector<8xf32> to vector<8x1xf32>
    %cst_68 = arith.constant 1.000000e-30 : f32
    %82 = vector.broadcast %cst_68 : f32 to vector<8x1xf32>
    %83 = arith.maximumf %81, %82 : vector<8x1xf32>
    %84 = tpu.reciprocal %83 {approx = true} : vector<8x1xf32> -> vector<8x1xf32>
    %85 = vector.broadcast %84 : vector<8x1xf32> to vector<8x8xf32>
    %86 = arith.mulf %79, %85 : vector<8x8xf32>
    %87 = arith.truncf %86 : vector<8x8xf32> to vector<8x8xbf16>
    %cst_69 = arith.constant dense<0.000000e+00> : vector<8x8xf32>
    %88 = tpu.matmul %87, %69, %cst_69 {dimension_numbers = #tpu.dot_dimension_numbers<[1], [0], [0], [1], [0, 0, 1, 1], [], []>} : vector<8x8xbf16>, vector<8x8xbf16>, vector<8x8xf32> -> vector<8x8xf32>
    %c0_70 = arith.constant 0 : index
    %c0_71 = arith.constant 0 : index
    %89 = vector.load %arg10[%c0_70, %c0_71] : memref<8x32xf32, #tpu.memory_space<vmem>>, vector<8x32xf32>
    %90 = arith.truncf %88 : vector<8x8xf32> to vector<8x8xbf16>
    %c16_72 = arith.constant 16 : index
    %c0_73 = arith.constant 0 : index
    %91 = vector.load %arg4[%c16_72, %c0_73] : memref<32x32xbf16, #tpu.memory_space<vmem>>, vector<8x32xbf16>
    %cst_74 = arith.constant dense<0.000000e+00> : vector<8x32xf32>
    %92 = tpu.matmul %90, %91, %cst_74 {dimension_numbers = #tpu.dot_dimension_numbers<[1], [0], [0], [1], [0, 0, 1, 1], [], []>} : vector<8x8xbf16>, vector<8x32xbf16>, vector<8x32xf32> -> vector<8x32xf32>
    %93 = arith.addf %89, %92 : vector<8x32xf32>
    %c0_75 = arith.constant 0 : index
    %c0_76 = arith.constant 0 : index
    %94 = vector.load %arg10[%c0_75, %c0_76] : memref<8x32xf32, #tpu.memory_space<vmem>>, vector<8x32xf32>
    tpu.vector_store %arg10[%c0_75, %c0_76], %93 {strides = array<i32>} : memref<8x32xf32, #tpu.memory_space<vmem>>, vector<8x32xf32>,
    %c0_77 = arith.constant 0 : index
    %c0_78 = arith.constant 0 : index
    %c0_79 = arith.constant 0 : index
    %c24 = arith.constant 24 : index
    %95 = vector.load %arg1[%c0_77, %c0_78, %c0_79, %c24] : memref<1x1x8x32xbf16, #tpu.memory_space<vmem>>, vector<1x1x8x8xbf16>
    %96 = vector.shape_cast %95 : vector<1x1x8x8xbf16> to vector<8x8xbf16>
    %c0_80 = arith.constant 0 : index
    %c0_81 = arith.constant 0 : index
    %c0_82 = arith.constant 0 : index
    %c24_83 = arith.constant 24 : index
    %97 = vector.load %arg2[%c0_80, %c0_81, %c0_82, %c24_83] : memref<1x1x8x32xbf16, #tpu.memory_space<vmem>>, vector<1x1x8x8xbf16>
    %98 = vector.shape_cast %97 : vector<1x1x8x8xbf16> to vector<8x8xbf16>
    %c0_84 = arith.constant 0 : index
    %c0_85 = arith.constant 0 : index
    %c0_86 = arith.constant 0 : index
    %c24_87 = arith.constant 24 : index
    %99 = vector.load %arg3[%c0_84, %c0_85, %c0_86, %c24_87] : memref<1x1x8x32xbf16, #tpu.memory_space<vmem>>, vector<1x1x8x8xbf16>
    %100 = vector.shape_cast %99 : vector<1x1x8x8xbf16> to vector<8x8xbf16>
    %cst_88 = arith.constant dense<0.000000e+00> : vector<8x8xf32>
    %101 = tpu.matmul %96, %98, %cst_88 {dimension_numbers = #tpu.dot_dimension_numbers<[1], [1], [0], [0], [0, 0, 1, 0], [], []>} : vector<8x8xbf16>, vector<8x8xbf16>, vector<8x8xf32> -> vector<8x8xf32>
    %cst_89 = arith.constant 0.353553385 : f32
    %102 = vector.broadcast %cst_89 : f32 to vector<8x8xf32>
    %103 = arith.mulf %101, %102 : vector<8x8xf32>
    %cst_90 = arith.constant dense<0xFF800000> : vector<8xf32>
    %104 = vector.multi_reduction <maximumf>, %103, %cst_90 [1] : vector<8x8xf32> to vector<8xf32>
    %105 = vector.shape_cast %104 : vector<8xf32> to vector<8x1xf32>
    %cst_91 = arith.constant -1.000000e+30 : f32
    %106 = vector.broadcast %cst_91 : f32 to vector<8x1xf32>
    %107 = arith.maximumf %105, %106 : vector<8x1xf32>
    %108 = vector.broadcast %107 : vector<8x1xf32> to vector<8x8xf32>
    %109 = arith.subf %103, %108 : vector<8x8xf32>
    %110 = math.exp %109 : vector<8x8xf32>
    %cst_92 = arith.constant dense<0.000000e+00> : vector<8xf32>
    %111 = vector.multi_reduction <add>, %110, %cst_92 [1] : vector<8x8xf32> to vector<8xf32>
    %112 = vector.shape_cast %111 : vector<8xf32> to vector<8x1xf32>
    %cst_93 = arith.constant 1.000000e-30 : f32
    %113 = vector.broadcast %cst_93 : f32 to vector<8x1xf32>
    %114 = arith.maximumf %112, %113 : vector<8x1xf32>
    %115 = tpu.reciprocal %114 {approx = true} : vector<8x1xf32> -> vector<8x1xf32>
    %116 = vector.broadcast %115 : vector<8x1xf32> to vector<8x8xf32>
    %117 = arith.mulf %110, %116 : vector<8x8xf32>
    %118 = arith.truncf %117 : vector<8x8xf32> to vector<8x8xbf16>
    %cst_94 = arith.constant dense<0.000000e+00> : vector<8x8xf32>
    %119 = tpu.matmul %118, %100, %cst_94 {dimension_numbers = #tpu.dot_dimension_numbers<[1], [0], [0], [1], [0, 0, 1, 1], [], []>} : vector<8x8xbf16>, vector<8x8xbf16>, vector<8x8xf32> -> vector<8x8xf32>
    %c0_95 = arith.constant 0 : index
    %c0_96 = arith.constant 0 : index
    %120 = vector.load %arg10[%c0_95, %c0_96] : memref<8x32xf32, #tpu.memory_space<vmem>>, vector<8x32xf32>
    %121 = arith.truncf %119 : vector<8x8xf32> to vector<8x8xbf16>
    %c24_97 = arith.constant 24 : index
    %c0_98 = arith.constant 0 : index
    %122 = vector.load %arg4[%c24_97, %c0_98] : memref<32x32xbf16, #tpu.memory_space<vmem>>, vector<8x32xbf16>
    %cst_99 = arith.constant dense<0.000000e+00> : vector<8x32xf32>
    %123 = tpu.matmul %121, %122, %cst_99 {dimension_numbers = #tpu.dot_dimension_numbers<[1], [0], [0], [1], [0, 0, 1, 1], [], []>} : vector<8x8xbf16>, vector<8x32xbf16>, vector<8x32xf32> -> vector<8x32xf32>
    %124 = arith.addf %120, %123 : vector<8x32xf32>
    %c0_100 = arith.constant 0 : index
    %c0_101 = arith.constant 0 : index
    %125 = vector.load %arg10[%c0_100, %c0_101] : memref<8x32xf32, #tpu.memory_space<vmem>>, vector<8x32xf32>
    tpu.vector_store %arg10[%c0_100, %c0_101], %124 {strides = array<i32>} : memref<8x32xf32, #tpu.memory_space<vmem>>, vector<8x32xf32>,
    %c0_102 = arith.constant 0 : index
    %c0_103 = arith.constant 0 : index
    %126 = vector.load %arg10[%c0_102, %c0_103] : memref<8x32xf32, #tpu.memory_space<vmem>>, vector<8x32xf32>
    %c0_104 = arith.constant 0 : index
    %c0_105 = arith.constant 0 : index
    %127 = vector.load %arg5[%c0_104, %c0_105] : memref<1x32xf32, #tpu.memory_space<vmem>>, vector<1x32xf32>
    %128 = vector.broadcast %127 : vector<1x32xf32> to vector<8x32xf32>
    %129 = arith.addf %126, %128 : vector<8x32xf32>
    %c0_106 = arith.constant 0 : index
    %c0_107 = arith.constant 0 : index
    %c0_108 = arith.constant 0 : index
    %130 = vector.load %arg6[%c0_106, %c0_107, %c0_108] : memref<1x8x32xf32, #tpu.memory_space<vmem>>, vector<1x8x32xf32>
    %131 = vector.shape_cast %130 : vector<1x8x32xf32> to vector<8x32xf32>
    %132 = arith.addf %129, %131 : vector<8x32xf32>
    %cst_109 = arith.constant dense<0.000000e+00> : vector<8xf32>
    %133 = vector.multi_reduction <add>, %132, %cst_109 [1] : vector<8x32xf32> to vector<8xf32>
    %134 = vector.shape_cast %133 : vector<8xf32> to vector<8x1xf32>
    %cst_110 = arith.constant 3.200000e+01 : f32
    %135 = vector.broadcast %cst_110 : f32 to vector<8x1xf32>
    %136 = arith.divf %134, %135 : vector<8x1xf32>
    %137 = vector.broadcast %136 : vector<8x1xf32> to vector<8x32xf32>
    %138 = arith.subf %132, %137 : vector<8x32xf32>
    %139 = vector.broadcast %136 : vector<8x1xf32> to vector<8x32xf32>
    %140 = arith.subf %132, %139 : vector<8x32xf32>
    %141 = arith.mulf %138, %140 : vector<8x32xf32>
    %cst_111 = arith.constant dense<0.000000e+00> : vector<8xf32>
    %142 = vector.multi_reduction <add>, %141, %cst_111 [1] : vector<8x32xf32> to vector<8xf32>
    %143 = vector.shape_cast %142 : vector<8xf32> to vector<8x1xf32>
    %cst_112 = arith.constant 3.200000e+01 : f32
    %144 = vector.broadcast %cst_112 : f32 to vector<8x1xf32>
    %145 = arith.divf %143, %144 : vector<8x1xf32>
    %146 = vector.broadcast %136 : vector<8x1xf32> to vector<8x32xf32>
    %147 = arith.subf %132, %146 : vector<8x32xf32>
    %cst_113 = arith.constant 9.99999974E-6 : f32
    %148 = vector.broadcast %cst_113 : f32 to vector<8x1xf32>
    %149 = arith.addf %145, %148 : vector<8x1xf32>
    %150 = math.rsqrt %149 : vector<8x1xf32>
    %151 = vector.broadcast %150 : vector<8x1xf32> to vector<8x32xf32>
    %152 = arith.mulf %147, %151 : vector<8x32xf32>
    %c0_114 = arith.constant 0 : index
    %c0_115 = arith.constant 0 : index
    %153 = vector.load %arg7[%c0_114, %c0_115] : memref<1x32xf32, #tpu.memory_space<vmem>>, vector<1x32xf32>
    %154 = vector.broadcast %153 : vector<1x32xf32> to vector<8x32xf32>
    %155 = arith.mulf %152, %154 : vector<8x32xf32>
    %c0_116 = arith.constant 0 : index
    %c0_117 = arith.constant 0 : index
    %156 = vector.load %arg8[%c0_116, %c0_117] : memref<1x32xf32, #tpu.memory_space<vmem>>, vector<1x32xf32>
    %157 = vector.broadcast %156 : vector<1x32xf32> to vector<8x32xf32>
    %158 = arith.addf %155, %157 : vector<8x32xf32>
    %c0_118 = arith.constant 0 : index
    %c0_119 = arith.constant 0 : index
    %c0_120 = arith.constant 0 : index
    %159 = vector.load %arg9[%c0_118, %c0_119, %c0_120] : memref<1x8x32xf32, #tpu.memory_space<vmem>>, vector<1x8x32xf32>
    %160 = vector.shape_cast %159 : vector<1x8x32xf32> to vector<8x32xf32>
    %161 = vector.shape_cast %158 : vector<8x32xf32> to vector<1x8x32xf32>
    tpu.vector_store %arg9[%c0_118, %c0_119, %c0_120], %161 {strides = array<i32>} : memref<1x8x32xf32, #tpu.memory_space<vmem>>, vector<1x8x32xf32>,
    return
  }
  func.func @transform_0(%arg0: i32) -> (i32, i32, i32, i32) {
    %c0_i32 = arith.constant 0 : i32
    %c0_i32_0 = arith.constant 0 : i32
    %c0_i32_1 = arith.constant 0 : i32
    %c0_i32_2 = arith.constant 0 : i32
    return %c0_i32, %arg0, %c0_i32_0, %c0_i32_1 : i32, i32, i32, i32
  }
  func.func @transform_1(%arg0: i32) -> (i32, i32, i32, i32) {
    %c1_i32 = arith.constant 1 : i32
    %c0_i32 = arith.constant 0 : i32
    %c0_i32_0 = arith.constant 0 : i32
    %c0_i32_1 = arith.constant 0 : i32
    return %c1_i32, %arg0, %c0_i32, %c0_i32_0 : i32, i32, i32, i32
  }
  func.func @transform_2(%arg0: i32) -> (i32, i32, i32, i32) {
    %c2_i32 = arith.constant 2 : i32
    %c0_i32 = arith.constant 0 : i32
    %c0_i32_0 = arith.constant 0 : i32
    %c0_i32_1 = arith.constant 0 : i32
    return %c2_i32, %arg0, %c0_i32, %c0_i32_0 : i32, i32, i32, i32
  }
  func.func @transform_3(%arg0: i32) -> (i32, i32) {
    %c0_i32 = arith.constant 0 : i32
    %c0_i32_0 = arith.constant 0 : i32
    %c0_i32_1 = arith.constant 0 : i32
    return %c0_i32, %c0_i32_0 : i32, i32
  }
  func.func @transform_4(%arg0: i32) -> (i32, i32) {
    %c0_i32 = arith.constant 0 : i32
    %c0_i32_0 = arith.constant 0 : i32
    %c0_i32_1 = arith.constant 0 : i32
    return %c0_i32, %c0_i32_0 : i32, i32
  }
  func.func @transform_5(%arg0: i32) -> (i32, i32, i32) {
    %c0_i32 = arith.constant 0 : i32
    %c0_i32_0 = arith.constant 0 : i32
    %c0_i32_1 = arith.constant 0 : i32
    return %arg0, %c0_i32, %c0_i32_0 : i32, i32, i32
  }
  func.func @transform_6(%arg0: i32) -> (i32, i32) {
    %c0_i32 = arith.constant 0 : i32
    %c0_i32_0 = arith.constant 0 : i32
    %c0_i32_1 = arith.constant 0 : i32
    return %c0_i32, %c0_i32_0 : i32, i32
  }
  func.func @transform_7(%arg0: i32) -> (i32, i32) {
    %c0_i32 = arith.constant 0 : i32
    %c0_i32_0 = arith.constant 0 : i32
    %c0_i32_1 = arith.constant 0 : i32
    return %c0_i32, %c0_i32_0 : i32, i32
  }
  func.func @transform_8(%arg0: i32) -> (i32, i32, i32) {
    %c0_i32 = arith.constant 0 : i32
    %c0_i32_0 = arith.constant 0 : i32
    %c0_i32_1 = arith.constant 0 : i32
    return %arg0, %c0_i32, %c0_i32_0 : i32, i32, i32
  }
}

module attributes {stable_mosaic.version = 11 : i64} {
  func.func @_fused_proj_kernel(%arg0: i32, %arg1: i32, %arg2: memref<16x32xf32, #tpu.memory_space<vmem>>, %arg3: memref<3x32x32xbf16, #tpu.memory_space<vmem>>, %arg4: memref<3x1x32xf32, #tpu.memory_space<vmem>>, %arg5: memref<3x16x32xbf16, #tpu.memory_space<vmem>>, %arg6: memref<3x16x32xf32, #tpu.memory_space<vmem>>) attributes {dimension_semantics = [#tpu.dimension_semantics<parallel>, #tpu.dimension_semantics<arbitrary>], iteration_bounds = array<i64: 1, 1>, scalar_prefetch = 0 : i64, scratch_operands = 1 : i64, tpu.core_type = #tpu.core_type<tc>, window_params = [{transform_indices = @transform_0, window_bounds = array<i64: 16, 32>}, {transform_indices = @transform_1, window_bounds = array<i64: 3, 32, 32>}, {pipeline_mode = #tpu.pipeline_mode<synchronous>, transform_indices = @transform_2, window_bounds = array<i64: 3, 1, 32>}, {transform_indices = @transform_3, window_bounds = array<i64: 3, 16, 32>}]} {
    %c0_i32 = arith.constant 0 : i32
    %0 = arith.cmpi eq, %arg1, %c0_i32 : i32
    %1 = arith.extui %0 : i1 to i32
    %c0_i32_0 = arith.constant 0 : i32
    %2 = arith.cmpi ne, %1, %c0_i32_0 : i32
    scf.if %2 {
      %cst_31 = arith.constant 0.000000e+00 : f32
      %35 = vector.broadcast %cst_31 : f32 to vector<3x16x32xf32>
      %c0_32 = arith.constant 0 : index
      %c0_33 = arith.constant 0 : index
      %c0_34 = arith.constant 0 : index
      %36 = vector.load %arg6[%c0_32, %c0_33, %c0_34] : memref<3x16x32xf32, #tpu.memory_space<vmem>>, vector<3x16x32xf32>
      tpu.vector_store %arg6[%c0_32, %c0_33, %c0_34], %35 {strides = array<i32>} : memref<3x16x32xf32, #tpu.memory_space<vmem>>, vector<3x16x32xf32>,
    } else {
    }
    %c0 = arith.constant 0 : index
    %c0_1 = arith.constant 0 : index
    %3 = vector.load %arg2[%c0, %c0_1] : memref<16x32xf32, #tpu.memory_space<vmem>>, vector<16x32xf32>
    %4 = arith.truncf %3 : vector<16x32xf32> to vector<16x32xbf16>
    %c0_2 = arith.constant 0 : index
    %c0_3 = arith.constant 0 : index
    %c0_4 = arith.constant 0 : index
    %5 = vector.load %arg6[%c0_2, %c0_3, %c0_4] : memref<3x16x32xf32, #tpu.memory_space<vmem>>, vector<1x16x32xf32>
    %6 = vector.shape_cast %5 : vector<1x16x32xf32> to vector<16x32xf32>
    %c0_5 = arith.constant 0 : index
    %c0_6 = arith.constant 0 : index
    %c0_7 = arith.constant 0 : index
    %7 = vector.load %arg3[%c0_5, %c0_6, %c0_7] : memref<3x32x32xbf16, #tpu.memory_space<vmem>>, vector<1x32x32xbf16>
    %8 = vector.shape_cast %7 : vector<1x32x32xbf16> to vector<32x32xbf16>
    %cst = arith.constant dense<0.000000e+00> : vector<16x32xf32>
    %9 = tpu.matmul %4, %8, %cst {dimension_numbers = #tpu.dot_dimension_numbers<[1], [0], [0], [1], [0, 0, 1, 1], [], []>} : vector<16x32xbf16>, vector<32x32xbf16>, vector<16x32xf32> -> vector<16x32xf32>
    %10 = arith.addf %6, %9 : vector<16x32xf32>
    %c0_8 = arith.constant 0 : index
    %c0_9 = arith.constant 0 : index
    %c0_10 = arith.constant 0 : index
    %11 = vector.load %arg6[%c0_8, %c0_9, %c0_10] : memref<3x16x32xf32, #tpu.memory_space<vmem>>, vector<1x16x32xf32>
    %12 = vector.shape_cast %11 : vector<1x16x32xf32> to vector<16x32xf32>
    %13 = vector.shape_cast %10 : vector<16x32xf32> to vector<1x16x32xf32>
    tpu.vector_store %arg6[%c0_8, %c0_9, %c0_10], %13 {strides = array<i32>} : memref<3x16x32xf32, #tpu.memory_space<vmem>>, vector<1x16x32xf32>,
    %c1 = arith.constant 1 : index
    %c0_11 = arith.constant 0 : index
    %c0_12 = arith.constant 0 : index
    %14 = vector.load %arg6[%c1, %c0_11, %c0_12] : memref<3x16x32xf32, #tpu.memory_space<vmem>>, vector<1x16x32xf32>
    %15 = vector.shape_cast %14 : vector<1x16x32xf32> to vector<16x32xf32>
    %c1_13 = arith.constant 1 : index
    %c0_14 = arith.constant 0 : index
    %c0_15 = arith.constant 0 : index
    %16 = vector.load %arg3[%c1_13, %c0_14, %c0_15] : memref<3x32x32xbf16, #tpu.memory_space<vmem>>, vector<1x32x32xbf16>
    %17 = vector.shape_cast %16 : vector<1x32x32xbf16> to vector<32x32xbf16>
    %cst_16 = arith.constant dense<0.000000e+00> : vector<16x32xf32>
    %18 = tpu.matmul %4, %17, %cst_16 {dimension_numbers = #tpu.dot_dimension_numbers<[1], [0], [0], [1], [0, 0, 1, 1], [], []>} : vector<16x32xbf16>, vector<32x32xbf16>, vector<16x32xf32> -> vector<16x32xf32>
    %19 = arith.addf %15, %18 : vector<16x32xf32>
    %c1_17 = arith.constant 1 : index
    %c0_18 = arith.constant 0 : index
    %c0_19 = arith.constant 0 : index
    %20 = vector.load %arg6[%c1_17, %c0_18, %c0_19] : memref<3x16x32xf32, #tpu.memory_space<vmem>>, vector<1x16x32xf32>
    %21 = vector.shape_cast %20 : vector<1x16x32xf32> to vector<16x32xf32>
    %22 = vector.shape_cast %19 : vector<16x32xf32> to vector<1x16x32xf32>
    tpu.vector_store %arg6[%c1_17, %c0_18, %c0_19], %22 {strides = array<i32>} : memref<3x16x32xf32, #tpu.memory_space<vmem>>, vector<1x16x32xf32>,
    %c2 = arith.constant 2 : index
    %c0_20 = arith.constant 0 : index
    %c0_21 = arith.constant 0 : index
    %23 = vector.load %arg6[%c2, %c0_20, %c0_21] : memref<3x16x32xf32, #tpu.memory_space<vmem>>, vector<1x16x32xf32>
    %24 = vector.shape_cast %23 : vector<1x16x32xf32> to vector<16x32xf32>
    %c2_22 = arith.constant 2 : index
    %c0_23 = arith.constant 0 : index
    %c0_24 = arith.constant 0 : index
    %25 = vector.load %arg3[%c2_22, %c0_23, %c0_24] : memref<3x32x32xbf16, #tpu.memory_space<vmem>>, vector<1x32x32xbf16>
    %26 = vector.shape_cast %25 : vector<1x32x32xbf16> to vector<32x32xbf16>
    %cst_25 = arith.constant dense<0.000000e+00> : vector<16x32xf32>
    %27 = tpu.matmul %4, %26, %cst_25 {dimension_numbers = #tpu.dot_dimension_numbers<[1], [0], [0], [1], [0, 0, 1, 1], [], []>} : vector<16x32xbf16>, vector<32x32xbf16>, vector<16x32xf32> -> vector<16x32xf32>
    %28 = arith.addf %24, %27 : vector<16x32xf32>
    %c2_26 = arith.constant 2 : index
    %c0_27 = arith.constant 0 : index
    %c0_28 = arith.constant 0 : index
    %29 = vector.load %arg6[%c2_26, %c0_27, %c0_28] : memref<3x16x32xf32, #tpu.memory_space<vmem>>, vector<1x16x32xf32>
    %30 = vector.shape_cast %29 : vector<1x16x32xf32> to vector<16x32xf32>
    %31 = vector.shape_cast %28 : vector<16x32xf32> to vector<1x16x32xf32>
    tpu.vector_store %arg6[%c2_26, %c0_27, %c0_28], %31 {strides = array<i32>} : memref<3x16x32xf32, #tpu.memory_space<vmem>>, vector<1x16x32xf32>,
    %c0_i32_29 = arith.constant 0 : i32
    %32 = arith.cmpi eq, %arg1, %c0_i32_29 : i32
    %33 = arith.extui %32 : i1 to i32
    %c0_i32_30 = arith.constant 0 : i32
    %34 = arith.cmpi ne, %33, %c0_i32_30 : i32
    scf.if %34 {
      %c0_31 = arith.constant 0 : index
      %c0_32 = arith.constant 0 : index
      %c0_33 = arith.constant 0 : index
      %35 = vector.load %arg6[%c0_31, %c0_32, %c0_33] : memref<3x16x32xf32, #tpu.memory_space<vmem>>, vector<3x16x32xf32>
      %c0_34 = arith.constant 0 : index
      %c0_35 = arith.constant 0 : index
      %c0_36 = arith.constant 0 : index
      %36 = vector.load %arg4[%c0_34, %c0_35, %c0_36] : memref<3x1x32xf32, #tpu.memory_space<vmem>>, vector<3x1x32xf32>
      %37 = vector.broadcast %36 : vector<3x1x32xf32> to vector<3x16x32xf32>
      %38 = arith.addf %35, %37 : vector<3x16x32xf32>
      %39 = arith.truncf %38 : vector<3x16x32xf32> to vector<3x16x32xbf16>
      %c0_37 = arith.constant 0 : index
      %c0_38 = arith.constant 0 : index
      %c0_39 = arith.constant 0 : index
      %40 = vector.load %arg5[%c0_37, %c0_38, %c0_39] : memref<3x16x32xbf16, #tpu.memory_space<vmem>>, vector<3x16x32xbf16>
      tpu.vector_store %arg5[%c0_37, %c0_38, %c0_39], %39 {strides = array<i32>} : memref<3x16x32xbf16, #tpu.memory_space<vmem>>, vector<3x16x32xbf16>,
    } else {
    }
    return
  }
  func.func @transform_0(%arg0: i32, %arg1: i32) -> (i32, i32) {
    %c0_i32 = arith.constant 0 : i32
    return %arg0, %arg1 : i32, i32
  }
  func.func @transform_1(%arg0: i32, %arg1: i32) -> (i32, i32, i32) {
    %c0_i32 = arith.constant 0 : i32
    %c0_i32_0 = arith.constant 0 : i32
    %c0_i32_1 = arith.constant 0 : i32
    return %c0_i32, %arg1, %c0_i32_0 : i32, i32, i32
  }
  func.func @transform_2(%arg0: i32, %arg1: i32) -> (i32, i32, i32) {
    %c0_i32 = arith.constant 0 : i32
    %c0_i32_0 = arith.constant 0 : i32
    %c0_i32_1 = arith.constant 0 : i32
    %c0_i32_2 = arith.constant 0 : i32
    return %c0_i32, %c0_i32_0, %c0_i32_1 : i32, i32, i32
  }
  func.func @transform_3(%arg0: i32, %arg1: i32) -> (i32, i32, i32) {
    %c0_i32 = arith.constant 0 : i32
    %c0_i32_0 = arith.constant 0 : i32
    %c0_i32_1 = arith.constant 0 : i32
    return %c0_i32, %arg0, %c0_i32_0 : i32, i32, i32
  }
}

module attributes {stable_mosaic.version = 11 : i64} {
  func.func @_fused_proj_kernel(%arg0: i32, %arg1: i32, %arg2: memref<16x32xf32, #tpu.memory_space<vmem>>, %arg3: memref<1x32x32xbf16, #tpu.memory_space<vmem>>, %arg4: memref<1x1x32xf32, #tpu.memory_space<vmem>>, %arg5: memref<1x16x32xbf16, #tpu.memory_space<vmem>>, %arg6: memref<1x16x32xf32, #tpu.memory_space<vmem>>) attributes {dimension_semantics = [#tpu.dimension_semantics<parallel>, #tpu.dimension_semantics<arbitrary>], iteration_bounds = array<i64: 1, 1>, scalar_prefetch = 0 : i64, scratch_operands = 1 : i64, tpu.core_type = #tpu.core_type<tc>, window_params = [{transform_indices = @transform_0, window_bounds = array<i64: 16, 32>}, {transform_indices = @transform_1, window_bounds = array<i64: 1, 32, 32>}, {pipeline_mode = #tpu.pipeline_mode<synchronous>, transform_indices = @transform_2, window_bounds = array<i64: 1, 1, 32>}, {transform_indices = @transform_3, window_bounds = array<i64: 1, 16, 32>}]} {
    %c0_i32 = arith.constant 0 : i32
    %0 = arith.cmpi eq, %arg1, %c0_i32 : i32
    %1 = arith.extui %0 : i1 to i32
    %c0_i32_0 = arith.constant 0 : i32
    %2 = arith.cmpi ne, %1, %c0_i32_0 : i32
    scf.if %2 {
      %cst_13 = arith.constant 0.000000e+00 : f32
      %17 = vector.broadcast %cst_13 : f32 to vector<1x16x32xf32>
      %c0_14 = arith.constant 0 : index
      %c0_15 = arith.constant 0 : index
      %c0_16 = arith.constant 0 : index
      %18 = vector.load %arg6[%c0_14, %c0_15, %c0_16] : memref<1x16x32xf32, #tpu.memory_space<vmem>>, vector<1x16x32xf32>
      tpu.vector_store %arg6[%c0_14, %c0_15, %c0_16], %17 {strides = array<i32>} : memref<1x16x32xf32, #tpu.memory_space<vmem>>, vector<1x16x32xf32>,
    } else {
    }
    %c0 = arith.constant 0 : index
    %c0_1 = arith.constant 0 : index
    %3 = vector.load %arg2[%c0, %c0_1] : memref<16x32xf32, #tpu.memory_space<vmem>>, vector<16x32xf32>
    %4 = arith.truncf %3 : vector<16x32xf32> to vector<16x32xbf16>
    %c0_2 = arith.constant 0 : index
    %c0_3 = arith.constant 0 : index
    %c0_4 = arith.constant 0 : index
    %5 = vector.load %arg6[%c0_2, %c0_3, %c0_4] : memref<1x16x32xf32, #tpu.memory_space<vmem>>, vector<1x16x32xf32>
    %6 = vector.shape_cast %5 : vector<1x16x32xf32> to vector<16x32xf32>
    %c0_5 = arith.constant 0 : index
    %c0_6 = arith.constant 0 : index
    %c0_7 = arith.constant 0 : index
    %7 = vector.load %arg3[%c0_5, %c0_6, %c0_7] : memref<1x32x32xbf16, #tpu.memory_space<vmem>>, vector<1x32x32xbf16>
    %8 = vector.shape_cast %7 : vector<1x32x32xbf16> to vector<32x32xbf16>
    %cst = arith.constant dense<0.000000e+00> : vector<16x32xf32>
    %9 = tpu.matmul %4, %8, %cst {dimension_numbers = #tpu.dot_dimension_numbers<[1], [0], [0], [1], [0, 0, 1, 1], [], []>} : vector<16x32xbf16>, vector<32x32xbf16>, vector<16x32xf32> -> vector<16x32xf32>
    %10 = arith.addf %6, %9 : vector<16x32xf32>
    %c0_8 = arith.constant 0 : index
    %c0_9 = arith.constant 0 : index
    %c0_10 = arith.constant 0 : index
    %11 = vector.load %arg6[%c0_8, %c0_9, %c0_10] : memref<1x16x32xf32, #tpu.memory_space<vmem>>, vector<1x16x32xf32>
    %12 = vector.shape_cast %11 : vector<1x16x32xf32> to vector<16x32xf32>
    %13 = vector.shape_cast %10 : vector<16x32xf32> to vector<1x16x32xf32>
    tpu.vector_store %arg6[%c0_8, %c0_9, %c0_10], %13 {strides = array<i32>} : memref<1x16x32xf32, #tpu.memory_space<vmem>>, vector<1x16x32xf32>,
    %c0_i32_11 = arith.constant 0 : i32
    %14 = arith.cmpi eq, %arg1, %c0_i32_11 : i32
    %15 = arith.extui %14 : i1 to i32
    %c0_i32_12 = arith.constant 0 : i32
    %16 = arith.cmpi ne, %15, %c0_i32_12 : i32
    scf.if %16 {
      %c0_13 = arith.constant 0 : index
      %c0_14 = arith.constant 0 : index
      %c0_15 = arith.constant 0 : index
      %17 = vector.load %arg6[%c0_13, %c0_14, %c0_15] : memref<1x16x32xf32, #tpu.memory_space<vmem>>, vector<1x16x32xf32>
      %c0_16 = arith.constant 0 : index
      %c0_17 = arith.constant 0 : index
      %c0_18 = arith.constant 0 : index
      %18 = vector.load %arg4[%c0_16, %c0_17, %c0_18] : memref<1x1x32xf32, #tpu.memory_space<vmem>>, vector<1x1x32xf32>
      %19 = vector.broadcast %18 : vector<1x1x32xf32> to vector<1x16x32xf32>
      %20 = arith.addf %17, %19 : vector<1x16x32xf32>
      %21 = arith.truncf %20 : vector<1x16x32xf32> to vector<1x16x32xbf16>
      %c0_19 = arith.constant 0 : index
      %c0_20 = arith.constant 0 : index
      %c0_21 = arith.constant 0 : index
      %22 = vector.load %arg5[%c0_19, %c0_20, %c0_21] : memref<1x16x32xbf16, #tpu.memory_space<vmem>>, vector<1x16x32xbf16>
      tpu.vector_store %arg5[%c0_19, %c0_20, %c0_21], %21 {strides = array<i32>} : memref<1x16x32xbf16, #tpu.memory_space<vmem>>, vector<1x16x32xbf16>,
    } else {
    }
    return
  }
  func.func @transform_0(%arg0: i32, %arg1: i32) -> (i32, i32) {
    %c0_i32 = arith.constant 0 : i32
    return %arg0, %arg1 : i32, i32
  }
  func.func @transform_1(%arg0: i32, %arg1: i32) -> (i32, i32, i32) {
    %c0_i32 = arith.constant 0 : i32
    %c0_i32_0 = arith.constant 0 : i32
    %c0_i32_1 = arith.constant 0 : i32
    return %c0_i32, %arg1, %c0_i32_0 : i32, i32, i32
  }
  func.func @transform_2(%arg0: i32, %arg1: i32) -> (i32, i32, i32) {
    %c0_i32 = arith.constant 0 : i32
    %c0_i32_0 = arith.constant 0 : i32
    %c0_i32_1 = arith.constant 0 : i32
    %c0_i32_2 = arith.constant 0 : i32
    return %c0_i32, %c0_i32_0, %c0_i32_1 : i32, i32, i32
  }
  func.func @transform_3(%arg0: i32, %arg1: i32) -> (i32, i32, i32) {
    %c0_i32 = arith.constant 0 : i32
    %c0_i32_0 = arith.constant 0 : i32
    %c0_i32_1 = arith.constant 0 : i32
    return %c0_i32, %arg0, %c0_i32_0 : i32, i32, i32
  }
}

module attributes {stable_mosaic.version = 11 : i64} {
  func.func @_fused_proj_kernel(%arg0: i32, %arg1: i32, %arg2: memref<16x32xf32, #tpu.memory_space<vmem>>, %arg3: memref<2x32x32xbf16, #tpu.memory_space<vmem>>, %arg4: memref<2x1x32xf32, #tpu.memory_space<vmem>>, %arg5: memref<2x16x32xbf16, #tpu.memory_space<vmem>>, %arg6: memref<2x16x32xf32, #tpu.memory_space<vmem>>) attributes {dimension_semantics = [#tpu.dimension_semantics<parallel>, #tpu.dimension_semantics<arbitrary>], iteration_bounds = array<i64: 1, 1>, scalar_prefetch = 0 : i64, scratch_operands = 1 : i64, tpu.core_type = #tpu.core_type<tc>, window_params = [{transform_indices = @transform_0, window_bounds = array<i64: 16, 32>}, {transform_indices = @transform_1, window_bounds = array<i64: 2, 32, 32>}, {pipeline_mode = #tpu.pipeline_mode<synchronous>, transform_indices = @transform_2, window_bounds = array<i64: 2, 1, 32>}, {transform_indices = @transform_3, window_bounds = array<i64: 2, 16, 32>}]} {
    %c0_i32 = arith.constant 0 : i32
    %0 = arith.cmpi eq, %arg1, %c0_i32 : i32
    %1 = arith.extui %0 : i1 to i32
    %c0_i32_0 = arith.constant 0 : i32
    %2 = arith.cmpi ne, %1, %c0_i32_0 : i32
    scf.if %2 {
      %cst_22 = arith.constant 0.000000e+00 : f32
      %26 = vector.broadcast %cst_22 : f32 to vector<2x16x32xf32>
      %c0_23 = arith.constant 0 : index
      %c0_24 = arith.constant 0 : index
      %c0_25 = arith.constant 0 : index
      %27 = vector.load %arg6[%c0_23, %c0_24, %c0_25] : memref<2x16x32xf32, #tpu.memory_space<vmem>>, vector<2x16x32xf32>
      tpu.vector_store %arg6[%c0_23, %c0_24, %c0_25], %26 {strides = array<i32>} : memref<2x16x32xf32, #tpu.memory_space<vmem>>, vector<2x16x32xf32>,
    } else {
    }
    %c0 = arith.constant 0 : index
    %c0_1 = arith.constant 0 : index
    %3 = vector.load %arg2[%c0, %c0_1] : memref<16x32xf32, #tpu.memory_space<vmem>>, vector<16x32xf32>
    %4 = arith.truncf %3 : vector<16x32xf32> to vector<16x32xbf16>
    %c0_2 = arith.constant 0 : index
    %c0_3 = arith.constant 0 : index
    %c0_4 = arith.constant 0 : index
    %5 = vector.load %arg6[%c0_2, %c0_3, %c0_4] : memref<2x16x32xf32, #tpu.memory_space<vmem>>, vector<1x16x32xf32>
    %6 = vector.shape_cast %5 : vector<1x16x32xf32> to vector<16x32xf32>
    %c0_5 = arith.constant 0 : index
    %c0_6 = arith.constant 0 : index
    %c0_7 = arith.constant 0 : index
    %7 = vector.load %arg3[%c0_5, %c0_6, %c0_7] : memref<2x32x32xbf16, #tpu.memory_space<vmem>>, vector<1x32x32xbf16>
    %8 = vector.shape_cast %7 : vector<1x32x32xbf16> to vector<32x32xbf16>
    %cst = arith.constant dense<0.000000e+00> : vector<16x32xf32>
    %9 = tpu.matmul %4, %8, %cst {dimension_numbers = #tpu.dot_dimension_numbers<[1], [0], [0], [1], [0, 0, 1, 1], [], []>} : vector<16x32xbf16>, vector<32x32xbf16>, vector<16x32xf32> -> vector<16x32xf32>
    %10 = arith.addf %6, %9 : vector<16x32xf32>
    %c0_8 = arith.constant 0 : index
    %c0_9 = arith.constant 0 : index
    %c0_10 = arith.constant 0 : index
    %11 = vector.load %arg6[%c0_8, %c0_9, %c0_10] : memref<2x16x32xf32, #tpu.memory_space<vmem>>, vector<1x16x32xf32>
    %12 = vector.shape_cast %11 : vector<1x16x32xf32> to vector<16x32xf32>
    %13 = vector.shape_cast %10 : vector<16x32xf32> to vector<1x16x32xf32>
    tpu.vector_store %arg6[%c0_8, %c0_9, %c0_10], %13 {strides = array<i32>} : memref<2x16x32xf32, #tpu.memory_space<vmem>>, vector<1x16x32xf32>,
    %c1 = arith.constant 1 : index
    %c0_11 = arith.constant 0 : index
    %c0_12 = arith.constant 0 : index
    %14 = vector.load %arg6[%c1, %c0_11, %c0_12] : memref<2x16x32xf32, #tpu.memory_space<vmem>>, vector<1x16x32xf32>
    %15 = vector.shape_cast %14 : vector<1x16x32xf32> to vector<16x32xf32>
    %c1_13 = arith.constant 1 : index
    %c0_14 = arith.constant 0 : index
    %c0_15 = arith.constant 0 : index
    %16 = vector.load %arg3[%c1_13, %c0_14, %c0_15] : memref<2x32x32xbf16, #tpu.memory_space<vmem>>, vector<1x32x32xbf16>
    %17 = vector.shape_cast %16 : vector<1x32x32xbf16> to vector<32x32xbf16>
    %cst_16 = arith.constant dense<0.000000e+00> : vector<16x32xf32>
    %18 = tpu.matmul %4, %17, %cst_16 {dimension_numbers = #tpu.dot_dimension_numbers<[1], [0], [0], [1], [0, 0, 1, 1], [], []>} : vector<16x32xbf16>, vector<32x32xbf16>, vector<16x32xf32> -> vector<16x32xf32>
    %19 = arith.addf %15, %18 : vector<16x32xf32>
    %c1_17 = arith.constant 1 : index
    %c0_18 = arith.constant 0 : index
    %c0_19 = arith.constant 0 : index
    %20 = vector.load %arg6[%c1_17, %c0_18, %c0_19] : memref<2x16x32xf32, #tpu.memory_space<vmem>>, vector<1x16x32xf32>
    %21 = vector.shape_cast %20 : vector<1x16x32xf32> to vector<16x32xf32>
    %22 = vector.shape_cast %19 : vector<16x32xf32> to vector<1x16x32xf32>
    tpu.vector_store %arg6[%c1_17, %c0_18, %c0_19], %22 {strides = array<i32>} : memref<2x16x32xf32, #tpu.memory_space<vmem>>, vector<1x16x32xf32>,
    %c0_i32_20 = arith.constant 0 : i32
    %23 = arith.cmpi eq, %arg1, %c0_i32_20 : i32
    %24 = arith.extui %23 : i1 to i32
    %c0_i32_21 = arith.constant 0 : i32
    %25 = arith.cmpi ne, %24, %c0_i32_21 : i32
    scf.if %25 {
      %c0_22 = arith.constant 0 : index
      %c0_23 = arith.constant 0 : index
      %c0_24 = arith.constant 0 : index
      %26 = vector.load %arg6[%c0_22, %c0_23, %c0_24] : memref<2x16x32xf32, #tpu.memory_space<vmem>>, vector<2x16x32xf32>
      %c0_25 = arith.constant 0 : index
      %c0_26 = arith.constant 0 : index
      %c0_27 = arith.constant 0 : index
      %27 = vector.load %arg4[%c0_25, %c0_26, %c0_27] : memref<2x1x32xf32, #tpu.memory_space<vmem>>, vector<2x1x32xf32>
      %28 = vector.broadcast %27 : vector<2x1x32xf32> to vector<2x16x32xf32>
      %29 = arith.addf %26, %28 : vector<2x16x32xf32>
      %30 = arith.truncf %29 : vector<2x16x32xf32> to vector<2x16x32xbf16>
      %c0_28 = arith.constant 0 : index
      %c0_29 = arith.constant 0 : index
      %c0_30 = arith.constant 0 : index
      %31 = vector.load %arg5[%c0_28, %c0_29, %c0_30] : memref<2x16x32xbf16, #tpu.memory_space<vmem>>, vector<2x16x32xbf16>
      tpu.vector_store %arg5[%c0_28, %c0_29, %c0_30], %30 {strides = array<i32>} : memref<2x16x32xbf16, #tpu.memory_space<vmem>>, vector<2x16x32xbf16>,
    } else {
    }
    return
  }
  func.func @transform_0(%arg0: i32, %arg1: i32) -> (i32, i32) {
    %c0_i32 = arith.constant 0 : i32
    return %arg0, %arg1 : i32, i32
  }
  func.func @transform_1(%arg0: i32, %arg1: i32) -> (i32, i32, i32) {
    %c0_i32 = arith.constant 0 : i32
    %c0_i32_0 = arith.constant 0 : i32
    %c0_i32_1 = arith.constant 0 : i32
    return %c0_i32, %arg1, %c0_i32_0 : i32, i32, i32
  }
  func.func @transform_2(%arg0: i32, %arg1: i32) -> (i32, i32, i32) {
    %c0_i32 = arith.constant 0 : i32
    %c0_i32_0 = arith.constant 0 : i32
    %c0_i32_1 = arith.constant 0 : i32
    %c0_i32_2 = arith.constant 0 : i32
    return %c0_i32, %c0_i32_0, %c0_i32_1 : i32, i32, i32
  }
  func.func @transform_3(%arg0: i32, %arg1: i32) -> (i32, i32, i32) {
    %c0_i32 = arith.constant 0 : i32
    %c0_i32_0 = arith.constant 0 : i32
    %c0_i32_1 = arith.constant 0 : i32
    return %c0_i32, %arg0, %c0_i32_0 : i32, i32, i32
  }
}

module attributes {stable_mosaic.version = 11 : i64} {
  func.func @_mha_block_kernel(%arg0: i32, %arg1: memref<1x1x8x32xbf16, #tpu.memory_space<vmem>>, %arg2: memref<1x1x8x32xbf16, #tpu.memory_space<vmem>>, %arg3: memref<1x1x8x32xbf16, #tpu.memory_space<vmem>>, %arg4: memref<32x32xbf16, #tpu.memory_space<vmem>>, %arg5: memref<1x32xf32, #tpu.memory_space<vmem>>, %arg6: memref<1x8x32xf32, #tpu.memory_space<vmem>>, %arg7: memref<1x32xf32, #tpu.memory_space<vmem>>, %arg8: memref<1x32xf32, #tpu.memory_space<vmem>>, %arg9: memref<1x8x32xf32, #tpu.memory_space<vmem>>, %arg10: memref<8x32xf32, #tpu.memory_space<vmem>>) attributes {dimension_semantics = [#tpu.dimension_semantics<parallel>], iteration_bounds = array<i64: 2>, scalar_prefetch = 0 : i64, scratch_operands = 1 : i64, tpu.core_type = #tpu.core_type<tc>, window_params = [{transform_indices = @transform_0, window_bounds = array<i64: 1, 1, 8, 32>}, {transform_indices = @transform_1, window_bounds = array<i64: 1, 1, 8, 32>}, {transform_indices = @transform_2, window_bounds = array<i64: 1, 1, 8, 32>}, {pipeline_mode = #tpu.pipeline_mode<synchronous>, transform_indices = @transform_3, window_bounds = array<i64: 32, 32>}, {pipeline_mode = #tpu.pipeline_mode<synchronous>, transform_indices = @transform_4, window_bounds = array<i64: 1, 32>}, {transform_indices = @transform_5, window_bounds = array<i64: 1, 8, 32>}, {pipeline_mode = #tpu.pipeline_mode<synchronous>, transform_indices = @transform_6, window_bounds = array<i64: 1, 32>}, {pipeline_mode = #tpu.pipeline_mode<synchronous>, transform_indices = @transform_7, window_bounds = array<i64: 1, 32>}, {transform_indices = @transform_8, window_bounds = array<i64: 1, 8, 32>}]} {
    %cst = arith.constant 0.000000e+00 : f32
    %0 = vector.broadcast %cst : f32 to vector<8x32xf32>
    %c0 = arith.constant 0 : index
    %c0_0 = arith.constant 0 : index
    %1 = vector.load %arg10[%c0, %c0_0] : memref<8x32xf32, #tpu.memory_space<vmem>>, vector<8x32xf32>
    tpu.vector_store %arg10[%c0, %c0_0], %0 {strides = array<i32>} : memref<8x32xf32, #tpu.memory_space<vmem>>, vector<8x32xf32>,
    %c0_1 = arith.constant 0 : index
    %c0_2 = arith.constant 0 : index
    %c0_3 = arith.constant 0 : index
    %c0_4 = arith.constant 0 : index
    %2 = vector.load %arg1[%c0_1, %c0_2, %c0_3, %c0_4] : memref<1x1x8x32xbf16, #tpu.memory_space<vmem>>, vector<1x1x8x8xbf16>
    %3 = vector.shape_cast %2 : vector<1x1x8x8xbf16> to vector<8x8xbf16>
    %c0_5 = arith.constant 0 : index
    %c0_6 = arith.constant 0 : index
    %c0_7 = arith.constant 0 : index
    %c0_8 = arith.constant 0 : index
    %4 = vector.load %arg2[%c0_5, %c0_6, %c0_7, %c0_8] : memref<1x1x8x32xbf16, #tpu.memory_space<vmem>>, vector<1x1x8x8xbf16>
    %5 = vector.shape_cast %4 : vector<1x1x8x8xbf16> to vector<8x8xbf16>
    %c0_9 = arith.constant 0 : index
    %c0_10 = arith.constant 0 : index
    %c0_11 = arith.constant 0 : index
    %c0_12 = arith.constant 0 : index
    %6 = vector.load %arg3[%c0_9, %c0_10, %c0_11, %c0_12] : memref<1x1x8x32xbf16, #tpu.memory_space<vmem>>, vector<1x1x8x8xbf16>
    %7 = vector.shape_cast %6 : vector<1x1x8x8xbf16> to vector<8x8xbf16>
    %cst_13 = arith.constant dense<0.000000e+00> : vector<8x8xf32>
    %8 = tpu.matmul %3, %5, %cst_13 {dimension_numbers = #tpu.dot_dimension_numbers<[1], [1], [0], [0], [0, 0, 1, 0], [], []>} : vector<8x8xbf16>, vector<8x8xbf16>, vector<8x8xf32> -> vector<8x8xf32>
    %cst_14 = arith.constant 0.353553385 : f32
    %9 = vector.broadcast %cst_14 : f32 to vector<8x8xf32>
    %10 = arith.mulf %8, %9 : vector<8x8xf32>
    %cst_15 = arith.constant dense<0xFF800000> : vector<8xf32>
    %11 = vector.multi_reduction <maximumf>, %10, %cst_15 [1] : vector<8x8xf32> to vector<8xf32>
    %12 = vector.shape_cast %11 : vector<8xf32> to vector<8x1xf32>
    %cst_16 = arith.constant -1.000000e+30 : f32
    %13 = vector.broadcast %cst_16 : f32 to vector<8x1xf32>
    %14 = arith.maximumf %12, %13 : vector<8x1xf32>
    %15 = vector.broadcast %14 : vector<8x1xf32> to vector<8x8xf32>
    %16 = arith.subf %10, %15 : vector<8x8xf32>
    %17 = math.exp %16 : vector<8x8xf32>
    %cst_17 = arith.constant dense<0.000000e+00> : vector<8xf32>
    %18 = vector.multi_reduction <add>, %17, %cst_17 [1] : vector<8x8xf32> to vector<8xf32>
    %19 = vector.shape_cast %18 : vector<8xf32> to vector<8x1xf32>
    %cst_18 = arith.constant 1.000000e-30 : f32
    %20 = vector.broadcast %cst_18 : f32 to vector<8x1xf32>
    %21 = arith.maximumf %19, %20 : vector<8x1xf32>
    %22 = tpu.reciprocal %21 {approx = true} : vector<8x1xf32> -> vector<8x1xf32>
    %23 = vector.broadcast %22 : vector<8x1xf32> to vector<8x8xf32>
    %24 = arith.mulf %17, %23 : vector<8x8xf32>
    %25 = arith.truncf %24 : vector<8x8xf32> to vector<8x8xbf16>
    %cst_19 = arith.constant dense<0.000000e+00> : vector<8x8xf32>
    %26 = tpu.matmul %25, %7, %cst_19 {dimension_numbers = #tpu.dot_dimension_numbers<[1], [0], [0], [1], [0, 0, 1, 1], [], []>} : vector<8x8xbf16>, vector<8x8xbf16>, vector<8x8xf32> -> vector<8x8xf32>
    %c0_20 = arith.constant 0 : index
    %c0_21 = arith.constant 0 : index
    %27 = vector.load %arg10[%c0_20, %c0_21] : memref<8x32xf32, #tpu.memory_space<vmem>>, vector<8x32xf32>
    %28 = arith.truncf %26 : vector<8x8xf32> to vector<8x8xbf16>
    %c0_22 = arith.constant 0 : index
    %c0_23 = arith.constant 0 : index
    %29 = vector.load %arg4[%c0_22, %c0_23] : memref<32x32xbf16, #tpu.memory_space<vmem>>, vector<8x32xbf16>
    %cst_24 = arith.constant dense<0.000000e+00> : vector<8x32xf32>
    %30 = tpu.matmul %28, %29, %cst_24 {dimension_numbers = #tpu.dot_dimension_numbers<[1], [0], [0], [1], [0, 0, 1, 1], [], []>} : vector<8x8xbf16>, vector<8x32xbf16>, vector<8x32xf32> -> vector<8x32xf32>
    %31 = arith.addf %27, %30 : vector<8x32xf32>
    %c0_25 = arith.constant 0 : index
    %c0_26 = arith.constant 0 : index
    %32 = vector.load %arg10[%c0_25, %c0_26] : memref<8x32xf32, #tpu.memory_space<vmem>>, vector<8x32xf32>
    tpu.vector_store %arg10[%c0_25, %c0_26], %31 {strides = array<i32>} : memref<8x32xf32, #tpu.memory_space<vmem>>, vector<8x32xf32>,
    %c0_27 = arith.constant 0 : index
    %c0_28 = arith.constant 0 : index
    %c0_29 = arith.constant 0 : index
    %c8 = arith.constant 8 : index
    %33 = vector.load %arg1[%c0_27, %c0_28, %c0_29, %c8] : memref<1x1x8x32xbf16, #tpu.memory_space<vmem>>, vector<1x1x8x8xbf16>
    %34 = vector.shape_cast %33 : vector<1x1x8x8xbf16> to vector<8x8xbf16>
    %c0_30 = arith.constant 0 : index
    %c0_31 = arith.constant 0 : index
    %c0_32 = arith.constant 0 : index
    %c8_33 = arith.constant 8 : index
    %35 = vector.load %arg2[%c0_30, %c0_31, %c0_32, %c8_33] : memref<1x1x8x32xbf16, #tpu.memory_space<vmem>>, vector<1x1x8x8xbf16>
    %36 = vector.shape_cast %35 : vector<1x1x8x8xbf16> to vector<8x8xbf16>
    %c0_34 = arith.constant 0 : index
    %c0_35 = arith.constant 0 : index
    %c0_36 = arith.constant 0 : index
    %c8_37 = arith.constant 8 : index
    %37 = vector.load %arg3[%c0_34, %c0_35, %c0_36, %c8_37] : memref<1x1x8x32xbf16, #tpu.memory_space<vmem>>, vector<1x1x8x8xbf16>
    %38 = vector.shape_cast %37 : vector<1x1x8x8xbf16> to vector<8x8xbf16>
    %cst_38 = arith.constant dense<0.000000e+00> : vector<8x8xf32>
    %39 = tpu.matmul %34, %36, %cst_38 {dimension_numbers = #tpu.dot_dimension_numbers<[1], [1], [0], [0], [0, 0, 1, 0], [], []>} : vector<8x8xbf16>, vector<8x8xbf16>, vector<8x8xf32> -> vector<8x8xf32>
    %cst_39 = arith.constant 0.353553385 : f32
    %40 = vector.broadcast %cst_39 : f32 to vector<8x8xf32>
    %41 = arith.mulf %39, %40 : vector<8x8xf32>
    %cst_40 = arith.constant dense<0xFF800000> : vector<8xf32>
    %42 = vector.multi_reduction <maximumf>, %41, %cst_40 [1] : vector<8x8xf32> to vector<8xf32>
    %43 = vector.shape_cast %42 : vector<8xf32> to vector<8x1xf32>
    %cst_41 = arith.constant -1.000000e+30 : f32
    %44 = vector.broadcast %cst_41 : f32 to vector<8x1xf32>
    %45 = arith.maximumf %43, %44 : vector<8x1xf32>
    %46 = vector.broadcast %45 : vector<8x1xf32> to vector<8x8xf32>
    %47 = arith.subf %41, %46 : vector<8x8xf32>
    %48 = math.exp %47 : vector<8x8xf32>
    %cst_42 = arith.constant dense<0.000000e+00> : vector<8xf32>
    %49 = vector.multi_reduction <add>, %48, %cst_42 [1] : vector<8x8xf32> to vector<8xf32>
    %50 = vector.shape_cast %49 : vector<8xf32> to vector<8x1xf32>
    %cst_43 = arith.constant 1.000000e-30 : f32
    %51 = vector.broadcast %cst_43 : f32 to vector<8x1xf32>
    %52 = arith.maximumf %50, %51 : vector<8x1xf32>
    %53 = tpu.reciprocal %52 {approx = true} : vector<8x1xf32> -> vector<8x1xf32>
    %54 = vector.broadcast %53 : vector<8x1xf32> to vector<8x8xf32>
    %55 = arith.mulf %48, %54 : vector<8x8xf32>
    %56 = arith.truncf %55 : vector<8x8xf32> to vector<8x8xbf16>
    %cst_44 = arith.constant dense<0.000000e+00> : vector<8x8xf32>
    %57 = tpu.matmul %56, %38, %cst_44 {dimension_numbers = #tpu.dot_dimension_numbers<[1], [0], [0], [1], [0, 0, 1, 1], [], []>} : vector<8x8xbf16>, vector<8x8xbf16>, vector<8x8xf32> -> vector<8x8xf32>
    %c0_45 = arith.constant 0 : index
    %c0_46 = arith.constant 0 : index
    %58 = vector.load %arg10[%c0_45, %c0_46] : memref<8x32xf32, #tpu.memory_space<vmem>>, vector<8x32xf32>
    %59 = arith.truncf %57 : vector<8x8xf32> to vector<8x8xbf16>
    %c8_47 = arith.constant 8 : index
    %c0_48 = arith.constant 0 : index
    %60 = vector.load %arg4[%c8_47, %c0_48] : memref<32x32xbf16, #tpu.memory_space<vmem>>, vector<8x32xbf16>
    %cst_49 = arith.constant dense<0.000000e+00> : vector<8x32xf32>
    %61 = tpu.matmul %59, %60, %cst_49 {dimension_numbers = #tpu.dot_dimension_numbers<[1], [0], [0], [1], [0, 0, 1, 1], [], []>} : vector<8x8xbf16>, vector<8x32xbf16>, vector<8x32xf32> -> vector<8x32xf32>
    %62 = arith.addf %58, %61 : vector<8x32xf32>
    %c0_50 = arith.constant 0 : index
    %c0_51 = arith.constant 0 : index
    %63 = vector.load %arg10[%c0_50, %c0_51] : memref<8x32xf32, #tpu.memory_space<vmem>>, vector<8x32xf32>
    tpu.vector_store %arg10[%c0_50, %c0_51], %62 {strides = array<i32>} : memref<8x32xf32, #tpu.memory_space<vmem>>, vector<8x32xf32>,
    %c0_52 = arith.constant 0 : index
    %c0_53 = arith.constant 0 : index
    %c0_54 = arith.constant 0 : index
    %c16 = arith.constant 16 : index
    %64 = vector.load %arg1[%c0_52, %c0_53, %c0_54, %c16] : memref<1x1x8x32xbf16, #tpu.memory_space<vmem>>, vector<1x1x8x8xbf16>
    %65 = vector.shape_cast %64 : vector<1x1x8x8xbf16> to vector<8x8xbf16>
    %c0_55 = arith.constant 0 : index
    %c0_56 = arith.constant 0 : index
    %c0_57 = arith.constant 0 : index
    %c16_58 = arith.constant 16 : index
    %66 = vector.load %arg2[%c0_55, %c0_56, %c0_57, %c16_58] : memref<1x1x8x32xbf16, #tpu.memory_space<vmem>>, vector<1x1x8x8xbf16>
    %67 = vector.shape_cast %66 : vector<1x1x8x8xbf16> to vector<8x8xbf16>
    %c0_59 = arith.constant 0 : index
    %c0_60 = arith.constant 0 : index
    %c0_61 = arith.constant 0 : index
    %c16_62 = arith.constant 16 : index
    %68 = vector.load %arg3[%c0_59, %c0_60, %c0_61, %c16_62] : memref<1x1x8x32xbf16, #tpu.memory_space<vmem>>, vector<1x1x8x8xbf16>
    %69 = vector.shape_cast %68 : vector<1x1x8x8xbf16> to vector<8x8xbf16>
    %cst_63 = arith.constant dense<0.000000e+00> : vector<8x8xf32>
    %70 = tpu.matmul %65, %67, %cst_63 {dimension_numbers = #tpu.dot_dimension_numbers<[1], [1], [0], [0], [0, 0, 1, 0], [], []>} : vector<8x8xbf16>, vector<8x8xbf16>, vector<8x8xf32> -> vector<8x8xf32>
    %cst_64 = arith.constant 0.353553385 : f32
    %71 = vector.broadcast %cst_64 : f32 to vector<8x8xf32>
    %72 = arith.mulf %70, %71 : vector<8x8xf32>
    %cst_65 = arith.constant dense<0xFF800000> : vector<8xf32>
    %73 = vector.multi_reduction <maximumf>, %72, %cst_65 [1] : vector<8x8xf32> to vector<8xf32>
    %74 = vector.shape_cast %73 : vector<8xf32> to vector<8x1xf32>
    %cst_66 = arith.constant -1.000000e+30 : f32
    %75 = vector.broadcast %cst_66 : f32 to vector<8x1xf32>
    %76 = arith.maximumf %74, %75 : vector<8x1xf32>
    %77 = vector.broadcast %76 : vector<8x1xf32> to vector<8x8xf32>
    %78 = arith.subf %72, %77 : vector<8x8xf32>
    %79 = math.exp %78 : vector<8x8xf32>
    %cst_67 = arith.constant dense<0.000000e+00> : vector<8xf32>
    %80 = vector.multi_reduction <add>, %79, %cst_67 [1] : vector<8x8xf32> to vector<8xf32>
    %81 = vector.shape_cast %80 : vector<8xf32> to vector<8x1xf32>
    %cst_68 = arith.constant 1.000000e-30 : f32
    %82 = vector.broadcast %cst_68 : f32 to vector<8x1xf32>
    %83 = arith.maximumf %81, %82 : vector<8x1xf32>
    %84 = tpu.reciprocal %83 {approx = true} : vector<8x1xf32> -> vector<8x1xf32>
    %85 = vector.broadcast %84 : vector<8x1xf32> to vector<8x8xf32>
    %86 = arith.mulf %79, %85 : vector<8x8xf32>
    %87 = arith.truncf %86 : vector<8x8xf32> to vector<8x8xbf16>
    %cst_69 = arith.constant dense<0.000000e+00> : vector<8x8xf32>
    %88 = tpu.matmul %87, %69, %cst_69 {dimension_numbers = #tpu.dot_dimension_numbers<[1], [0], [0], [1], [0, 0, 1, 1], [], []>} : vector<8x8xbf16>, vector<8x8xbf16>, vector<8x8xf32> -> vector<8x8xf32>
    %c0_70 = arith.constant 0 : index
    %c0_71 = arith.constant 0 : index
    %89 = vector.load %arg10[%c0_70, %c0_71] : memref<8x32xf32, #tpu.memory_space<vmem>>, vector<8x32xf32>
    %90 = arith.truncf %88 : vector<8x8xf32> to vector<8x8xbf16>
    %c16_72 = arith.constant 16 : index
    %c0_73 = arith.constant 0 : index
    %91 = vector.load %arg4[%c16_72, %c0_73] : memref<32x32xbf16, #tpu.memory_space<vmem>>, vector<8x32xbf16>
    %cst_74 = arith.constant dense<0.000000e+00> : vector<8x32xf32>
    %92 = tpu.matmul %90, %91, %cst_74 {dimension_numbers = #tpu.dot_dimension_numbers<[1], [0], [0], [1], [0, 0, 1, 1], [], []>} : vector<8x8xbf16>, vector<8x32xbf16>, vector<8x32xf32> -> vector<8x32xf32>
    %93 = arith.addf %89, %92 : vector<8x32xf32>
    %c0_75 = arith.constant 0 : index
    %c0_76 = arith.constant 0 : index
    %94 = vector.load %arg10[%c0_75, %c0_76] : memref<8x32xf32, #tpu.memory_space<vmem>>, vector<8x32xf32>
    tpu.vector_store %arg10[%c0_75, %c0_76], %93 {strides = array<i32>} : memref<8x32xf32, #tpu.memory_space<vmem>>, vector<8x32xf32>,
    %c0_77 = arith.constant 0 : index
    %c0_78 = arith.constant 0 : index
    %c0_79 = arith.constant 0 : index
    %c24 = arith.constant 24 : index
    %95 = vector.load %arg1[%c0_77, %c0_78, %c0_79, %c24] : memref<1x1x8x32xbf16, #tpu.memory_space<vmem>>, vector<1x1x8x8xbf16>
    %96 = vector.shape_cast %95 : vector<1x1x8x8xbf16> to vector<8x8xbf16>
    %c0_80 = arith.constant 0 : index
    %c0_81 = arith.constant 0 : index
    %c0_82 = arith.constant 0 : index
    %c24_83 = arith.constant 24 : index
    %97 = vector.load %arg2[%c0_80, %c0_81, %c0_82, %c24_83] : memref<1x1x8x32xbf16, #tpu.memory_space<vmem>>, vector<1x1x8x8xbf16>
    %98 = vector.shape_cast %97 : vector<1x1x8x8xbf16> to vector<8x8xbf16>
    %c0_84 = arith.constant 0 : index
    %c0_85 = arith.constant 0 : index
    %c0_86 = arith.constant 0 : index
    %c24_87 = arith.constant 24 : index
    %99 = vector.load %arg3[%c0_84, %c0_85, %c0_86, %c24_87] : memref<1x1x8x32xbf16, #tpu.memory_space<vmem>>, vector<1x1x8x8xbf16>
    %100 = vector.shape_cast %99 : vector<1x1x8x8xbf16> to vector<8x8xbf16>
    %cst_88 = arith.constant dense<0.000000e+00> : vector<8x8xf32>
    %101 = tpu.matmul %96, %98, %cst_88 {dimension_numbers = #tpu.dot_dimension_numbers<[1], [1], [0], [0], [0, 0, 1, 0], [], []>} : vector<8x8xbf16>, vector<8x8xbf16>, vector<8x8xf32> -> vector<8x8xf32>
    %cst_89 = arith.constant 0.353553385 : f32
    %102 = vector.broadcast %cst_89 : f32 to vector<8x8xf32>
    %103 = arith.mulf %101, %102 : vector<8x8xf32>
    %cst_90 = arith.constant dense<0xFF800000> : vector<8xf32>
    %104 = vector.multi_reduction <maximumf>, %103, %cst_90 [1] : vector<8x8xf32> to vector<8xf32>
    %105 = vector.shape_cast %104 : vector<8xf32> to vector<8x1xf32>
    %cst_91 = arith.constant -1.000000e+30 : f32
    %106 = vector.broadcast %cst_91 : f32 to vector<8x1xf32>
    %107 = arith.maximumf %105, %106 : vector<8x1xf32>
    %108 = vector.broadcast %107 : vector<8x1xf32> to vector<8x8xf32>
    %109 = arith.subf %103, %108 : vector<8x8xf32>
    %110 = math.exp %109 : vector<8x8xf32>
    %cst_92 = arith.constant dense<0.000000e+00> : vector<8xf32>
    %111 = vector.multi_reduction <add>, %110, %cst_92 [1] : vector<8x8xf32> to vector<8xf32>
    %112 = vector.shape_cast %111 : vector<8xf32> to vector<8x1xf32>
    %cst_93 = arith.constant 1.000000e-30 : f32
    %113 = vector.broadcast %cst_93 : f32 to vector<8x1xf32>
    %114 = arith.maximumf %112, %113 : vector<8x1xf32>
    %115 = tpu.reciprocal %114 {approx = true} : vector<8x1xf32> -> vector<8x1xf32>
    %116 = vector.broadcast %115 : vector<8x1xf32> to vector<8x8xf32>
    %117 = arith.mulf %110, %116 : vector<8x8xf32>
    %118 = arith.truncf %117 : vector<8x8xf32> to vector<8x8xbf16>
    %cst_94 = arith.constant dense<0.000000e+00> : vector<8x8xf32>
    %119 = tpu.matmul %118, %100, %cst_94 {dimension_numbers = #tpu.dot_dimension_numbers<[1], [0], [0], [1], [0, 0, 1, 1], [], []>} : vector<8x8xbf16>, vector<8x8xbf16>, vector<8x8xf32> -> vector<8x8xf32>
    %c0_95 = arith.constant 0 : index
    %c0_96 = arith.constant 0 : index
    %120 = vector.load %arg10[%c0_95, %c0_96] : memref<8x32xf32, #tpu.memory_space<vmem>>, vector<8x32xf32>
    %121 = arith.truncf %119 : vector<8x8xf32> to vector<8x8xbf16>
    %c24_97 = arith.constant 24 : index
    %c0_98 = arith.constant 0 : index
    %122 = vector.load %arg4[%c24_97, %c0_98] : memref<32x32xbf16, #tpu.memory_space<vmem>>, vector<8x32xbf16>
    %cst_99 = arith.constant dense<0.000000e+00> : vector<8x32xf32>
    %123 = tpu.matmul %121, %122, %cst_99 {dimension_numbers = #tpu.dot_dimension_numbers<[1], [0], [0], [1], [0, 0, 1, 1], [], []>} : vector<8x8xbf16>, vector<8x32xbf16>, vector<8x32xf32> -> vector<8x32xf32>
    %124 = arith.addf %120, %123 : vector<8x32xf32>
    %c0_100 = arith.constant 0 : index
    %c0_101 = arith.constant 0 : index
    %125 = vector.load %arg10[%c0_100, %c0_101] : memref<8x32xf32, #tpu.memory_space<vmem>>, vector<8x32xf32>
    tpu.vector_store %arg10[%c0_100, %c0_101], %124 {strides = array<i32>} : memref<8x32xf32, #tpu.memory_space<vmem>>, vector<8x32xf32>,
    %c0_102 = arith.constant 0 : index
    %c0_103 = arith.constant 0 : index
    %126 = vector.load %arg10[%c0_102, %c0_103] : memref<8x32xf32, #tpu.memory_space<vmem>>, vector<8x32xf32>
    %c0_104 = arith.constant 0 : index
    %c0_105 = arith.constant 0 : index
    %127 = vector.load %arg5[%c0_104, %c0_105] : memref<1x32xf32, #tpu.memory_space<vmem>>, vector<1x32xf32>
    %128 = vector.broadcast %127 : vector<1x32xf32> to vector<8x32xf32>
    %129 = arith.addf %126, %128 : vector<8x32xf32>
    %c0_106 = arith.constant 0 : index
    %c0_107 = arith.constant 0 : index
    %c0_108 = arith.constant 0 : index
    %130 = vector.load %arg6[%c0_106, %c0_107, %c0_108] : memref<1x8x32xf32, #tpu.memory_space<vmem>>, vector<1x8x32xf32>
    %131 = vector.shape_cast %130 : vector<1x8x32xf32> to vector<8x32xf32>
    %132 = arith.addf %129, %131 : vector<8x32xf32>
    %cst_109 = arith.constant dense<0.000000e+00> : vector<8xf32>
    %133 = vector.multi_reduction <add>, %132, %cst_109 [1] : vector<8x32xf32> to vector<8xf32>
    %134 = vector.shape_cast %133 : vector<8xf32> to vector<8x1xf32>
    %cst_110 = arith.constant 3.200000e+01 : f32
    %135 = vector.broadcast %cst_110 : f32 to vector<8x1xf32>
    %136 = arith.divf %134, %135 : vector<8x1xf32>
    %137 = vector.broadcast %136 : vector<8x1xf32> to vector<8x32xf32>
    %138 = arith.subf %132, %137 : vector<8x32xf32>
    %139 = vector.broadcast %136 : vector<8x1xf32> to vector<8x32xf32>
    %140 = arith.subf %132, %139 : vector<8x32xf32>
    %141 = arith.mulf %138, %140 : vector<8x32xf32>
    %cst_111 = arith.constant dense<0.000000e+00> : vector<8xf32>
    %142 = vector.multi_reduction <add>, %141, %cst_111 [1] : vector<8x32xf32> to vector<8xf32>
    %143 = vector.shape_cast %142 : vector<8xf32> to vector<8x1xf32>
    %cst_112 = arith.constant 3.200000e+01 : f32
    %144 = vector.broadcast %cst_112 : f32 to vector<8x1xf32>
    %145 = arith.divf %143, %144 : vector<8x1xf32>
    %146 = vector.broadcast %136 : vector<8x1xf32> to vector<8x32xf32>
    %147 = arith.subf %132, %146 : vector<8x32xf32>
    %cst_113 = arith.constant 9.99999974E-6 : f32
    %148 = vector.broadcast %cst_113 : f32 to vector<8x1xf32>
    %149 = arith.addf %145, %148 : vector<8x1xf32>
    %150 = math.rsqrt %149 : vector<8x1xf32>
    %151 = vector.broadcast %150 : vector<8x1xf32> to vector<8x32xf32>
    %152 = arith.mulf %147, %151 : vector<8x32xf32>
    %c0_114 = arith.constant 0 : index
    %c0_115 = arith.constant 0 : index
    %153 = vector.load %arg7[%c0_114, %c0_115] : memref<1x32xf32, #tpu.memory_space<vmem>>, vector<1x32xf32>
    %154 = vector.broadcast %153 : vector<1x32xf32> to vector<8x32xf32>
    %155 = arith.mulf %152, %154 : vector<8x32xf32>
    %c0_116 = arith.constant 0 : index
    %c0_117 = arith.constant 0 : index
    %156 = vector.load %arg8[%c0_116, %c0_117] : memref<1x32xf32, #tpu.memory_space<vmem>>, vector<1x32xf32>
    %157 = vector.broadcast %156 : vector<1x32xf32> to vector<8x32xf32>
    %158 = arith.addf %155, %157 : vector<8x32xf32>
    %c0_118 = arith.constant 0 : index
    %c0_119 = arith.constant 0 : index
    %c0_120 = arith.constant 0 : index
    %159 = vector.load %arg9[%c0_118, %c0_119, %c0_120] : memref<1x8x32xf32, #tpu.memory_space<vmem>>, vector<1x8x32xf32>
    %160 = vector.shape_cast %159 : vector<1x8x32xf32> to vector<8x32xf32>
    %161 = vector.shape_cast %158 : vector<8x32xf32> to vector<1x8x32xf32>
    tpu.vector_store %arg9[%c0_118, %c0_119, %c0_120], %161 {strides = array<i32>} : memref<1x8x32xf32, #tpu.memory_space<vmem>>, vector<1x8x32xf32>,
    return
  }
  func.func @transform_0(%arg0: i32) -> (i32, i32, i32, i32) {
    %c0_i32 = arith.constant 0 : i32
    %c0_i32_0 = arith.constant 0 : i32
    %c0_i32_1 = arith.constant 0 : i32
    %c0_i32_2 = arith.constant 0 : i32
    return %c0_i32, %arg0, %c0_i32_0, %c0_i32_1 : i32, i32, i32, i32
  }
  func.func @transform_1(%arg0: i32) -> (i32, i32, i32, i32) {
    %c0_i32 = arith.constant 0 : i32
    %c0_i32_0 = arith.constant 0 : i32
    %c0_i32_1 = arith.constant 0 : i32
    %c0_i32_2 = arith.constant 0 : i32
    return %c0_i32, %arg0, %c0_i32_0, %c0_i32_1 : i32, i32, i32, i32
  }
  func.func @transform_2(%arg0: i32) -> (i32, i32, i32, i32) {
    %c1_i32 = arith.constant 1 : i32
    %c0_i32 = arith.constant 0 : i32
    %c0_i32_0 = arith.constant 0 : i32
    %c0_i32_1 = arith.constant 0 : i32
    return %c1_i32, %arg0, %c0_i32, %c0_i32_0 : i32, i32, i32, i32
  }
  func.func @transform_3(%arg0: i32) -> (i32, i32) {
    %c0_i32 = arith.constant 0 : i32
    %c0_i32_0 = arith.constant 0 : i32
    %c0_i32_1 = arith.constant 0 : i32
    return %c0_i32, %c0_i32_0 : i32, i32
  }
  func.func @transform_4(%arg0: i32) -> (i32, i32) {
    %c0_i32 = arith.constant 0 : i32
    %c0_i32_0 = arith.constant 0 : i32
    %c0_i32_1 = arith.constant 0 : i32
    return %c0_i32, %c0_i32_0 : i32, i32
  }
  func.func @transform_5(%arg0: i32) -> (i32, i32, i32) {
    %c0_i32 = arith.constant 0 : i32
    %c0_i32_0 = arith.constant 0 : i32
    %c0_i32_1 = arith.constant 0 : i32
    return %arg0, %c0_i32, %c0_i32_0 : i32, i32, i32
  }
  func.func @transform_6(%arg0: i32) -> (i32, i32) {
    %c0_i32 = arith.constant 0 : i32
    %c0_i32_0 = arith.constant 0 : i32
    %c0_i32_1 = arith.constant 0 : i32
    return %c0_i32, %c0_i32_0 : i32, i32
  }
  func.func @transform_7(%arg0: i32) -> (i32, i32) {
    %c0_i32 = arith.constant 0 : i32
    %c0_i32_0 = arith.constant 0 : i32
    %c0_i32_1 = arith.constant 0 : i32
    return %c0_i32, %c0_i32_0 : i32, i32
  }
  func.func @transform_8(%arg0: i32) -> (i32, i32, i32) {
    %c0_i32 = arith.constant 0 : i32
    %c0_i32_0 = arith.constant 0 : i32
    %c0_i32_1 = arith.constant 0 : i32
    return %arg0, %c0_i32, %c0_i32_0 : i32, i32, i32
  }
}

module attributes {stable_mosaic.version = 11 : i64} {
  func.func @_ffn_kernel(%arg0: i32, %arg1: i32, %arg2: memref<16x32xf32, #tpu.memory_space<vmem>>, %arg3: memref<32x64xbf16, #tpu.memory_space<vmem>>, %arg4: memref<1x64xf32, #tpu.memory_space<vmem>>, %arg5: memref<64x32xbf16, #tpu.memory_space<vmem>>, %arg6: memref<1x32xf32, #tpu.memory_space<vmem>>, %arg7: memref<1x32xf32, #tpu.memory_space<vmem>>, %arg8: memref<1x32xf32, #tpu.memory_space<vmem>>, %arg9: memref<16x32xf32, #tpu.memory_space<vmem>>, %arg10: memref<16x32xf32, #tpu.memory_space<vmem>>) attributes {dimension_semantics = [#tpu.dimension_semantics<parallel>, #tpu.dimension_semantics<arbitrary>], iteration_bounds = array<i64: 1, 1>, scalar_prefetch = 0 : i64, scratch_operands = 1 : i64, tpu.core_type = #tpu.core_type<tc>, window_params = [{transform_indices = @transform_0, window_bounds = array<i64: 16, 32>}, {transform_indices = @transform_1, window_bounds = array<i64: 32, 64>}, {transform_indices = @transform_2, window_bounds = array<i64: 1, 64>}, {transform_indices = @transform_3, window_bounds = array<i64: 64, 32>}, {pipeline_mode = #tpu.pipeline_mode<synchronous>, transform_indices = @transform_4, window_bounds = array<i64: 1, 32>}, {pipeline_mode = #tpu.pipeline_mode<synchronous>, transform_indices = @transform_5, window_bounds = array<i64: 1, 32>}, {pipeline_mode = #tpu.pipeline_mode<synchronous>, transform_indices = @transform_6, window_bounds = array<i64: 1, 32>}, {transform_indices = @transform_7, window_bounds = array<i64: 16, 32>}]} {
    %c0_i32 = arith.constant 0 : i32
    %0 = arith.cmpi eq, %arg1, %c0_i32 : i32
    %1 = arith.extui %0 : i1 to i32
    %c0_i32_0 = arith.constant 0 : i32
    %2 = arith.cmpi ne, %1, %c0_i32_0 : i32
    scf.if %2 {
      %cst_16 = arith.constant 0.000000e+00 : f32
      %21 = vector.broadcast %cst_16 : f32 to vector<16x32xf32>
      %c0_17 = arith.constant 0 : index
      %c0_18 = arith.constant 0 : index
      %22 = vector.load %arg10[%c0_17, %c0_18] : memref<16x32xf32, #tpu.memory_space<vmem>>, vector<16x32xf32>
      tpu.vector_store %arg10[%c0_17, %c0_18], %21 {strides = array<i32>} : memref<16x32xf32, #tpu.memory_space<vmem>>, vector<16x32xf32>,
    } else {
    }
    %c0 = arith.constant 0 : index
    %c0_1 = arith.constant 0 : index
    %3 = vector.load %arg2[%c0, %c0_1] : memref<16x32xf32, #tpu.memory_space<vmem>>, vector<16x32xf32>
    %4 = arith.truncf %3 : vector<16x32xf32> to vector<16x32xbf16>
    %c0_2 = arith.constant 0 : index
    %c0_3 = arith.constant 0 : index
    %5 = vector.load %arg3[%c0_2, %c0_3] : memref<32x64xbf16, #tpu.memory_space<vmem>>, vector<32x64xbf16>
    %cst = arith.constant dense<0.000000e+00> : vector<16x64xf32>
    %6 = tpu.matmul %4, %5, %cst {dimension_numbers = #tpu.dot_dimension_numbers<[1], [0], [0], [1], [0, 0, 1, 1], [], []>} : vector<16x32xbf16>, vector<32x64xbf16>, vector<16x64xf32> -> vector<16x64xf32>
    %c0_4 = arith.constant 0 : index
    %c0_5 = arith.constant 0 : index
    %7 = vector.load %arg4[%c0_4, %c0_5] : memref<1x64xf32, #tpu.memory_space<vmem>>, vector<1x64xf32>
    %8 = vector.broadcast %7 : vector<1x64xf32> to vector<16x64xf32>
    %9 = arith.addf %6, %8 : vector<16x64xf32>
    %cst_6 = arith.constant 0.000000e+00 : f32
    %10 = vector.broadcast %cst_6 : f32 to vector<16x64xf32>
    %11 = arith.maximumf %9, %10 : vector<16x64xf32>
    %c0_7 = arith.constant 0 : index
    %c0_8 = arith.constant 0 : index
    %12 = vector.load %arg10[%c0_7, %c0_8] : memref<16x32xf32, #tpu.memory_space<vmem>>, vector<16x32xf32>
    %13 = arith.truncf %11 : vector<16x64xf32> to vector<16x64xbf16>
    %c0_9 = arith.constant 0 : index
    %c0_10 = arith.constant 0 : index
    %14 = vector.load %arg5[%c0_9, %c0_10] : memref<64x32xbf16, #tpu.memory_space<vmem>>, vector<64x32xbf16>
    %cst_11 = arith.constant dense<0.000000e+00> : vector<16x32xf32>
    %15 = tpu.matmul %13, %14, %cst_11 {dimension_numbers = #tpu.dot_dimension_numbers<[1], [0], [0], [1], [0, 0, 1, 1], [], []>} : vector<16x64xbf16>, vector<64x32xbf16>, vector<16x32xf32> -> vector<16x32xf32>
    %16 = arith.addf %12, %15 : vector<16x32xf32>
    %c0_12 = arith.constant 0 : index
    %c0_13 = arith.constant 0 : index
    %17 = vector.load %arg10[%c0_12, %c0_13] : memref<16x32xf32, #tpu.memory_space<vmem>>, vector<16x32xf32>
    tpu.vector_store %arg10[%c0_12, %c0_13], %16 {strides = array<i32>} : memref<16x32xf32, #tpu.memory_space<vmem>>, vector<16x32xf32>,
    %c0_i32_14 = arith.constant 0 : i32
    %18 = arith.cmpi eq, %arg1, %c0_i32_14 : i32
    %19 = arith.extui %18 : i1 to i32
    %c0_i32_15 = arith.constant 0 : i32
    %20 = arith.cmpi ne, %19, %c0_i32_15 : i32
    scf.if %20 {
      %c0_16 = arith.constant 0 : index
      %c0_17 = arith.constant 0 : index
      %21 = vector.load %arg10[%c0_16, %c0_17] : memref<16x32xf32, #tpu.memory_space<vmem>>, vector<16x32xf32>
      %c0_18 = arith.constant 0 : index
      %c0_19 = arith.constant 0 : index
      %22 = vector.load %arg6[%c0_18, %c0_19] : memref<1x32xf32, #tpu.memory_space<vmem>>, vector<1x32xf32>
      %23 = vector.broadcast %22 : vector<1x32xf32> to vector<16x32xf32>
      %24 = arith.addf %21, %23 : vector<16x32xf32>
      %c0_20 = arith.constant 0 : index
      %c0_21 = arith.constant 0 : index
      %25 = vector.load %arg2[%c0_20, %c0_21] : memref<16x32xf32, #tpu.memory_space<vmem>>, vector<16x32xf32>
      %26 = arith.addf %24, %25 : vector<16x32xf32>
      %cst_22 = arith.constant dense<0.000000e+00> : vector<16xf32>
      %27 = vector.multi_reduction <add>, %26, %cst_22 [1] : vector<16x32xf32> to vector<16xf32>
      %28 = vector.shape_cast %27 : vector<16xf32> to vector<16x1xf32>
      %cst_23 = arith.constant 3.200000e+01 : f32
      %29 = vector.broadcast %cst_23 : f32 to vector<16x1xf32>
      %30 = arith.divf %28, %29 : vector<16x1xf32>
      %31 = vector.broadcast %30 : vector<16x1xf32> to vector<16x32xf32>
      %32 = arith.subf %26, %31 : vector<16x32xf32>
      %33 = vector.broadcast %30 : vector<16x1xf32> to vector<16x32xf32>
      %34 = arith.subf %26, %33 : vector<16x32xf32>
      %35 = arith.mulf %32, %34 : vector<16x32xf32>
      %cst_24 = arith.constant dense<0.000000e+00> : vector<16xf32>
      %36 = vector.multi_reduction <add>, %35, %cst_24 [1] : vector<16x32xf32> to vector<16xf32>
      %37 = vector.shape_cast %36 : vector<16xf32> to vector<16x1xf32>
      %cst_25 = arith.constant 3.200000e+01 : f32
      %38 = vector.broadcast %cst_25 : f32 to vector<16x1xf32>
      %39 = arith.divf %37, %38 : vector<16x1xf32>
      %40 = vector.broadcast %30 : vector<16x1xf32> to vector<16x32xf32>
      %41 = arith.subf %26, %40 : vector<16x32xf32>
      %cst_26 = arith.constant 9.99999974E-6 : f32
      %42 = vector.broadcast %cst_26 : f32 to vector<16x1xf32>
      %43 = arith.addf %39, %42 : vector<16x1xf32>
      %44 = math.rsqrt %43 : vector<16x1xf32>
      %45 = vector.broadcast %44 : vector<16x1xf32> to vector<16x32xf32>
      %46 = arith.mulf %41, %45 : vector<16x32xf32>
      %c0_27 = arith.constant 0 : index
      %c0_28 = arith.constant 0 : index
      %47 = vector.load %arg7[%c0_27, %c0_28] : memref<1x32xf32, #tpu.memory_space<vmem>>, vector<1x32xf32>
      %48 = vector.broadcast %47 : vector<1x32xf32> to vector<16x32xf32>
      %49 = arith.mulf %46, %48 : vector<16x32xf32>
      %c0_29 = arith.constant 0 : index
      %c0_30 = arith.constant 0 : index
      %50 = vector.load %arg8[%c0_29, %c0_30] : memref<1x32xf32, #tpu.memory_space<vmem>>, vector<1x32xf32>
      %51 = vector.broadcast %50 : vector<1x32xf32> to vector<16x32xf32>
      %52 = arith.addf %49, %51 : vector<16x32xf32>
      %c0_31 = arith.constant 0 : index
      %c0_32 = arith.constant 0 : index
      %53 = vector.load %arg9[%c0_31, %c0_32] : memref<16x32xf32, #tpu.memory_space<vmem>>, vector<16x32xf32>
      tpu.vector_store %arg9[%c0_31, %c0_32], %52 {strides = array<i32>} : memref<16x32xf32, #tpu.memory_space<vmem>>, vector<16x32xf32>,
    } else {
    }
    return
  }
  func.func @transform_0(%arg0: i32, %arg1: i32) -> (i32, i32) {
    %c0_i32 = arith.constant 0 : i32
    %c0_i32_0 = arith.constant 0 : i32
    return %arg0, %c0_i32 : i32, i32
  }
  func.func @transform_1(%arg0: i32, %arg1: i32) -> (i32, i32) {
    %c0_i32 = arith.constant 0 : i32
    %c0_i32_0 = arith.constant 0 : i32
    return %c0_i32, %arg1 : i32, i32
  }
  func.func @transform_2(%arg0: i32, %arg1: i32) -> (i32, i32) {
    %c0_i32 = arith.constant 0 : i32
    %c0_i32_0 = arith.constant 0 : i32
    return %c0_i32, %arg1 : i32, i32
  }
  func.func @transform_3(%arg0: i32, %arg1: i32) -> (i32, i32) {
    %c0_i32 = arith.constant 0 : i32
    %c0_i32_0 = arith.constant 0 : i32
    return %arg1, %c0_i32 : i32, i32
  }
  func.func @transform_4(%arg0: i32, %arg1: i32) -> (i32, i32) {
    %c0_i32 = arith.constant 0 : i32
    %c0_i32_0 = arith.constant 0 : i32
    %c0_i32_1 = arith.constant 0 : i32
    return %c0_i32, %c0_i32_0 : i32, i32
  }
  func.func @transform_5(%arg0: i32, %arg1: i32) -> (i32, i32) {
    %c0_i32 = arith.constant 0 : i32
    %c0_i32_0 = arith.constant 0 : i32
    %c0_i32_1 = arith.constant 0 : i32
    return %c0_i32, %c0_i32_0 : i32, i32
  }
  func.func @transform_6(%arg0: i32, %arg1: i32) -> (i32, i32) {
    %c0_i32 = arith.constant 0 : i32
    %c0_i32_0 = arith.constant 0 : i32
    %c0_i32_1 = arith.constant 0 : i32
    return %c0_i32, %c0_i32_0 : i32, i32
  }
  func.func @transform_7(%arg0: i32, %arg1: i32) -> (i32, i32) {
    %c0_i32 = arith.constant 0 : i32
    %c0_i32_0 = arith.constant 0 : i32
    return %arg0, %c0_i32 : i32, i32
  }
}

</mosaic_0001>

<bundles_post_ra>
// kernel: transformer_encoder_layer_forward.8
= control target key start
LH: loop header
LB: loop body
LE: loop exit
PB: predicated region body
PF: predicated region fallthrough
CT: control target
= control target key end

     0   :  { %vm19_vm0 = vcmask 261120   ;;  %v144_v0 = vmov 0.0   ;;  %vm145_vm1 = vmmov 0   ;;  %vm114_vm2 = vcmask 257024   ;;  %s192_s1 = inlined_call_operand.vmem [shape: bf16[1,32,32], index: 1, kind: input, shape index: {}]   ;;  %s193_s0 = inlined_call_operand.vmem [shape: f32[16,32], index: 0, kind: input, shape index: {}]   ;;  %s194_s2 = inlined_call_operand.vmem [shape: f32[1,1,32], index: 2, kind: input, shape index: {}]   ;;  %s195_s3 = inlined_call_operand.vmem [shape: bf16[1,16,32], index: 3, kind: output, shape index: {}]  }
   0x1   :  { %132 = vmatprep.subr.bf16.mxu0 %v144_v0  ;;  %v142_v1 = vld [vmem:[%s192_s1] sm:$0xff]   ;;  %136 = vmatprep.mubr.msk.bf16.mxu0 %vm145_vm1, %v144_v0  ;;  %20 = vst.msk [vmem:[#allocation2] sm:$0xff] %vm19_vm0, %v144_v0  ;;  %21 = vst.msk [vmem:[#allocation2 + $0x8] sm:$0xff] %vm19_vm0, %v144_v0  ;;  %v143_v2 = vld [vmem:[%s192_s1 + $0x8] sm:$0xff]  }
   0x2   :  { %133 = vmatpush3.bf16.msra.mxu0 %v142_v1  ;;  %v22_v3 = vld [vmem:[%s193_s0] sm:$0xff]  ;;  %v23_v4 = vld [vmem:[%s193_s0 + $0x8] sm:$0xff] }
   0x3   :  { %134 = vmatprep.subr.bf16.mxu0 %v144_v0  ;;  %v24_v5 = vpack.c.bf16 %v23_v4, %v22_v3  ;;  %v124_v14 = vld [vmem:[%s194_s2] ss:$0 sm:$0xff] }
   0x6   :  { %135 = vmatpush3.bf16.msra.mxu0 %v143_v2 }
   0x8   :  { %v25_v6 = vld [vmem:[#allocation2] sm:$0xff]  ;;  %v26_v8 = vld [vmem:[#allocation2 + $0x8] sm:$0xff] }
   0x9   :  { %137 = vmatmul.mubr.msk.bf16.vlgmr.msra.gmra.mrb[0].mxu0 %vm19_vm0, %v24_v5 }
  0xdc   :  { %v81_v7 = vpop.f32.mrb[0].mxu0 }
  0xdd   :  { %v88_v9 = vadd.f32 %v81_v7, %v25_v6  ;;  %v138_v10 = vpop.f32.mrb[1].mxu0 }
  0xde   :  { %v84_v11 = vpop.f32.mrb[2].mxu0 }
  0xdf   :  { %90 = vst.msk [vmem:[#allocation2] sm:$0xff] %vm19_vm0, %v88_v9  ;;  %v89_v12 = vadd.f32 %v84_v11, %v26_v8  ;;  %v139_v13 = vpop.f32.mrb[3].mxu0 }
  0xe1   :  { %91 = vst.msk [vmem:[#allocation2 + $0x8] sm:$0xff] %vm19_vm0, %v89_v12 }
  0xe6   :  { %v95_v15 = vld [vmem:[#allocation2] sm:$0xff] }
  0xe7   :  { %v104_v16 = vadd.f32 %v124_v14, %v95_v15 }
  0xe8   :  { %v96_v17 = vld [vmem:[#allocation2 + $0x8] sm:$0xff] }
  0xe9   :  { %v127_v18 = vpack.c.bf16 %v104_v16, %v104_v16  ;;  %v105_v19 = vadd.f32 %v124_v14, %v96_v17 }
  0xeb   :  { %115 = vst.msk [vmem:[%s195_s3] sm:$0xf] %vm114_vm2, %v127_v18  ;;  %v128_v20 = vpack.c.bf16 %v105_v19, %v105_v19 }
  0xed   :  { %116 = vst.msk [vmem:[%s195_s3 + $0x4] sm:$0xf] %vm114_vm2, %v128_v20 }

// kernel: transformer_encoder_layer_forward.6
= control target key start
LH: loop header
LB: loop body
LE: loop exit
PB: predicated region body
PF: predicated region fallthrough
CT: control target
= control target key end

     0   :  { %vm19_vm0 = vcmask 261120   ;;  %v370_v0 = vmov 0.0   ;;  %vm371_vm1 = vmmov 0   ;;  %vm286_vm2 = vcmask 257024   ;;  %s467_s1 = inlined_call_operand.vmem [shape: bf16[3,32,32], index: 1, kind: input, shape index: {}]   ;;  %s468_s0 = inlined_call_operand.vmem [shape: f32[16,32], index: 0, kind: input, shape index: {}]   ;;  %s469_s2 = inlined_call_operand.vmem [shape: f32[3,1,32], index: 2, kind: input, shape index: {}]   ;;  %s470_s3 = inlined_call_operand.vmem [shape: bf16[3,16,32], index: 3, kind: output, shape index: {}]  }
   0x1   :  { %338 = vmatprep.subr.bf16.mxu0 %v370_v0  ;;  %v364_v1 = vld [vmem:[%s467_s1] sm:$0xff]   ;;  %346 = vmatprep.subr.bf16.mxu1 %v370_v0  ;;  %20 = vst.msk [vmem:[#allocation2] sm:$0xff] %vm19_vm0, %v370_v0  ;;  %21 = vst.msk [vmem:[#allocation2 + $0x8] sm:$0xff] %vm19_vm0, %v370_v0  ;;  %v365_v2 = vld [vmem:[%s467_s1 + $0x8] sm:$0xff]  }
   0x2   :  { %22 = vst.msk [vmem:[#allocation2 + $0x10] sm:$0xff] %vm19_vm0, %v370_v0  ;;  %23 = vst.msk [vmem:[#allocation2 + $0x18] sm:$0xff] %vm19_vm0, %v370_v0  ;;  %342 = vmatprep.mubr.msk.bf16.mxu0 %vm371_vm1, %v370_v0  ;;  %350 = vmatprep.mubr.msk.bf16.mxu1 %vm371_vm1, %v370_v0  ;;  %v366_v3 = vld [vmem:[%s467_s1 + $0x10] sm:$0xff]   ;;  %v26_v4 = vld [vmem:[%s468_s0] sm:$0xff] }
   0x3   :  { %24 = vst.msk [vmem:[#allocation2 + $0x20] sm:$0xff] %vm19_vm0, %v370_v0  ;;  %25 = vst.msk [vmem:[#allocation2 + $0x28] sm:$0xff] %vm19_vm0, %v370_v0  ;;  %339 = vmatpush3.bf16.msra.mxu0 %v364_v1  ;;  %v27_v5 = vld [vmem:[%s468_s0 + $0x8] sm:$0xff]  ;;  %347 = vmatpush3.bf16.msra.mxu1 %v366_v3  ;;  %v368_v7 = vld [vmem:[%s467_s1 + $0x18] sm:$0xff]  }
   0x4   :  { %340 = vmatprep.subr.bf16.mxu0 %v370_v0  ;;  %v28_v6 = vpack.c.bf16 %v27_v5, %v26_v4  ;;  %348 = vmatprep.subr.bf16.mxu1 %v370_v0  ;;  %v367_v8 = vld [vmem:[%s467_s1 + $0x20] sm:$0xff]   ;;  %v369_v9 = vld [vmem:[%s467_s1 + $0x28] sm:$0xff]  }
   0x5   :  { %v314_v27 = vld [vmem:[%s469_s2] ss:$0 sm:$0xff]  ;;  %v315_v33 = vld [vmem:[%s469_s2 + $0x1] ss:$0 sm:$0xff]  ;;  %v316_v47 = vld [vmem:[%s469_s2 + $0x2] ss:$0 sm:$0xff] }
   0x7   :  { %341 = vmatpush3.bf16.msra.mxu0 %v365_v2  ;;  %349 = vmatpush3.bf16.msra.mxu1 %v368_v7 }
   0x8   :  { %354 = vmatprep.subr.bf16.mxu0 %v370_v0  ;;  %v29_v10 = vld [vmem:[#allocation2] sm:$0xff]  ;;  %v30_v12 = vld [vmem:[#allocation2 + $0x8] sm:$0xff] }
   0x9   :  { %v97_v13 = vld [vmem:[#allocation2 + $0x10] sm:$0xff]  ;;  %v98_v18 = vld [vmem:[#allocation2 + $0x18] sm:$0xff] }
   0xa   :  { %343 = vmatmul.mubr.msk.bf16.vlgmr.msra.gmra.mrb[0].mxu0 %vm19_vm0, %v28_v6  ;;  %351 = vmatmul.mubr.msk.bf16.vlgmr.msra.gmra.mrb[0].mxu1 %vm19_vm0, %v28_v6  ;;  %v162_v26 = vld [vmem:[#allocation2 + $0x20] sm:$0xff]  ;;  %v163_v29 = vld [vmem:[#allocation2 + $0x28] sm:$0xff] }
   0xb   :  { %355 = vmatpush3.bf16.msra.mxu0 %v367_v8  ;;  %358 = vmatprep.mubr.msk.bf16.mxu0 %vm371_vm1, %v370_v0 }
   0xc   :  { %356 = vmatprep.subr.bf16.mxu0 %v370_v0 }
   0xf   :  { %357 = vmatpush3.bf16.msra.mxu0 %v369_v9 }
  0x12   :  { %359 = vmatmul.mubr.msk.bf16.vlgmr.msra.gmra.mrb[4].mxu0 %vm19_vm0, %v28_v6 }
  0xdd   :  { %v85_v11 = vpop.f32.mrb[0].mxu0  ;;  %v150_v17 = vpop.f32.mrb[0].mxu1 }
  0xde   :  { %v92_v14 = vadd.f32 %v85_v11, %v29_v10  ;;  %v344_v15 = vpop.f32.mrb[1].mxu0  ;;  %v157_v21 = vadd.f32 %v150_v17, %v97_v13  ;;  %v352_v22 = vpop.f32.mrb[1].mxu1 }
  0xdf   :  { %v88_v16 = vpop.f32.mrb[2].mxu0  ;;  %v153_v23 = vpop.f32.mrb[2].mxu1 }
  0xe0   :  { %94 = vst.msk [vmem:[#allocation2] sm:$0xff] %vm19_vm0, %v92_v14  ;;  %v93_v19 = vadd.f32 %v88_v16, %v30_v12  ;;  %v345_v20 = vpop.f32.mrb[3].mxu0  ;;  %159 = vst.msk [vmem:[#allocation2 + $0x10] sm:$0xff] %vm19_vm0, %v157_v21  ;;  %v158_v24 = vadd.f32 %v153_v23, %v98_v18  ;;  %v353_v25 = vpop.f32.mrb[3].mxu1 }
  0xe2   :  { %95 = vst.msk [vmem:[#allocation2 + $0x8] sm:$0xff] %vm19_vm0, %v93_v19  ;;  %160 = vst.msk [vmem:[#allocation2 + $0x18] sm:$0xff] %vm19_vm0, %v158_v24 }
  0xe5   :  { %v215_v28 = vpop.f32.mrb[4].mxu0 }
  0xe6   :  { %v222_v30 = vadd.f32 %v215_v28, %v162_v26  ;;  %v360_v31 = vpop.f32.mrb[5].mxu0 }
  0xe7   :  { %v229_v32 = vld [vmem:[#allocation2] sm:$0xff]  ;;  %v218_v34 = vpop.f32.mrb[6].mxu0  ;;  %v231_v39 = vld [vmem:[#allocation2 + $0x10] sm:$0xff] }
  0xe8   :  { %v256_v35 = vadd.f32 %v314_v27, %v229_v32  ;;  %224 = vst.msk [vmem:[#allocation2 + $0x20] sm:$0xff] %vm19_vm0, %v222_v30  ;;  %v223_v36 = vadd.f32 %v218_v34, %v163_v29  ;;  %v361_v37 = vpop.f32.mrb[7].mxu0  ;;  %v258_v42 = vadd.f32 %v315_v33, %v231_v39 }
  0xe9   :  { %v230_v38 = vld [vmem:[#allocation2 + $0x8] sm:$0xff]  ;;  %v232_v43 = vld [vmem:[#allocation2 + $0x18] sm:$0xff] }
  0xea   :  { %v323_v40 = vpack.c.bf16 %v256_v35, %v256_v35  ;;  %v257_v41 = vadd.f32 %v314_v27, %v230_v38  ;;  %225 = vst.msk [vmem:[#allocation2 + $0x28] sm:$0xff] %vm19_vm0, %v223_v36  ;;  %v325_v45 = vpack.c.bf16 %v258_v42, %v258_v42  ;;  %v259_v46 = vadd.f32 %v315_v33, %v232_v43 }
  0xec   :  { %287 = vst.msk [vmem:[%s470_s3] sm:$0xf] %vm286_vm2, %v323_v40  ;;  %v324_v44 = vpack.c.bf16 %v257_v41, %v257_v41  ;;  %289 = vst.msk [vmem:[%s470_s3 + $0x8] sm:$0xf] %vm286_vm2, %v325_v45  ;;  %v326_v48 = vpack.c.bf16 %v259_v46, %v259_v46 }
  0xee   :  { %288 = vst.msk [vmem:[%s470_s3 + $0x4] sm:$0xf] %vm286_vm2, %v324_v44  ;;  %290 = vst.msk [vmem:[%s470_s3 + $0xc] sm:$0xf] %vm286_vm2, %v326_v48 }
  0xef   :  { %v233_v49 = vld [vmem:[#allocation2 + $0x20] sm:$0xff] }
  0xf0   :  { %v260_v50 = vadd.f32 %v316_v47, %v233_v49 }
  0xf1   :  { %v234_v51 = vld [vmem:[#allocation2 + $0x28] sm:$0xff] }
  0xf2   :  { %v327_v52 = vpack.c.bf16 %v260_v50, %v260_v50  ;;  %v261_v53 = vadd.f32 %v316_v47, %v234_v51 }
  0xf4   :  { %291 = vst.msk [vmem:[%s470_s3 + $0x10] sm:$0xf] %vm286_vm2, %v327_v52  ;;  %v328_v54 = vpack.c.bf16 %v261_v53, %v261_v53 }
  0xf6   :  { %292 = vst.msk [vmem:[%s470_s3 + $0x14] sm:$0xf] %vm286_vm2, %v328_v54 }

// kernel: transformer_encoder_layer_forward.9
= control target key start
LH: loop header
LB: loop body
LE: loop exit
PB: predicated region body
PF: predicated region fallthrough
CT: control target
= control target key end

     0   :  { %vm19_vm0 = vcmask 261120   ;;  %v257_v0 = vmov 0.0   ;;  %vm258_vm1 = vmmov 0   ;;  %vm200_vm2 = vcmask 257024   ;;  %s325_s1 = inlined_call_operand.vmem [shape: bf16[2,32,32], index: 1, kind: input, shape index: {}]   ;;  %s326_s0 = inlined_call_operand.vmem [shape: f32[16,32], index: 0, kind: input, shape index: {}]   ;;  %s327_s2 = inlined_call_operand.vmem [shape: f32[2,1,32], index: 2, kind: input, shape index: {}]   ;;  %s328_s3 = inlined_call_operand.vmem [shape: bf16[2,16,32], index: 3, kind: output, shape index: {}]  }
   0x1   :  { %235 = vmatprep.subr.bf16.mxu0 %v257_v0  ;;  %243 = vmatprep.subr.bf16.mxu1 %v257_v0  ;;  %v253_v1 = vld [vmem:[%s325_s1] sm:$0xff]   ;;  %20 = vst.msk [vmem:[#allocation2] sm:$0xff] %vm19_vm0, %v257_v0  ;;  %21 = vst.msk [vmem:[#allocation2 + $0x8] sm:$0xff] %vm19_vm0, %v257_v0  ;;  %v254_v2 = vld [vmem:[%s325_s1 + $0x10] sm:$0xff]  }
   0x2   :  { %22 = vst.msk [vmem:[#allocation2 + $0x10] sm:$0xff] %vm19_vm0, %v257_v0  ;;  %23 = vst.msk [vmem:[#allocation2 + $0x18] sm:$0xff] %vm19_vm0, %v257_v0  ;;  %239 = vmatprep.mubr.msk.bf16.mxu0 %vm258_vm1, %v257_v0  ;;  %247 = vmatprep.mubr.msk.bf16.mxu1 %vm258_vm1, %v257_v0  ;;  %v255_v3 = vld [vmem:[%s325_s1 + $0x8] sm:$0xff]   ;;  %v256_v4 = vld [vmem:[%s325_s1 + $0x18] sm:$0xff]  }
   0x3   :  { %236 = vmatpush3.bf16.msra.mxu0 %v253_v1  ;;  %244 = vmatpush3.bf16.msra.mxu1 %v254_v2  ;;  %v24_v5 = vld [vmem:[%s326_s0] sm:$0xff]  ;;  %v25_v6 = vld [vmem:[%s326_s0 + $0x8] sm:$0xff] }
   0x4   :  { %237 = vmatprep.subr.bf16.mxu0 %v257_v0  ;;  %245 = vmatprep.subr.bf16.mxu1 %v257_v0  ;;  %v26_v7 = vpack.c.bf16 %v25_v6, %v24_v5  ;;  %v219_v24 = vld [vmem:[%s327_s2] ss:$0 sm:$0xff]  ;;  %v220_v25 = vld [vmem:[%s327_s2 + $0x1] ss:$0 sm:$0xff] }
   0x7   :  { %238 = vmatpush3.bf16.msra.mxu0 %v255_v3  ;;  %246 = vmatpush3.bf16.msra.mxu1 %v256_v4 }
   0x8   :  { %v27_v8 = vld [vmem:[#allocation2] sm:$0xff]  ;;  %v28_v11 = vld [vmem:[#allocation2 + $0x8] sm:$0xff] }
   0x9   :  { %v95_v9 = vld [vmem:[#allocation2 + $0x10] sm:$0xff]  ;;  %v96_v15 = vld [vmem:[#allocation2 + $0x18] sm:$0xff] }
   0xa   :  { %240 = vmatmul.mubr.msk.bf16.vlgmr.msra.gmra.mrb[0].mxu0 %vm19_vm0, %v26_v7  ;;  %248 = vmatmul.mubr.msk.bf16.vlgmr.msra.gmra.mrb[0].mxu1 %vm19_vm0, %v26_v7 }
  0xdd   :  { %v83_v10 = vpop.f32.mrb[0].mxu0  ;;  %v148_v13 = vpop.f32.mrb[0].mxu1 }
  0xde   :  { %v90_v12 = vadd.f32 %v83_v10, %v27_v8  ;;  %v241_v14 = vpop.f32.mrb[1].mxu0  ;;  %v155_v16 = vadd.f32 %v148_v13, %v95_v9  ;;  %v249_v17 = vpop.f32.mrb[1].mxu1 }
  0xdf   :  { %v86_v18 = vpop.f32.mrb[2].mxu0  ;;  %v151_v20 = vpop.f32.mrb[2].mxu1 }
  0xe0   :  { %92 = vst.msk [vmem:[#allocation2] sm:$0xff] %vm19_vm0, %v90_v12  ;;  %v91_v19 = vadd.f32 %v86_v18, %v28_v11  ;;  %v242_v21 = vpop.f32.mrb[3].mxu0  ;;  %157 = vst.msk [vmem:[#allocation2 + $0x10] sm:$0xff] %vm19_vm0, %v155_v16  ;;  %v156_v22 = vadd.f32 %v151_v20, %v96_v15  ;;  %v250_v23 = vpop.f32.mrb[3].mxu1 }
  0xe2   :  { %93 = vst.msk [vmem:[#allocation2 + $0x8] sm:$0xff] %vm19_vm0, %v91_v19  ;;  %158 = vst.msk [vmem:[#allocation2 + $0x18] sm:$0xff] %vm19_vm0, %v156_v22 }
  0xe7   :  { %v162_v26 = vld [vmem:[#allocation2] sm:$0xff]  ;;  %v164_v28 = vld [vmem:[#allocation2 + $0x10] sm:$0xff] }
  0xe8   :  { %v180_v27 = vadd.f32 %v219_v24, %v162_v26  ;;  %v182_v29 = vadd.f32 %v220_v25, %v164_v28 }
  0xe9   :  { %v163_v30 = vld [vmem:[#allocation2 + $0x8] sm:$0xff]  ;;  %v165_v33 = vld [vmem:[#allocation2 + $0x18] sm:$0xff] }
  0xea   :  { %v225_v31 = vpack.c.bf16 %v180_v27, %v180_v27  ;;  %v181_v32 = vadd.f32 %v219_v24, %v163_v30  ;;  %v227_v34 = vpack.c.bf16 %v182_v29, %v182_v29  ;;  %v183_v35 = vadd.f32 %v220_v25, %v165_v33 }
  0xec   :  { %201 = vst.msk [vmem:[%s328_s3] sm:$0xf] %vm200_vm2, %v225_v31  ;;  %v226_v36 = vpack.c.bf16 %v181_v32, %v181_v32  ;;  %203 = vst.msk [vmem:[%s328_s3 + $0x8] sm:$0xf] %vm200_vm2, %v227_v34  ;;  %v228_v37 = vpack.c.bf16 %v183_v35, %v183_v35 }
  0xee   :  { %202 = vst.msk [vmem:[%s328_s3 + $0x4] sm:$0xf] %vm200_vm2, %v226_v36  ;;  %204 = vst.msk [vmem:[%s328_s3 + $0xc] sm:$0xf] %vm200_vm2, %v228_v37 }

// kernel: transformer_encoder_layer_forward.7
= control target key start
LH: loop header
LB: loop body
LE: loop exit
PB: predicated region body
PF: predicated region fallthrough
CT: control target
= control target key end

     0   :  { %s1427_s27 = smov 0   ;;  %s1587_s0 = inlined_call_operand.vmem [shape: bf16[3,2,8,32], index: 0, kind: input, shape index: {}, may-alias: {0,1,2}]   ;;  %s1588_s1 = inlined_call_operand.vmem [shape: bf16[3,2,8,32], index: 1, kind: input, shape index: {}, may-alias: {0,1,2}]   ;;  %s1589_s2 = inlined_call_operand.vmem [shape: bf16[3,2,8,32], index: 2, kind: input, shape index: {}, may-alias: {0,1,2}]   ;;  %s1590_s3 = inlined_call_operand.vmem [shape: bf16[32,32], index: 3, kind: input, shape index: {}]   ;;  %s1591_s4 = inlined_call_operand.vmem [shape: f32[1,32], index: 4, kind: input, shape index: {}]   ;;  %s1592_s5 = inlined_call_operand.vmem [shape: f32[2,8,32], index: 5, kind: input, shape index: {}]   ;;  %s1593_s6 = inlined_call_operand.vmem [shape: f32[1,32], index: 6, kind: input, shape index: {}]   ;;  %s1594_s7 = inlined_call_operand.vmem [shape: f32[1,32], index: 7, kind: input, shape index: {}]   ;;  %s1595_s8 = inlined_call_operand.vmem [shape: f32[2,8,32], index: 8, kind: output, shape index: {}]  }
   0x1 LB: > { %s1189_s28 = sadd.s32 4294967295, %s1375_s27   ;;  %p1193_p0 = scmp.ge.s32.totalorder %s1375_s27, 1  ;;  %s1375_s27 = sphi %s1427_s27, %s18_s27  }
   0x2   : > { %p290_p1 = scmp.lt.s32.totalorder %s1375_s27, 3 }
   0x4   : > { %p291_p2 = pnand %p1193_p0, %p290_p1 }
   0x5   : > { %p336_p3 = scmp.lt.s32.totalorder (!%p291_p2), %s1189_s28, 1  ;;  %v1377_v0 = vmov (!%p291_p2), 0.0   ;;  %vm1378_vm0 = vmmov (!%p291_p2), 0   ;;  %vm364_vm1 = vcmask (!%p291_p2), 64512   ;;  %s1379_s14 = smov (!%p291_p2), 120   ;;  %vm429_vm2 = vcmask (!%p291_p2), 1043456  }
   0x6   : > { %294 = sbr.rel (%p291_p2) target bundleno = 2620 (0xa3c), region = 52  ;;  %1257 = vmatprep.subr.bf16.mxu0 (!%p291_p2), %v1377_v0  ;;  %1259 = vmatprep.mubr.msk.bf16.mxu0 (!%p291_p2), %vm1378_vm0, %v1377_v0  ;;  %s1380_s18 = smov (!%p291_p2), 112   ;;  %v475_v41 = vld [vmem:[%s1590_s3] sm:$0xf] (!%p291_p2)  ;;  %vm359_vm3 = vcmask (!%p291_p2), 261120  }
   0x7   : > { %1263 = vmatprep.subr.bf16.mxu1 (!%p291_p2), %v1377_v0  ;;  %1265 = vmatprep.mubr.msk.bf16.mxu1 (!%p291_p2), %vm1378_vm0, %v1377_v0  ;;  %v480_v44 = vsel (!%p291_p2), %vm429_vm2, %v475_v41, 0  ;;  %360 = vst.msk [vmem:[#allocation2] sm:$0xff] (!%p291_p2), %vm359_vm3, %v1377_v0  ;;  %v651_v60 = vld [vmem:[%s1590_s3 + $0x4] sm:$0xf] (!%p291_p2)  ;;  %s1381_s23 = smov (!%p291_p2), 104  }
   0x8   : > { %v656_v61 = vsel (!%p291_p2), %vm429_vm2, %v651_v60, 0  ;;  %v827_v41 = vld [vmem:[%s1590_s3 + $0x8] sm:$0xf] (!%p291_p2) }
   0xd   : > { %s1597_s28 = smov (!%p336_p3, %s1189_s28), 1 }
   0xe   : > { %s1444_s29 = sshll.u32 %s1597_s28, 2  ;;  %v473_v63 = vld [vmem:[#allocation2] sm:$0xff]  ;;  %s1197_s30 = sshll.u32 %s1597_s28, 3 }
   0xf   : > { %s1450_s10 = scalar_lea.vmem %s1588_s1, %s1444_s29  ;;  %s1456_s13 = scalar_lea.vmem %s1587_s0, %s1444_s29 }
  0x10   : > { %v1199_v1 = vld [vmem:[%s1450_s10 + $0x8] sm:$0xf]  ;;  %v1343_v4 = vld [vmem:[%s1456_s13] ss:$0 sps:$4 sm:$0xff]   ;;  %s1479_s17 = scalar_lea.vmem %s1589_s2, %s1444_s29  ;;  %s353_s11 = scalar_lea.vmem %s1592_s5, %s1197_s30 }
  0x11   : > { %v1342_v2 = vld [vmem:[%s1450_s10 + $0x8] ss:$0 sps:$4 sm:$0xff]   ;;  %v369_v3 = vsel %vm364_vm1, %v1199_v1, 0  ;;  %v361_v5 = vld [vmem:[%s1456_s13] sm:$0xf]  ;;  %s357_s19 = scalar_lea.vmem %s1595_s8, %s1197_s30 }
  0x12   : > { %1258 = vmatpush3.bf16.xpose.msra.mxu0 %v369_v3  ;;  %535 = vrot.lane.b32.xlu0 %v1342_v2, %s1379_s14  ;;  %v1344_v27 = vld [vmem:[%s1479_s17 + $0x10] ss:$0 sps:$4 sm:$0xff]   ;;  %v1345_v36 = vld [vmem:[%s1450_s10 + $0x8] ss:$0 sps:$4 sm:$0xff]   ;;  %v1346_v39 = vld [vmem:[%s1456_s13] ss:$0 sps:$4 sm:$0xff]  }
  0x13   : > { %1275 = vmatprep.subr.bf16.mxu0 %v1377_v0  ;;  %v1200_v28 = vld [vmem:[%s1479_s17 + $0x10] sm:$0xf] }
  0x14   : > { %v431_v29 = vsel %vm429_vm2, %v1200_v28, 0  ;;  %v1347_v62 = vld [vmem:[%s1479_s17 + $0x10] ss:$0 sps:$4 sm:$0xff]  }
  0x15   : > { %1264 = vmatpush3.bf16.msra.mxu1 %v431_v29  ;;  %v1350_v60 = vld [vmem:[%s1479_s17 + $0x10] ss:$0 sps:$4 sm:$0xff]  }
  0x16   : > { %530 = vrot.lane.b32.xlu0 %v1343_v4, %s1379_s14  ;;  %1269 = vmatprep.subr.bf16.mxu1 %v1377_v0 }
  0x19   : > { %1260 = vmatmul.mubr.msk.bf16.vlgmr.msra.gmra.mrb[0].mxu0 %vm364_vm1, %v361_v5 }
  0x1a   : > { %1277 = vmatprep.mubr.msk.bf16.mxu0 %vm1378_vm0, %v1377_v0 }
  0x84   : > { %v536_v6 = vpop.permute.xlu0 %535 }
  0x85   : > { %v541_v7 = vsel %vm364_vm1, %v536_v6, 0 }
  0x86   : > { %1276 = vmatpush3.bf16.xpose.msra.mxu0 %v541_v7 }
  0x87   : > { %1287 = vmatprep.subr.bf16.mxu0 %v1377_v0 }
  0x88   : > { %v531_v8 = vpop.permute.xlu0 %530 }
  0x8d   : > { %1278 = vmatmul.mubr.msk.bf16.vlgmr.msra.gmra.mrb[4].mxu0 %vm364_vm1, %v531_v8 }
  0x8e   : > { %1289 = vmatprep.mubr.msk.bf16.mxu0 %vm1378_vm0, %v1377_v0  ;;  %1288 = vmatpush3.bf16.msra.mxu0 %v656_v61 }
  0x8f   : > { %1299 = vmatprep.subr.bf16.mxu0 %v1377_v0 }
  0xec   : > { %v405_v9 = vpop.f32.mrb[0].mxu0 }
  0xed   : > { %v411_v10 = vmul.f32 0.35355338, %v405_v9  ;;  %v1261_v11 = vpop.f32.mrb[1].mxu0 }
  0xee   : > { %v408_v12 = vpop.f32.mrb[2].mxu0 }
  0xef   : > { %v1262_v13 = vpop.f32.mrb[3].mxu0  ;;  %v412_v14 = vsel %vm364_vm1, %v411_v10, -inf }
  0xf0   : > { %413 = vmax.xlane.f32.xlu1 %v412_v14 }
 0x160   : > { %v577_v15 = vpop.f32.mrb[4].mxu0 }
 0x161   : > { %v583_v16 = vmul.f32 0.35355338, %v577_v15  ;;  %v1279_v17 = vpop.f32.mrb[5].mxu0 }
 0x162   : > { %v580_v18 = vpop.f32.mrb[6].mxu0 }
 0x163   : > { %v584_v19 = vsel %vm364_vm1, %v583_v16, -inf  ;;  %v1280_v20 = vpop.f32.mrb[7].mxu0 }
 0x164   : > { %585 = vmax.xlane.f32.xlu0 %v584_v19 }
 0x17a   : > { %777 = vrot.lane.b32.xlu0 %v1347_v62, %s1380_s18 }
 0x17d   : > { %v414_v21 = vpop.xlane.xlu1 %413 }
 0x17e   : > { %v415_v22 = vmax.f32 %v414_v21, -1e+30 }
 0x180   : > { %v416_v23 = vsub.f32 %v411_v10, %v415_v22 }
 0x182   : > { %v417_v24 = vmul.f32 1.442695, %v416_v23 }
 0x184   : > { %1351 = vpow2.f32 %v417_v24 }
 0x18e   : > { %v1352_v25 = vpop.eup %1351 }
 0x18f   : > { %v419_v26 = vsel %vm364_vm1, %v1352_v25, 0.0 }
 0x190   : > { %420 = vadd.xlane.f32.xlu1 %v419_v26  ;;  %v1349_v26 = vld [vmem:[%s1456_s13] ss:$0 sps:$4 sm:$0xff]  }
 0x1a1   : > { %601 = vrot.lane.b32.xlu1 %v1344_v27, %s1379_s14 }
 0x1f1   : > { %v586_v30 = vpop.xlane.xlu0 %585 }
 0x1f2   : > { %v587_v31 = vmax.f32 %v586_v30, -1e+30 }
 0x1f4   : > { %v588_v32 = vsub.f32 %v583_v16, %v587_v31 }
 0x1f5   : > { %v778_v17 = vpop.permute.xlu0 %777 }
 0x1f6   : > { %v589_v33 = vmul.f32 1.442695, %v588_v32  ;;  %v783_v18 = vsel %vm429_vm2, %v778_v17, 0 }
 0x1f8   : > { %1353 = vpow2.f32 %v589_v33 }
 0x202   : > { %v1354_v34 = vpop.eup %1353 }
 0x203   : > { %v591_v35 = vsel %vm364_vm1, %v1354_v34, 0.0 }
 0x204   : > { %592 = vadd.xlane.f32.xlu1 %v591_v35 }
 0x215   : > { %711 = vrot.lane.b32.xlu1 %v1345_v36, %s1380_s18 }
 0x219   : > { %706 = vrot.lane.b32.xlu1 %v1346_v39, %s1380_s18 }
 0x21d   : > { %v421_v37 = vpop.xlane.xlu1 %420 }
 0x21e   : > { %v422_v38 = vmax.f32 %v421_v37, 1e-30 }
 0x220   : > { %1355 = vrcp.f32 %v422_v38 }
 0x221   : > { %v602_v45 = vpop.permute.xlu1 %601 }
 0x222   : > { %v607_v53 = vsel %vm429_vm2, %v602_v45, 0 }
 0x22a   : > { %v1356_v40 = vpop.eup %1355 }
 0x22b   : > { %v424_v42 = vmul.f32 %v1356_v40, %v1352_v25  ;;  %v1348_v25 = vld [vmem:[%s1450_s10 + $0x8] ss:$0 sps:$4 sm:$0xff]  }
 0x22d   : > { %v425_v43 = vpack.c.bf16 %v424_v42, %v424_v42  ;;  %v832_v42 = vsel %vm429_vm2, %v827_v41, 0 }
 0x22f   : > { %1266 = vmatmul.mubr.msk.bf16.vlgmr.msra.gmra.mrb[0].mxu1 %vm364_vm1, %v425_v43 }
 0x230   : > { %1270 = vmatpush3.bf16.msra.mxu1 %v480_v44  ;;  %1271 = vmatprep.mubr.msk.bf16.mxu1 %vm1378_vm0, %v1377_v0 }
 0x231   : > { %1281 = vmatprep.subr.bf16.mxu1 %v1377_v0 }
 0x291   : > { %v593_v46 = vpop.xlane.xlu1 %592 }
 0x292   : > { %v594_v47 = vmax.f32 %v593_v46, 1e-30 }
 0x294   : > { %1357 = vrcp.f32 %v594_v47 }
 0x295   : > { %v712_v56 = vpop.permute.xlu1 %711 }
 0x296   : > { %v717_v58 = vsel %vm364_vm1, %v712_v56, 0 }
 0x299   : > { %v707_v59 = vpop.permute.xlu1 %706 }
 0x29e   : > { %v1358_v51 = vpop.eup %1357 }
 0x29f   : > { %v596_v55 = vmul.f32 %v1358_v51, %v1354_v34 }
 0x2a1   : > { %v597_v57 = vpack.c.bf16 %v596_v55, %v596_v55 }
 0x302   : > { %v467_v48 = vpop.f32.mrb[0].mxu1 }
 0x303   : > { %v474_v49 = vpack.c.bf16 %v467_v48, %v467_v48  ;;  %v1267_v50 = vpop.f32.mrb[1].mxu1 }
 0x304   : > { %v470_v52 = vpop.f32.mrb[2].mxu1 }
 0x305   : > { %v1268_v54 = vpop.f32.mrb[3].mxu1  ;;  %1272 = vmatmul.mubr.msk.bf16.vlgmr.msra.gmra.mrb[4].mxu1 %vm364_vm1, %v474_v49 }
 0x306   : > { %1282 = vmatpush3.bf16.msra.mxu1 %v607_v53  ;;  %1283 = vmatprep.mubr.msk.bf16.mxu1 %vm1378_vm0, %v1377_v0 }
 0x307   : > { %1293 = vmatprep.subr.bf16.mxu1 %v1377_v0 }
 0x30d   : > { %1284 = vmatmul.mubr.msk.bf16.vlgmr.msra.gmra.mrb[8].mxu1 %vm364_vm1, %v597_v57 }
 0x30e   : > { %1295 = vmatprep.mubr.msk.bf16.mxu1 %vm1378_vm0, %v1377_v0 }
 0x30f   : > { %1294 = vmatpush3.bf16.xpose.msra.mxu1 %v717_v58 }
 0x310   : > { %1305 = vmatprep.subr.bf16.mxu1 %v1377_v0 }
 0x316   : > { %1296 = vmatmul.mubr.msk.bf16.vlgmr.msra.gmra.mrb[12].mxu1 %vm364_vm1, %v707_v59 }
 0x317   : > { %1307 = vmatprep.mubr.msk.bf16.mxu1 %vm1378_vm0, %v1377_v0  ;;  %1306 = vmatpush3.bf16.msra.mxu1 %v832_v42 }
 0x318   : > { %1317 = vmatprep.subr.bf16.mxu1 %v1377_v0 }
 0x3d8   : > { %v516_v1 = vpop.f32.mrb[4].mxu1 }
 0x3d9   : > { %v522_v2 = vadd.f32 %v516_v1, %v473_v63  ;;  %v1273_v3 = vpop.f32.mrb[5].mxu1 }
 0x3da   : > { %v519_v4 = vpop.f32.mrb[6].mxu1 }
 0x3db   : > { %523 = vst.msk [vmem:[#allocation2] sm:$0xff] %vm359_vm3, %v522_v2  ;;  %v1274_v5 = vpop.f32.mrb[7].mxu1 }
 0x3e0   : > { %v643_v6 = vpop.f32.mrb[8].mxu1 }
 0x3e1   : > { %v650_v7 = vpack.c.bf16 %v643_v6, %v643_v6  ;;  %v1285_v8 = vpop.f32.mrb[9].mxu1 }
 0x3e2   : > { %v646_v9 = vpop.f32.mrb[10].mxu1  ;;  %v649_v27 = vld [vmem:[#allocation2] sm:$0xff] }
 0x3e3   : > { %v1286_v10 = vpop.f32.mrb[11].mxu1  ;;  %1290 = vmatmul.mubr.msk.bf16.vlgmr.msra.gmra.mrb[8].mxu0 %vm364_vm1, %v650_v7 }
 0x3e4   : > { %1301 = vmatprep.mubr.msk.bf16.mxu0 %vm1378_vm0, %v1377_v0  ;;  %1300 = vmatpush3.bf16.msra.mxu0 %v783_v18 }
 0x3e5   : > { %1311 = vmatprep.subr.bf16.mxu0 %v1377_v0 }
 0x3e9   : > { %v753_v11 = vpop.f32.mrb[12].mxu1 }
 0x3ea   : > { %v759_v12 = vmul.f32 0.35355338, %v753_v11  ;;  %v1297_v13 = vpop.f32.mrb[13].mxu1 }
 0x3eb   : > { %v756_v14 = vpop.f32.mrb[14].mxu1 }
 0x3ec   : > { %v1298_v15 = vpop.f32.mrb[15].mxu1  ;;  %v760_v16 = vsel %vm364_vm1, %v759_v12, -inf }
 0x3ed   : > { %761 = vmax.xlane.f32.xlu1 %v760_v16 }
 0x47a   : > { %v762_v19 = vpop.xlane.xlu1 %761 }
 0x47b   : > { %v763_v20 = vmax.f32 %v762_v19, -1e+30 }
 0x47d   : > { %v764_v21 = vsub.f32 %v759_v12, %v763_v20 }
 0x47f   : > { %v765_v22 = vmul.f32 1.442695, %v764_v21 }
 0x481   : > { %1359 = vpow2.f32 %v765_v22 }
 0x48b   : > { %v1360_v23 = vpop.eup %1359 }
 0x48c   : > { %v767_v24 = vsel %vm364_vm1, %v1360_v23, 0.0 }
 0x48d   : > { %768 = vadd.xlane.f32.xlu0 %v767_v24 }
 0x4a3   : > { %887 = vrot.lane.b32.xlu0 %v1348_v25, %s1381_s23  ;;  %v1061_v25 = vld [vmem:[%s353_s11] sm:$0xff] }
 0x4a7   : > { %882 = vrot.lane.b32.xlu0 %v1349_v26, %s1381_s23 }
 0x4b6   : > { %v692_v28 = vpop.f32.mrb[8].mxu0 }
 0x4b7   : > { %v698_v29 = vadd.f32 %v692_v28, %v649_v27  ;;  %v1291_v30 = vpop.f32.mrb[9].mxu0 }
 0x4b8   : > { %v695_v31 = vpop.f32.mrb[10].mxu0 }
 0x4b9   : > { %699 = vst.msk [vmem:[#allocation2] sm:$0xff] %vm359_vm3, %v698_v29  ;;  %v1292_v32 = vpop.f32.mrb[11].mxu0 }
 0x4c0   : > { %v825_v62 = vld [vmem:[#allocation2] sm:$0xff] }
 0x51a   : > { %v769_v33 = vpop.xlane.xlu0 %768 }
 0x51b   : > { %v770_v34 = vmax.f32 %v769_v33, 1e-30 }
 0x51d   : > { %1361 = vrcp.f32 %v770_v34 }
 0x51e   : > { %v888_v36 = vpop.permute.xlu0 %887 }
 0x51f   : > { %v893_v38 = vsel %vm364_vm1, %v888_v36, 0 }
 0x522   : > { %v883_v40 = vpop.permute.xlu0 %882 }
 0x527   : > { %v1362_v35 = vpop.eup %1361 }
 0x528   : > { %v772_v37 = vmul.f32 %v1362_v35, %v1360_v23  ;;  %v1228_v23 = vld [vmem:[%s1591_s4] ss:$0 sm:$0xff] }
 0x52a   : > { %v773_v39 = vpack.c.bf16 %v772_v37, %v772_v37 }
 0x52c   : > { %1302 = vmatmul.mubr.msk.bf16.vlgmr.msra.gmra.mrb[12].mxu0 %vm364_vm1, %v773_v39 }
 0x52d   : > { %1312 = vmatpush3.bf16.xpose.msra.mxu0 %v893_v38  ;;  %1313 = vmatprep.mubr.msk.bf16.mxu0 %vm1378_vm0, %v1377_v0  ;;  %v1229_v38 = vld [vmem:[%s1593_s6] ss:$0 sm:$0xff] }
 0x52e   : > { %1323 = vmatprep.subr.bf16.mxu0 %v1377_v0 }
 0x534   : > { %1314 = vmatmul.mubr.msk.bf16.vlgmr.msra.gmra.mrb[16].mxu0 %vm364_vm1, %v883_v40  ;;  %v1230_v40 = vld [vmem:[%s1594_s7] ss:$0 sm:$0xff] }
 0x535   : > { %1325 = vmatprep.mubr.msk.bf16.mxu0 %vm1378_vm0, %v1377_v0 }
 0x5ff   : > { %v819_v43 = vpop.f32.mrb[12].mxu0 }
 0x600   : > { %v826_v44 = vpack.c.bf16 %v819_v43, %v819_v43  ;;  %v1303_v45 = vpop.f32.mrb[13].mxu0 }
 0x601   : > { %v822_v46 = vpop.f32.mrb[14].mxu0 }
 0x602   : > { %v1304_v47 = vpop.f32.mrb[15].mxu0  ;;  %1308 = vmatmul.mubr.msk.bf16.vlgmr.msra.gmra.mrb[16].mxu1 %vm364_vm1, %v826_v44 }
 0x603   : > { %1319 = vmatprep.mubr.msk.bf16.mxu1 %vm1378_vm0, %v1377_v0  ;;  %v1003_v0 = vld [vmem:[%s1590_s3 + $0xc] sm:$0xf] }
 0x604   : > { %v1008_v61 = vsel %vm429_vm2, %v1003_v0, 0 }
 0x605   : > { %1324 = vmatpush3.bf16.msra.mxu0 %v1008_v61 }
 0x607   : > { %v929_v48 = vpop.f32.mrb[16].mxu0 }
 0x608   : > { %v935_v49 = vmul.f32 0.35355338, %v929_v48  ;;  %v1315_v50 = vpop.f32.mrb[17].mxu0 }
 0x609   : > { %v932_v51 = vpop.f32.mrb[18].mxu0 }
 0x60a   : > { %v1316_v52 = vpop.f32.mrb[19].mxu0  ;;  %v936_v53 = vsel %vm364_vm1, %v935_v49, -inf }
 0x60b   : > { %937 = vmax.xlane.f32.xlu0 %v936_v53 }
 0x698   : > { %v938_v54 = vpop.xlane.xlu0 %937 }
 0x699   : > { %v939_v55 = vmax.f32 %v938_v54, -1e+30 }
 0x69b   : > { %v940_v56 = vsub.f32 %v935_v49, %v939_v55 }
 0x69d   : > { %v941_v57 = vmul.f32 1.442695, %v940_v56 }
 0x69f   : > { %1363 = vpow2.f32 %v941_v57 }
 0x6a9   : > { %v1364_v58 = vpop.eup %1363 }
 0x6aa   : > { %v943_v59 = vsel %vm364_vm1, %v1364_v58, 0.0 }
 0x6ab   : > { %944 = vadd.xlane.f32.xlu1 %v943_v59 }
 0x6bc   : > { %953 = vrot.lane.b32.xlu1 %v1350_v60, %s1381_s23 }
 0x6d5   : > { %v868_v63 = vpop.f32.mrb[16].mxu1 }
 0x6d6   : > { %v874_v1 = vadd.f32 %v868_v63, %v825_v62  ;;  %v1309_v2 = vpop.f32.mrb[17].mxu1 }
 0x6d7   : > { %v871_v3 = vpop.f32.mrb[18].mxu1 }
 0x6d8   : > { %875 = vst.msk [vmem:[#allocation2] sm:$0xff] %vm359_vm3, %v874_v1  ;;  %v1310_v4 = vpop.f32.mrb[19].mxu1 }
 0x6df   : > { %v1001_v17 = vld [vmem:[#allocation2] sm:$0xff] }
 0x738   : > { %v945_v5 = vpop.xlane.xlu1 %944 }
 0x739   : > { %v946_v6 = vmax.f32 %v945_v5, 1e-30 }
 0x73b   : > { %1365 = vrcp.f32 %v946_v6 }
 0x73c   : > { %v954_v7 = vpop.permute.xlu1 %953 }
 0x73d   : > { %v959_v8 = vsel %vm429_vm2, %v954_v7, 0 }
 0x73e   : > { %1318 = vmatpush3.bf16.msra.mxu1 %v959_v8 }
 0x745   : > { %v1366_v9 = vpop.eup %1365 }
 0x746   : > { %v948_v10 = vmul.f32 %v1366_v9, %v1364_v58 }
 0x748   : > { %v949_v11 = vpack.c.bf16 %v948_v10, %v948_v10 }
 0x74a   : > { %1320 = vmatmul.mubr.msk.bf16.vlgmr.msra.gmra.mrb[20].mxu1 %vm364_vm1, %v949_v11 }
 0x81d   : > { %v995_v12 = vpop.f32.mrb[20].mxu1 }
 0x81e   : > { %v1002_v13 = vpack.c.bf16 %v995_v12, %v995_v12  ;;  %v1321_v14 = vpop.f32.mrb[21].mxu1 }
 0x81f   : > { %v998_v15 = vpop.f32.mrb[22].mxu1 }
 0x820   : > { %v1322_v16 = vpop.f32.mrb[23].mxu1  ;;  %1326 = vmatmul.mubr.msk.bf16.vlgmr.msra.gmra.mrb[20].mxu0 %vm364_vm1, %v1002_v13 }
 0x8f3   : > { %v1044_v18 = vpop.f32.mrb[20].mxu0 }
 0x8f4   : > { %v1050_v19 = vadd.f32 %v1044_v18, %v1001_v17  ;;  %v1327_v20 = vpop.f32.mrb[21].mxu0 }
 0x8f5   : > { %v1047_v21 = vpop.f32.mrb[22].mxu0 }
 0x8f6   : > { %1051 = vst.msk [vmem:[#allocation2] sm:$0xff] %vm359_vm3, %v1050_v19  ;;  %v1328_v22 = vpop.f32.mrb[23].mxu0 }
 0x8fd   : > { %v1052_v24 = vld [vmem:[#allocation2] sm:$0xff] }
 0x8fe   : > { %v1060_v26 = vadd.f32 %v1228_v23, %v1052_v24 }
 0x900   : > { %v1062_v27 = vadd.f32 %v1061_v25, %v1060_v26 }
 0x902   : > { %v1063_v28 = vsel %vm359_vm3, %v1062_v27, 0.0 }
 0x903   : > { %1064 = vadd.xlane.f32.xlu1 %v1063_v28 }
 0x990   : > { %v1065_v29 = vpop.xlane.xlu1 %1064 }
 0x991   : > { %v1067_v30 = vmul.f32 0.03125, %v1065_v29 }
 0x993   : > { %v1068_v31 = vsub.f32 %v1062_v27, %v1067_v30 }
 0x995   : > { %v1069_v32 = vmul.f32 %v1068_v31, %v1068_v31 }
 0x997   : > { %v1070_v33 = vsel %vm359_vm3, %v1069_v32, 0.0 }
 0x998   : > { %1071 = vadd.xlane.f32.xlu0 %v1070_v33 }
 0xa25   : > { %v1072_v34 = vpop.xlane.xlu0 %1071 }
 0xa26   : > { %v1073_v35 = vmul.f32 0.03125, %v1072_v34 }
 0xa28   : > { %v1074_v36 = vadd.f32 1e-05, %v1073_v35 }
 0xa2a   : > { %1367 = vrsqrt.f32 %v1074_v36 }
 0xa34   : > { %v1368_v37 = vpop.eup %1367 }
 0xa35   : > { %v1076_v39 = vmul.f32 %v1368_v37, %v1068_v31 }
 0xa37   : > { %v1084_v41 = vmul.f32 %v1229_v38, %v1076_v39 }
 0xa39   : > { %v1092_v42 = vadd.f32 %v1230_v40, %v1084_v41 }
 0xa3b   : > { %1093 = vst.msk [vmem:[%s357_s19] sm:$0xff] %vm359_vm3, %v1092_v42 }
 0xa3c PF: > { %s18_s27 = sadd.s32 1, %s1375_s27  }
 0xa3d   : > { %p15_p4 = scmp.ge.s32.totalorder %s18_s27, 4  }
 0xa3f   :  { %17 = sbr.rel (!%p15_p4) target bundleno = 1 (0x1), region = 91 }

// kernel: transformer_encoder_layer_forward.11
= control target key start
LH: loop header
LB: loop body
LE: loop exit
PB: predicated region body
PF: predicated region fallthrough
CT: control target
= control target key end

     0   :  { %vm31_vm0 = vcmask 261120   ;;  %v312_v0 = vmov 0.0   ;;  %vm313_vm1 = vmmov 0   ;;  %vm142_vm2 = vcmask 523264   ;;  %s407_s1 = inlined_call_operand.vmem [shape: bf16[32,64], index: 1, kind: input, shape index: {}]   ;;  %s408_s0 = inlined_call_operand.vmem [shape: f32[16,32], index: 0, kind: input, shape index: {}]   ;;  %s409_s3 = inlined_call_operand.vmem [shape: bf16[64,32], index: 3, kind: input, shape index: {}]   ;;  %s410_s2 = inlined_call_operand.vmem [shape: f32[1,64], index: 2, kind: input, shape index: {}]   ;;  %s411_s4 = inlined_call_operand.vmem [shape: f32[1,32], index: 4, kind: input, shape index: {}]   ;;  %s412_s5 = inlined_call_operand.vmem [shape: f32[1,32], index: 5, kind: input, shape index: {}]   ;;  %s413_s6 = inlined_call_operand.vmem [shape: f32[1,32], index: 6, kind: input, shape index: {}]   ;;  %s414_s7 = inlined_call_operand.vmem [shape: f32[16,32], index: 7, kind: output, shape index: {}]  }
   0x1   :  { %280 = vmatprep.subr.bf16.mxu0 %v312_v0  ;;  %v302_v1 = vld [vmem:[%s407_s1] sm:$0xff]   ;;  %284 = vmatprep.mubr.msk.bf16.mxu0 %vm313_vm1, %v312_v0  ;;  %32 = vst.msk [vmem:[#allocation2] sm:$0xff] %vm31_vm0, %v312_v0  ;;  %33 = vst.msk [vmem:[#allocation2 + $0x8] sm:$0xff] %vm31_vm0, %v312_v0  ;;  %v303_v2 = vld [vmem:[%s407_s1 + $0x8] sm:$0xff]  }
   0x2   :  { %288 = vmatprep.subr.bf16.mxu1 %v312_v0  ;;  %296 = vmatprep.mubr.msk.bf16.mxu1 %vm313_vm1, %v312_v0  ;;  %v34_v3 = vld [vmem:[%s408_s0] sm:$0xff]  ;;  %v35_v4 = vld [vmem:[%s408_s0 + $0x8] sm:$0xff]  ;;  %v306_v8 = vld [vmem:[%s409_s3 + $0x10] sm:$0xff]  }
   0x3   :  { %281 = vmatpush3.bf16.msra.mxu0 %v302_v1  ;;  %v304_v5 = vld [vmem:[%s409_s3] sm:$0xff]   ;;  %v305_v6 = vld [vmem:[%s409_s3 + $0x8] sm:$0xff]   ;;  %v36_v7 = vpack.c.bf16 %v35_v4, %v34_v3  ;;  %v307_v9 = vld [vmem:[%s409_s3 + $0x18] sm:$0xff]  }
   0x4   :  { %282 = vmatprep.subr.bf16.mxu0 %v312_v0  ;;  %289 = vmatpush3.bf16.msra.mxu1 %v304_v5  ;;  %v260_v10 = vld [vmem:[%s410_s2] ss:$0 sm:$0xff] }
   0x5   :  { %290 = vmatprep.subr.bf16.mxu1 %v312_v0  ;;  %v269_v28 = vld [vmem:[%s411_s4] ss:$0 sm:$0xff] }
   0x6   :  { %v270_v54 = vld [vmem:[%s412_s5] ss:$0 sm:$0xff] }
   0x7   :  { %283 = vmatpush3.bf16.msra.mxu0 %v303_v2  ;;  %v271_v56 = vld [vmem:[%s413_s6] ss:$0 sm:$0xff] }
   0x8   :  { %291 = vmatpush3.bf16.msra.mxu1 %v305_v6  ;;  %v107_v20 = vld [vmem:[#allocation2] sm:$0xff]  ;;  %v108_v22 = vld [vmem:[#allocation2 + $0x8] sm:$0xff] }
   0x9   :  { %292 = vmatprep.subr.bf16.mxu1 %v312_v0 }
   0xa   :  { %285 = vmatmul.mubr.msk.bf16.vlgmr.msra.gmra.mrb[0].mxu0 %vm31_vm0, %v36_v7 }
   0xc   :  { %293 = vmatpush3.bf16.msra.mxu1 %v306_v8 }
   0xd   :  { %294 = vmatprep.subr.bf16.mxu1 %v312_v0 }
  0x10   :  { %295 = vmatpush3.bf16.msra.mxu1 %v307_v9 }
  0xdd   :  { %v98_v11 = vpop.f32.mrb[0].mxu0 }
  0xde   :  { %v99_v12 = vadd.f32 %v260_v10, %v98_v11  ;;  %v286_v13 = vpop.f32.mrb[1].mxu0 }
  0xdf   :  { %v101_v14 = vpop.f32.mrb[2].mxu0 }
  0xe0   :  { %v102_v15 = vadd.f32 %v260_v10, %v101_v14  ;;  %v287_v16 = vpop.f32.mrb[3].mxu0  ;;  %v105_v17 = vmax.f32 %v99_v12, 0.0 }
  0xe2   :  { %v106_v18 = vmax.f32 %v102_v15, 0.0 }
  0xe4   :  { %v109_v19 = vpack.c.bf16 %v106_v18, %v105_v17 }
  0xe6   :  { %297 = vmatmul.mubr.msk.bf16.vlgmr.msra.gmra.mrb[0].mxu1 %vm142_vm2, %v109_v19 }
 0x1b9   :  { %v180_v21 = vpop.f32.mrb[0].mxu1 }
 0x1ba   :  { %v187_v23 = vadd.f32 %v180_v21, %v107_v20  ;;  %v298_v24 = vpop.f32.mrb[1].mxu1 }
 0x1bb   :  { %v183_v25 = vpop.f32.mrb[2].mxu1 }
 0x1bc   :  { %189 = vst.msk [vmem:[#allocation2] sm:$0xff] %vm31_vm0, %v187_v23  ;;  %v188_v26 = vadd.f32 %v183_v25, %v108_v22  ;;  %v299_v27 = vpop.f32.mrb[3].mxu1 }
 0x1be   :  { %190 = vst.msk [vmem:[#allocation2 + $0x8] sm:$0xff] %vm31_vm0, %v188_v26 }
 0x1c3   :  { %v194_v29 = vld [vmem:[#allocation2] sm:$0xff] }
 0x1c4   :  { %v203_v30 = vadd.f32 %v269_v28, %v194_v29 }
 0x1c5   :  { %v195_v31 = vld [vmem:[#allocation2 + $0x8] sm:$0xff] }
 0x1c6   :  { %v207_v32 = vadd.f32 %v203_v30, %v34_v3  ;;  %v204_v33 = vadd.f32 %v269_v28, %v195_v31 }
 0x1c8   :  { %v209_v34 = vsel %vm31_vm0, %v207_v32, 0.0  ;;  %v208_v35 = vadd.f32 %v204_v33, %v35_v4 }
 0x1c9   :  { %210 = vadd.xlane.f32.xlu0 %v209_v34 }
 0x1ca   :  { %v212_v36 = vsel %vm31_vm0, %v208_v35, 0.0 }
 0x1cd   :  { %213 = vadd.xlane.f32.xlu0 %v212_v36 }
 0x256   :  { %v211_v37 = vpop.xlane.xlu0 %210 }
 0x257   :  { %v216_v38 = vmul.f32 0.03125, %v211_v37 }
 0x259   :  { %v218_v39 = vsub.f32 %v207_v32, %v216_v38 }
 0x25a   :  { %v214_v40 = vpop.xlane.xlu0 %213 }
 0x25b   :  { %v217_v41 = vmul.f32 0.03125, %v214_v40  ;;  %v220_v42 = vmul.f32 %v218_v39, %v218_v39 }
 0x25d   :  { %v219_v43 = vsub.f32 %v208_v35, %v217_v41  ;;  %v222_v44 = vsel %vm31_vm0, %v220_v42, 0.0 }
 0x25e   :  { %223 = vadd.xlane.f32.xlu1 %v222_v44 }
 0x25f   :  { %v221_v45 = vmul.f32 %v219_v43, %v219_v43 }
 0x261   :  { %v225_v46 = vsel %vm31_vm0, %v221_v45, 0.0 }
 0x262   :  { %226 = vadd.xlane.f32.xlu1 %v225_v46 }
 0x2eb   :  { %v224_v47 = vpop.xlane.xlu1 %223 }
 0x2ec   :  { %v228_v48 = vmul.f32 0.03125, %v224_v47 }
 0x2ee   :  { %v230_v49 = vadd.f32 1e-05, %v228_v48 }
 0x2ef   :  { %v227_v50 = vpop.xlane.xlu1 %226 }
 0x2f0   :  { %308 = vrsqrt.f32 %v230_v49  ;;  %v229_v51 = vmul.f32 0.03125, %v227_v50 }
 0x2f2   :  { %v231_v52 = vadd.f32 1e-05, %v229_v51 }
 0x2f4   :  { %310 = vrsqrt.f32 %v231_v52 }
 0x2fa   :  { %v309_v53 = vpop.eup %308 }
 0x2fb   :  { %v234_v55 = vmul.f32 %v309_v53, %v218_v39 }
 0x2fd   :  { %v243_v57 = vmul.f32 %v270_v54, %v234_v55 }
 0x2fe   :  { %v311_v58 = vpop.eup %310 }
 0x2ff   :  { %v252_v59 = vadd.f32 %v271_v56, %v243_v57  ;;  %v235_v60 = vmul.f32 %v311_v58, %v219_v43 }
 0x301   :  { %254 = vst.msk [vmem:[%s414_s7] sm:$0xff] %vm31_vm0, %v252_v59  ;;  %v244_v61 = vmul.f32 %v270_v54, %v235_v60 }
 0x303   :  { %v253_v62 = vadd.f32 %v271_v56, %v244_v61 }
 0x305   :  { %255 = vst.msk [vmem:[%s414_s7 + $0x8] sm:$0xff] %vm31_vm0, %v253_v62 }

// kernel: transformer_encoder_layer_forward.10
= control target key start
LH: loop header
LB: loop body
LE: loop exit
PB: predicated region body
PF: predicated region fallthrough
CT: control target
= control target key end

     0   :  { %s1417_s27 = smov 0   ;;  %s1577_s0 = inlined_call_operand.vmem [shape: bf16[1,2,8,32], index: 0, kind: input, shape index: {}]   ;;  %s1578_s1 = inlined_call_operand.vmem [shape: bf16[2,2,8,32], index: 1, kind: input, shape index: {}, may-alias: {1,2}]   ;;  %s1579_s2 = inlined_call_operand.vmem [shape: bf16[2,2,8,32], index: 2, kind: input, shape index: {}, may-alias: {1,2}]   ;;  %s1580_s3 = inlined_call_operand.vmem [shape: bf16[32,32], index: 3, kind: input, shape index: {}]   ;;  %s1581_s4 = inlined_call_operand.vmem [shape: f32[1,32], index: 4, kind: input, shape index: {}]   ;;  %s1582_s5 = inlined_call_operand.vmem [shape: f32[2,8,32], index: 5, kind: input, shape index: {}]   ;;  %s1583_s6 = inlined_call_operand.vmem [shape: f32[1,32], index: 6, kind: input, shape index: {}]   ;;  %s1584_s7 = inlined_call_operand.vmem [shape: f32[1,32], index: 7, kind: input, shape index: {}]   ;;  %s1585_s8 = inlined_call_operand.vmem [shape: f32[2,8,32], index: 8, kind: output, shape index: {}]  }
   0x1 LB: > { %s1183_s28 = sadd.s32 4294967295, %s1365_s27   ;;  %p1187_p0 = scmp.ge.s32.totalorder %s1365_s27, 1  ;;  %s1365_s27 = sphi %s1417_s27, %s18_s27  }
   0x2   : > { %p289_p1 = scmp.lt.s32.totalorder %s1365_s27, 3 }
   0x4   : > { %p290_p2 = pnand %p1187_p0, %p289_p1 }
   0x5   : > { %p334_p3 = scmp.lt.s32.totalorder (!%p290_p2), %s1183_s28, 1  ;;  %v1367_v0 = vmov (!%p290_p2), 0.0   ;;  %vm1368_vm0 = vmmov (!%p290_p2), 0   ;;  %vm361_vm1 = vcmask (!%p290_p2), 64512   ;;  %s1369_s14 = smov (!%p290_p2), 120   ;;  %vm426_vm2 = vcmask (!%p290_p2), 1043456  }
   0x6   : > { %293 = sbr.rel (%p290_p2) target bundleno = 2620 (0xa3c), region = 52  ;;  %1247 = vmatprep.subr.bf16.mxu0 (!%p290_p2), %v1367_v0  ;;  %1249 = vmatprep.mubr.msk.bf16.mxu0 (!%p290_p2), %vm1368_vm0, %v1367_v0  ;;  %s1370_s18 = smov (!%p290_p2), 112   ;;  %v472_v41 = vld [vmem:[%s1580_s3] sm:$0xf] (!%p290_p2)  ;;  %vm356_vm3 = vcmask (!%p290_p2), 261120  }
   0x7   : > { %1253 = vmatprep.subr.bf16.mxu1 (!%p290_p2), %v1367_v0  ;;  %1255 = vmatprep.mubr.msk.bf16.mxu1 (!%p290_p2), %vm1368_vm0, %v1367_v0  ;;  %v477_v44 = vsel (!%p290_p2), %vm426_vm2, %v472_v41, 0  ;;  %357 = vst.msk [vmem:[#allocation2] sm:$0xff] (!%p290_p2), %vm356_vm3, %v1367_v0  ;;  %v648_v60 = vld [vmem:[%s1580_s3 + $0x4] sm:$0xf] (!%p290_p2)  ;;  %s1371_s23 = smov (!%p290_p2), 104  }
   0x8   : > { %v653_v61 = vsel (!%p290_p2), %vm426_vm2, %v648_v60, 0  ;;  %v824_v41 = vld [vmem:[%s1580_s3 + $0x8] sm:$0xf] (!%p290_p2) }
   0xd   : > { %s1587_s28 = smov (!%p334_p3, %s1183_s28), 1 }
   0xe   : > { %s1434_s29 = sshll.u32 %s1587_s28, 2  ;;  %v470_v63 = vld [vmem:[#allocation2] sm:$0xff]  ;;  %s1191_s30 = sshll.u32 %s1587_s28, 3 }
   0xf   : > { %s1440_s10 = scalar_lea.vmem %s1578_s1, %s1434_s29  ;;  %s1446_s13 = scalar_lea.vmem %s1577_s0, %s1434_s29 }
  0x10   : > { %v359_v1 = vld [vmem:[%s1440_s10] sm:$0xf]  ;;  %s1469_s17 = scalar_lea.vmem %s1579_s2, %s1434_s29  ;;  %s350_s11 = scalar_lea.vmem %s1582_s5, %s1191_s30 }
  0x11   : > { %v1332_v2 = vld [vmem:[%s1440_s10] ss:$0 sps:$4 sm:$0xff]   ;;  %v366_v3 = vsel %vm361_vm1, %v359_v1, 0  ;;  %v1334_v27 = vld [vmem:[%s1469_s17 + $0x8] ss:$0 sps:$4 sm:$0xff]   ;;  %s354_s19 = scalar_lea.vmem %s1585_s8, %s1191_s30 }
  0x12   : > { %1248 = vmatpush3.bf16.xpose.msra.mxu0 %v366_v3  ;;  %532 = vrot.lane.b32.xlu0 %v1332_v2, %s1369_s14  ;;  %v1333_v4 = vld [vmem:[%s1446_s13] ss:$0 sps:$4 sm:$0xff]   ;;  %v1193_v28 = vld [vmem:[%s1469_s17 + $0x8] sm:$0xf] }
  0x13   : > { %1265 = vmatprep.subr.bf16.mxu0 %v1367_v0  ;;  %v358_v5 = vld [vmem:[%s1446_s13] sm:$0xf]  ;;  %v428_v29 = vsel %vm426_vm2, %v1193_v28, 0  ;;  %v1337_v62 = vld [vmem:[%s1469_s17 + $0x8] ss:$0 sps:$4 sm:$0xff]  }
  0x14   : > { %1254 = vmatpush3.bf16.msra.mxu1 %v428_v29  ;;  %v1335_v36 = vld [vmem:[%s1440_s10] ss:$0 sps:$4 sm:$0xff]   ;;  %v1340_v60 = vld [vmem:[%s1469_s17 + $0x8] ss:$0 sps:$4 sm:$0xff]  }
  0x15   : > { %1259 = vmatprep.subr.bf16.mxu1 %v1367_v0  ;;  %v1336_v39 = vld [vmem:[%s1446_s13] ss:$0 sps:$4 sm:$0xff]  }
  0x16   : > { %527 = vrot.lane.b32.xlu0 %v1333_v4, %s1369_s14 }
  0x19   : > { %1250 = vmatmul.mubr.msk.bf16.vlgmr.msra.gmra.mrb[0].mxu0 %vm361_vm1, %v358_v5 }
  0x1a   : > { %1267 = vmatprep.mubr.msk.bf16.mxu0 %vm1368_vm0, %v1367_v0 }
  0x84   : > { %v533_v6 = vpop.permute.xlu0 %532 }
  0x85   : > { %v538_v7 = vsel %vm361_vm1, %v533_v6, 0 }
  0x86   : > { %1266 = vmatpush3.bf16.xpose.msra.mxu0 %v538_v7 }
  0x87   : > { %1277 = vmatprep.subr.bf16.mxu0 %v1367_v0 }
  0x88   : > { %v528_v8 = vpop.permute.xlu0 %527 }
  0x8d   : > { %1268 = vmatmul.mubr.msk.bf16.vlgmr.msra.gmra.mrb[4].mxu0 %vm361_vm1, %v528_v8 }
  0x8e   : > { %1279 = vmatprep.mubr.msk.bf16.mxu0 %vm1368_vm0, %v1367_v0  ;;  %1278 = vmatpush3.bf16.msra.mxu0 %v653_v61 }
  0x8f   : > { %1289 = vmatprep.subr.bf16.mxu0 %v1367_v0 }
  0xec   : > { %v402_v9 = vpop.f32.mrb[0].mxu0 }
  0xed   : > { %v408_v10 = vmul.f32 0.35355338, %v402_v9  ;;  %v1251_v11 = vpop.f32.mrb[1].mxu0 }
  0xee   : > { %v405_v12 = vpop.f32.mrb[2].mxu0 }
  0xef   : > { %v1252_v13 = vpop.f32.mrb[3].mxu0  ;;  %v409_v14 = vsel %vm361_vm1, %v408_v10, -inf }
  0xf0   : > { %410 = vmax.xlane.f32.xlu1 %v409_v14 }
 0x160   : > { %v574_v15 = vpop.f32.mrb[4].mxu0 }
 0x161   : > { %v580_v16 = vmul.f32 0.35355338, %v574_v15  ;;  %v1269_v17 = vpop.f32.mrb[5].mxu0 }
 0x162   : > { %v577_v18 = vpop.f32.mrb[6].mxu0 }
 0x163   : > { %v581_v19 = vsel %vm361_vm1, %v580_v16, -inf  ;;  %v1270_v20 = vpop.f32.mrb[7].mxu0 }
 0x164   : > { %582 = vmax.xlane.f32.xlu0 %v581_v19 }
 0x17a   : > { %774 = vrot.lane.b32.xlu0 %v1337_v62, %s1370_s18 }
 0x17d   : > { %v411_v21 = vpop.xlane.xlu1 %410 }
 0x17e   : > { %v412_v22 = vmax.f32 %v411_v21, -1e+30 }
 0x180   : > { %v413_v23 = vsub.f32 %v408_v10, %v412_v22 }
 0x182   : > { %v414_v24 = vmul.f32 1.442695, %v413_v23 }
 0x184   : > { %1341 = vpow2.f32 %v414_v24 }
 0x18e   : > { %v1342_v25 = vpop.eup %1341 }
 0x18f   : > { %v416_v26 = vsel %vm361_vm1, %v1342_v25, 0.0 }
 0x190   : > { %417 = vadd.xlane.f32.xlu1 %v416_v26  ;;  %v1339_v26 = vld [vmem:[%s1446_s13] ss:$0 sps:$4 sm:$0xff]  }
 0x1a1   : > { %598 = vrot.lane.b32.xlu1 %v1334_v27, %s1369_s14 }
 0x1f1   : > { %v583_v30 = vpop.xlane.xlu0 %582 }
 0x1f2   : > { %v584_v31 = vmax.f32 %v583_v30, -1e+30 }
 0x1f4   : > { %v585_v32 = vsub.f32 %v580_v16, %v584_v31 }
 0x1f5   : > { %v775_v17 = vpop.permute.xlu0 %774 }
 0x1f6   : > { %v586_v33 = vmul.f32 1.442695, %v585_v32  ;;  %v780_v18 = vsel %vm426_vm2, %v775_v17, 0 }
 0x1f8   : > { %1343 = vpow2.f32 %v586_v33 }
 0x202   : > { %v1344_v34 = vpop.eup %1343 }
 0x203   : > { %v588_v35 = vsel %vm361_vm1, %v1344_v34, 0.0 }
 0x204   : > { %589 = vadd.xlane.f32.xlu1 %v588_v35 }
 0x215   : > { %708 = vrot.lane.b32.xlu1 %v1335_v36, %s1370_s18 }
 0x219   : > { %703 = vrot.lane.b32.xlu1 %v1336_v39, %s1370_s18 }
 0x21d   : > { %v418_v37 = vpop.xlane.xlu1 %417 }
 0x21e   : > { %v419_v38 = vmax.f32 %v418_v37, 1e-30 }
 0x220   : > { %1345 = vrcp.f32 %v419_v38 }
 0x221   : > { %v599_v45 = vpop.permute.xlu1 %598 }
 0x222   : > { %v604_v53 = vsel %vm426_vm2, %v599_v45, 0 }
 0x22a   : > { %v1346_v40 = vpop.eup %1345 }
 0x22b   : > { %v421_v42 = vmul.f32 %v1346_v40, %v1342_v25  ;;  %v1338_v25 = vld [vmem:[%s1440_s10] ss:$0 sps:$4 sm:$0xff]  }
 0x22d   : > { %v422_v43 = vpack.c.bf16 %v421_v42, %v421_v42  ;;  %v829_v42 = vsel %vm426_vm2, %v824_v41, 0 }
 0x22f   : > { %1256 = vmatmul.mubr.msk.bf16.vlgmr.msra.gmra.mrb[0].mxu1 %vm361_vm1, %v422_v43 }
 0x230   : > { %1260 = vmatpush3.bf16.msra.mxu1 %v477_v44  ;;  %1261 = vmatprep.mubr.msk.bf16.mxu1 %vm1368_vm0, %v1367_v0 }
 0x231   : > { %1271 = vmatprep.subr.bf16.mxu1 %v1367_v0 }
 0x291   : > { %v590_v46 = vpop.xlane.xlu1 %589 }
 0x292   : > { %v591_v47 = vmax.f32 %v590_v46, 1e-30 }
 0x294   : > { %1347 = vrcp.f32 %v591_v47 }
 0x295   : > { %v709_v56 = vpop.permute.xlu1 %708 }
 0x296   : > { %v714_v58 = vsel %vm361_vm1, %v709_v56, 0 }
 0x299   : > { %v704_v59 = vpop.permute.xlu1 %703 }
 0x29e   : > { %v1348_v51 = vpop.eup %1347 }
 0x29f   : > { %v593_v55 = vmul.f32 %v1348_v51, %v1344_v34 }
 0x2a1   : > { %v594_v57 = vpack.c.bf16 %v593_v55, %v593_v55 }
 0x302   : > { %v464_v48 = vpop.f32.mrb[0].mxu1 }
 0x303   : > { %v471_v49 = vpack.c.bf16 %v464_v48, %v464_v48  ;;  %v1257_v50 = vpop.f32.mrb[1].mxu1 }
 0x304   : > { %v467_v52 = vpop.f32.mrb[2].mxu1 }
 0x305   : > { %v1258_v54 = vpop.f32.mrb[3].mxu1  ;;  %1262 = vmatmul.mubr.msk.bf16.vlgmr.msra.gmra.mrb[4].mxu1 %vm361_vm1, %v471_v49 }
 0x306   : > { %1272 = vmatpush3.bf16.msra.mxu1 %v604_v53  ;;  %1273 = vmatprep.mubr.msk.bf16.mxu1 %vm1368_vm0, %v1367_v0 }
 0x307   : > { %1283 = vmatprep.subr.bf16.mxu1 %v1367_v0 }
 0x30d   : > { %1274 = vmatmul.mubr.msk.bf16.vlgmr.msra.gmra.mrb[8].mxu1 %vm361_vm1, %v594_v57 }
 0x30e   : > { %1285 = vmatprep.mubr.msk.bf16.mxu1 %vm1368_vm0, %v1367_v0 }
 0x30f   : > { %1284 = vmatpush3.bf16.xpose.msra.mxu1 %v714_v58 }
 0x310   : > { %1295 = vmatprep.subr.bf16.mxu1 %v1367_v0 }
 0x316   : > { %1286 = vmatmul.mubr.msk.bf16.vlgmr.msra.gmra.mrb[12].mxu1 %vm361_vm1, %v704_v59 }
 0x317   : > { %1297 = vmatprep.mubr.msk.bf16.mxu1 %vm1368_vm0, %v1367_v0  ;;  %1296 = vmatpush3.bf16.msra.mxu1 %v829_v42 }
 0x318   : > { %1307 = vmatprep.subr.bf16.mxu1 %v1367_v0 }
 0x3d8   : > { %v513_v1 = vpop.f32.mrb[4].mxu1 }
 0x3d9   : > { %v519_v2 = vadd.f32 %v513_v1, %v470_v63  ;;  %v1263_v3 = vpop.f32.mrb[5].mxu1 }
 0x3da   : > { %v516_v4 = vpop.f32.mrb[6].mxu1 }
 0x3db   : > { %520 = vst.msk [vmem:[#allocation2] sm:$0xff] %vm356_vm3, %v519_v2  ;;  %v1264_v5 = vpop.f32.mrb[7].mxu1 }
 0x3e0   : > { %v640_v6 = vpop.f32.mrb[8].mxu1 }
 0x3e1   : > { %v647_v7 = vpack.c.bf16 %v640_v6, %v640_v6  ;;  %v1275_v8 = vpop.f32.mrb[9].mxu1 }
 0x3e2   : > { %v643_v9 = vpop.f32.mrb[10].mxu1  ;;  %v646_v27 = vld [vmem:[#allocation2] sm:$0xff] }
 0x3e3   : > { %v1276_v10 = vpop.f32.mrb[11].mxu1  ;;  %1280 = vmatmul.mubr.msk.bf16.vlgmr.msra.gmra.mrb[8].mxu0 %vm361_vm1, %v647_v7 }
 0x3e4   : > { %1291 = vmatprep.mubr.msk.bf16.mxu0 %vm1368_vm0, %v1367_v0  ;;  %1290 = vmatpush3.bf16.msra.mxu0 %v780_v18 }
 0x3e5   : > { %1301 = vmatprep.subr.bf16.mxu0 %v1367_v0 }
 0x3e9   : > { %v750_v11 = vpop.f32.mrb[12].mxu1 }
 0x3ea   : > { %v756_v12 = vmul.f32 0.35355338, %v750_v11  ;;  %v1287_v13 = vpop.f32.mrb[13].mxu1 }
 0x3eb   : > { %v753_v14 = vpop.f32.mrb[14].mxu1 }
 0x3ec   : > { %v1288_v15 = vpop.f32.mrb[15].mxu1  ;;  %v757_v16 = vsel %vm361_vm1, %v756_v12, -inf }
 0x3ed   : > { %758 = vmax.xlane.f32.xlu1 %v757_v16 }
 0x47a   : > { %v759_v19 = vpop.xlane.xlu1 %758 }
 0x47b   : > { %v760_v20 = vmax.f32 %v759_v19, -1e+30 }
 0x47d   : > { %v761_v21 = vsub.f32 %v756_v12, %v760_v20 }
 0x47f   : > { %v762_v22 = vmul.f32 1.442695, %v761_v21 }
 0x481   : > { %1349 = vpow2.f32 %v762_v22 }
 0x48b   : > { %v1350_v23 = vpop.eup %1349 }
 0x48c   : > { %v764_v24 = vsel %vm361_vm1, %v1350_v23, 0.0 }
 0x48d   : > { %765 = vadd.xlane.f32.xlu0 %v764_v24 }
 0x4a3   : > { %884 = vrot.lane.b32.xlu0 %v1338_v25, %s1371_s23  ;;  %v1058_v25 = vld [vmem:[%s350_s11] sm:$0xff] }
 0x4a7   : > { %879 = vrot.lane.b32.xlu0 %v1339_v26, %s1371_s23 }
 0x4b6   : > { %v689_v28 = vpop.f32.mrb[8].mxu0 }
 0x4b7   : > { %v695_v29 = vadd.f32 %v689_v28, %v646_v27  ;;  %v1281_v30 = vpop.f32.mrb[9].mxu0 }
 0x4b8   : > { %v692_v31 = vpop.f32.mrb[10].mxu0 }
 0x4b9   : > { %696 = vst.msk [vmem:[#allocation2] sm:$0xff] %vm356_vm3, %v695_v29  ;;  %v1282_v32 = vpop.f32.mrb[11].mxu0 }
 0x4c0   : > { %v822_v62 = vld [vmem:[#allocation2] sm:$0xff] }
 0x51a   : > { %v766_v33 = vpop.xlane.xlu0 %765 }
 0x51b   : > { %v767_v34 = vmax.f32 %v766_v33, 1e-30 }
 0x51d   : > { %1351 = vrcp.f32 %v767_v34 }
 0x51e   : > { %v885_v36 = vpop.permute.xlu0 %884 }
 0x51f   : > { %v890_v38 = vsel %vm361_vm1, %v885_v36, 0 }
 0x522   : > { %v880_v40 = vpop.permute.xlu0 %879 }
 0x527   : > { %v1352_v35 = vpop.eup %1351 }
 0x528   : > { %v769_v37 = vmul.f32 %v1352_v35, %v1350_v23  ;;  %v1218_v23 = vld [vmem:[%s1581_s4] ss:$0 sm:$0xff] }
 0x52a   : > { %v770_v39 = vpack.c.bf16 %v769_v37, %v769_v37 }
 0x52c   : > { %1292 = vmatmul.mubr.msk.bf16.vlgmr.msra.gmra.mrb[12].mxu0 %vm361_vm1, %v770_v39 }
 0x52d   : > { %1302 = vmatpush3.bf16.xpose.msra.mxu0 %v890_v38  ;;  %1303 = vmatprep.mubr.msk.bf16.mxu0 %vm1368_vm0, %v1367_v0  ;;  %v1219_v38 = vld [vmem:[%s1583_s6] ss:$0 sm:$0xff] }
 0x52e   : > { %1313 = vmatprep.subr.bf16.mxu0 %v1367_v0 }
 0x534   : > { %1304 = vmatmul.mubr.msk.bf16.vlgmr.msra.gmra.mrb[16].mxu0 %vm361_vm1, %v880_v40  ;;  %v1220_v40 = vld [vmem:[%s1584_s7] ss:$0 sm:$0xff] }
 0x535   : > { %1315 = vmatprep.mubr.msk.bf16.mxu0 %vm1368_vm0, %v1367_v0 }
 0x5ff   : > { %v816_v43 = vpop.f32.mrb[12].mxu0 }
 0x600   : > { %v823_v44 = vpack.c.bf16 %v816_v43, %v816_v43  ;;  %v1293_v45 = vpop.f32.mrb[13].mxu0 }
 0x601   : > { %v819_v46 = vpop.f32.mrb[14].mxu0 }
 0x602   : > { %v1294_v47 = vpop.f32.mrb[15].mxu0  ;;  %1298 = vmatmul.mubr.msk.bf16.vlgmr.msra.gmra.mrb[16].mxu1 %vm361_vm1, %v823_v44 }
 0x603   : > { %1309 = vmatprep.mubr.msk.bf16.mxu1 %vm1368_vm0, %v1367_v0  ;;  %v1000_v0 = vld [vmem:[%s1580_s3 + $0xc] sm:$0xf] }
 0x604   : > { %v1005_v61 = vsel %vm426_vm2, %v1000_v0, 0 }
 0x605   : > { %1314 = vmatpush3.bf16.msra.mxu0 %v1005_v61 }
 0x607   : > { %v926_v48 = vpop.f32.mrb[16].mxu0 }
 0x608   : > { %v932_v49 = vmul.f32 0.35355338, %v926_v48  ;;  %v1305_v50 = vpop.f32.mrb[17].mxu0 }
 0x609   : > { %v929_v51 = vpop.f32.mrb[18].mxu0 }
 0x60a   : > { %v1306_v52 = vpop.f32.mrb[19].mxu0  ;;  %v933_v53 = vsel %vm361_vm1, %v932_v49, -inf }
 0x60b   : > { %934 = vmax.xlane.f32.xlu0 %v933_v53 }
 0x698   : > { %v935_v54 = vpop.xlane.xlu0 %934 }
 0x699   : > { %v936_v55 = vmax.f32 %v935_v54, -1e+30 }
 0x69b   : > { %v937_v56 = vsub.f32 %v932_v49, %v936_v55 }
 0x69d   : > { %v938_v57 = vmul.f32 1.442695, %v937_v56 }
 0x69f   : > { %1353 = vpow2.f32 %v938_v57 }
 0x6a9   : > { %v1354_v58 = vpop.eup %1353 }
 0x6aa   : > { %v940_v59 = vsel %vm361_vm1, %v1354_v58, 0.0 }
 0x6ab   : > { %941 = vadd.xlane.f32.xlu1 %v940_v59 }
 0x6bc   : > { %950 = vrot.lane.b32.xlu1 %v1340_v60, %s1371_s23 }
 0x6d5   : > { %v865_v63 = vpop.f32.mrb[16].mxu1 }
 0x6d6   : > { %v871_v1 = vadd.f32 %v865_v63, %v822_v62  ;;  %v1299_v2 = vpop.f32.mrb[17].mxu1 }
 0x6d7   : > { %v868_v3 = vpop.f32.mrb[18].mxu1 }
 0x6d8   : > { %872 = vst.msk [vmem:[#allocation2] sm:$0xff] %vm356_vm3, %v871_v1  ;;  %v1300_v4 = vpop.f32.mrb[19].mxu1 }
 0x6df   : > { %v998_v17 = vld [vmem:[#allocation2] sm:$0xff] }
 0x738   : > { %v942_v5 = vpop.xlane.xlu1 %941 }
 0x739   : > { %v943_v6 = vmax.f32 %v942_v5, 1e-30 }
 0x73b   : > { %1355 = vrcp.f32 %v943_v6 }
 0x73c   : > { %v951_v7 = vpop.permute.xlu1 %950 }
 0x73d   : > { %v956_v8 = vsel %vm426_vm2, %v951_v7, 0 }
 0x73e   : > { %1308 = vmatpush3.bf16.msra.mxu1 %v956_v8 }
 0x745   : > { %v1356_v9 = vpop.eup %1355 }
 0x746   : > { %v945_v10 = vmul.f32 %v1356_v9, %v1354_v58 }
 0x748   : > { %v946_v11 = vpack.c.bf16 %v945_v10, %v945_v10 }
 0x74a   : > { %1310 = vmatmul.mubr.msk.bf16.vlgmr.msra.gmra.mrb[20].mxu1 %vm361_vm1, %v946_v11 }
 0x81d   : > { %v992_v12 = vpop.f32.mrb[20].mxu1 }
 0x81e   : > { %v999_v13 = vpack.c.bf16 %v992_v12, %v992_v12  ;;  %v1311_v14 = vpop.f32.mrb[21].mxu1 }
 0x81f   : > { %v995_v15 = vpop.f32.mrb[22].mxu1 }
 0x820   : > { %v1312_v16 = vpop.f32.mrb[23].mxu1  ;;  %1316 = vmatmul.mubr.msk.bf16.vlgmr.msra.gmra.mrb[20].mxu0 %vm361_vm1, %v999_v13 }
 0x8f3   : > { %v1041_v18 = vpop.f32.mrb[20].mxu0 }
 0x8f4   : > { %v1047_v19 = vadd.f32 %v1041_v18, %v998_v17  ;;  %v1317_v20 = vpop.f32.mrb[21].mxu0 }
 0x8f5   : > { %v1044_v21 = vpop.f32.mrb[22].mxu0 }
 0x8f6   : > { %1048 = vst.msk [vmem:[#allocation2] sm:$0xff] %vm356_vm3, %v1047_v19  ;;  %v1318_v22 = vpop.f32.mrb[23].mxu0 }
 0x8fd   : > { %v1049_v24 = vld [vmem:[#allocation2] sm:$0xff] }
 0x8fe   : > { %v1057_v26 = vadd.f32 %v1218_v23, %v1049_v24 }
 0x900   : > { %v1059_v27 = vadd.f32 %v1058_v25, %v1057_v26 }
 0x902   : > { %v1060_v28 = vsel %vm356_vm3, %v1059_v27, 0.0 }
 0x903   : > { %1061 = vadd.xlane.f32.xlu1 %v1060_v28 }
 0x990   : > { %v1062_v29 = vpop.xlane.xlu1 %1061 }
 0x991   : > { %v1064_v30 = vmul.f32 0.03125, %v1062_v29 }
 0x993   : > { %v1065_v31 = vsub.f32 %v1059_v27, %v1064_v30 }
 0x995   : > { %v1066_v32 = vmul.f32 %v1065_v31, %v1065_v31 }
 0x997   : > { %v1067_v33 = vsel %vm356_vm3, %v1066_v32, 0.0 }
 0x998   : > { %1068 = vadd.xlane.f32.xlu0 %v1067_v33 }
 0xa25   : > { %v1069_v34 = vpop.xlane.xlu0 %1068 }
 0xa26   : > { %v1070_v35 = vmul.f32 0.03125, %v1069_v34 }
 0xa28   : > { %v1071_v36 = vadd.f32 1e-05, %v1070_v35 }
 0xa2a   : > { %1357 = vrsqrt.f32 %v1071_v36 }
 0xa34   : > { %v1358_v37 = vpop.eup %1357 }
 0xa35   : > { %v1073_v39 = vmul.f32 %v1358_v37, %v1065_v31 }
 0xa37   : > { %v1081_v41 = vmul.f32 %v1219_v38, %v1073_v39 }
 0xa39   : > { %v1089_v42 = vadd.f32 %v1220_v40, %v1081_v41 }
 0xa3b   : > { %1090 = vst.msk [vmem:[%s354_s19] sm:$0xff] %vm356_vm3, %v1089_v42 }
 0xa3c PF: > { %s18_s27 = sadd.s32 1, %s1365_s27  }
 0xa3d   : > { %p15_p4 = scmp.ge.s32.totalorder %s18_s27, 4  }
 0xa3f   :  { %17 = sbr.rel (!%p15_p4) target bundleno = 1 (0x1), region = 91 }

</bundles_post_ra>
